<compile_context>
chip_gen: v6e
topology: v6e:2x2x1
jax: 0.10.0
libtpu: 0.0.40
codegen_flags: <defaults>
</compile_context>

<pallas_src>
import functools

import jax
import jax.numpy as jnp
from jax.experimental import pallas as pl
from jax.experimental.pallas import tpu as pltpu

IMAGE_SIZE = 64
IN_FEATURES = IMAGE_SIZE * IMAGE_SIZE  # 4096
HIDDEN = 256
EMBED = 32
EMBED_PAD = 128   # lane-dense latent (avoids masked stores / half-empty lanes)


def _round_up(x, m):
    return (x + m - 1) // m * m


def _vmem_capacity_bytes():
    """Generation-aware VMEM capacity; conservative fallback = v7x per-TC 64 MiB."""
    try:
        info = pltpu.get_tpu_info()
        cap = getattr(info, "vmem_capacity_bytes", None)
        if cap:
            return int(cap)
    except Exception:
        pass
    return 64 << 20


_VMEM_CAP = _vmem_capacity_bytes()
_BIG_VMEM = _VMEM_CAP >= (100 << 20)            # v5e / v6e: 128 MiB VMEM
_TB_MAX = 512 if _BIG_VMEM else 256             # v7x kept at 256 (>=2 grid steps)
_VMEM_LIMIT = (96 << 20) if _BIG_VMEM else (48 << 20)


def _choose_tb(n8, tb_max):
    """Batch tile choice.

    Pick the largest tile in {512,256,128,64,32,16,8} (capped at tb_max) that
      (a) yields >= 2 grid steps whenever the batch has >= 16 rows, so the
          "parallel" grid axis really splits across both v7x TensorCores, and
      (b) wastes at most ~1/8 of the batch in padding (fixes e.g. N=264 padding
          up to 512 rows with a fixed 256-row tile).
    n8 is a multiple of 8, so tb=8 always satisfies both (zero padding).
    """
    if n8 <= 8:
        return 8
    pad_budget = max(8, n8 // 8)
    for tb in (512, 256, 128, 64, 32, 16, 8):
        if tb > tb_max or tb > n8 // 2:
            continue
        if (-n8) % tb <= pad_budget:
            return tb
    return 8


def _ae_kernel(x_ref,
               w1_ref, b1_ref, w2_ref, b2_ref,      # encoder (bf16 W, f32 b)
               w3_ref, b3_ref, w4_ref, b4_ref,      # decoder (bf16 W, f32 b)
               out_ref):
    """Fused encoder+decoder MLP forward for one (TB, 4096) batch tile.

    x_ref:   (TB, 4096)          flattened image tile (any float dtype; cast here)
    out_ref: (TB, 4096) bf16     reconstruction logits (f32 accumulation inside)
    """
    # bf16 MXU inputs, f32 accumulation; bias-add / ReLU stay f32 (v5e-safe VPU).
    x = x_ref[...].astype(jnp.bfloat16)

    # ---- encoder ----
    h1 = jnp.dot(x, w1_ref[...], preferred_element_type=jnp.float32) + b1_ref[...]
    h1 = jnp.maximum(h1, 0.0)
    z = jnp.dot(h1.astype(jnp.bfloat16), w2_ref[...],
                preferred_element_type=jnp.float32) + b2_ref[...]
    # z columns EMBED..127 are exactly zero by construction (pack_params zero-pads
    # w2/b2 columns and w3 rows), so the padded latent is safe to feed onward.

    # ---- decoder ----
    h2 = jnp.dot(z.astype(jnp.bfloat16), w3_ref[...],
                 preferred_element_type=jnp.float32) + b3_ref[...]
    h2 = jnp.maximum(h2, 0.0)
    out = jnp.dot(h2.astype(jnp.bfloat16), w4_ref[...],
                  preferred_element_type=jnp.float32) + b4_ref[...]
    out_ref[...] = out.astype(out_ref.dtype)      # bf16 store halves output bytes


@functools.partial(jax.jit, static_argnames=("out_dtype",))
def network_forward(x_nchw, packed_params, out_dtype=jnp.bfloat16):
    """Mirrors Network.forward: z = encode(x.view(-1, 64*64)); return decode(z)."""
    n = x_nchw.shape[0]
    x2d = x_nchw.reshape(n, IN_FEATURES)   # producer's dtype; cast fused in-kernel

    (w1, b1, w2, b2, w3, b3, w4, b4) = packed_params
    # Static-shape checks for the packing/padding invariants (values are
    # guaranteed zero-padded by pack_params).
    assert w1.shape == (IN_FEATURES, HIDDEN) and w4.shape == (HIDDEN, IN_FEATURES)
    assert w2.shape == (HIDDEN, EMBED_PAD) and w3.shape == (EMBED_PAD, HIDDEN), (
        "params must go through pack_params (latent dim zero-padded to 128 lanes)")

    # Adaptive batch tile + minimal zero-padding.
    n8 = max(_round_up(n, 8), 8)
    tb = _choose_tb(n8, _TB_MAX)
    n_pad = _round_up(n8, tb)
    if n_pad != n:
        x2d = jnp.pad(x2d, ((0, n_pad - n), (0, 0)))

    grid = (n_pad // tb,)

    x_spec = pl.BlockSpec((tb, IN_FEATURES), lambda i: (i, 0))
    out_spec = pl.BlockSpec((tb, IN_FEATURES), lambda i: (i, 0))

    # Weights/biases: full-array blocks with constant index maps -> DMA'd once,
    # VMEM-resident across all batch-grid steps.
    def const(arr):
        return pl.BlockSpec(arr.shape, lambda i: (0, 0))

    flops = 2 * n_pad * (IN_FEATURES * HIDDEN + HIDDEN * EMBED_PAD
                         + EMBED_PAD * HIDDEN + HIDDEN * IN_FEATURES)
    out_itemsize = jnp.dtype(out_dtype).itemsize
    bytes_accessed = (
        n_pad * IN_FEATURES * x2d.dtype.itemsize          # x in
        + n_pad * IN_FEATURES * out_itemsize              # recon logits out (bf16)
        + sum(int(p.size) * p.dtype.itemsize for p in packed_params))
    cost = pl.CostEstimate(flops=int(flops), transcendentals=0,
                           bytes_accessed=int(bytes_accessed))

    out = pl.pallas_call(
        _ae_kernel,
        out_shape=jax.ShapeDtypeStruct((n_pad, IN_FEATURES), out_dtype),
        grid=grid,
        in_specs=[
            x_spec,
            const(w1), const(b1),
            const(w2), const(b2),
            const(w3), const(b3),
            const(w4), const(b4),
        ],
        out_specs=out_spec,
        compiler_params=pltpu.CompilerParams(
            dimension_semantics=("parallel",),   # megacore split on v7x; no-op on 1-TC chips
            vmem_limit_bytes=_VMEM_LIMIT,        # 48 MiB on v7x, 96 MiB on v5e/v6e
        ),
        cost_estimate=cost,
    )(x2d, w1, b1, w2, b2, w3, b3, w4, b4)

    return out[:n]


def init_params(key):
    """Deterministic init mimicking PyTorch nn.Linear default (U[-1/sqrt(fan_in), +])."""
    def linear(k, fan_in, fan_out):
        kw, kb = jax.random.split(k)
        bound = 1.0 / jnp.sqrt(fan_in)
        w = jax.random.uniform(kw, (fan_in, fan_out), jnp.float32, -bound, bound)
        b = jax.random.uniform(kb, (1, fan_out), jnp.float32, -bound, bound)
        return w, b

    k1, k2, k3, k4 = jax.random.split(key, 4)
    w1, b1 = linear(k1, IN_FEATURES, HIDDEN)   # encoder layer 1
    w2, b2 = linear(k2, HIDDEN, EMBED)         # encoder layer 2 (to embedding)
    w3, b3 = linear(k3, EMBED, HIDDEN)         # decoder layer 1
    w4, b4 = linear(k4, HIDDEN, IN_FEATURES)   # decoder layer 2 (logits)
    return (w1, b1, w2, b2, w3, b3, w4, b4)


def pack_params(params):
    """Cast weights to bf16 (MXU-native, halves HBM/VMEM bytes) and zero-pad the
    EMBED=32 latent dimension to 128 lanes so latent-side matmuls are lane-dense.
    The zero-padding of b2 columns and w3 rows is the invariant the kernel relies
    on.  Biases stay f32."""
    (w1, b1, w2, b2, w3, b3, w4, b4) = params
    pad = EMBED_PAD - EMBED
    w2p = jnp.pad(w2, ((0, 0), (0, pad)))   # (HIDDEN, 128)
    b2p = jnp.pad(b2, ((0, 0), (0, pad)))   # (1, 128); extra latent cols exactly 0
    w3p = jnp.pad(w3, ((0, pad), (0, 0)))   # (128, HIDDEN); extra rows exactly 0
    return (w1.astype(jnp.bfloat16), b1,
            w2p.astype(jnp.bfloat16), b2p,
            w3p.astype(jnp.bfloat16), b3,
            w4.astype(jnp.bfloat16), b4)


def _reference_forward(x_nchw, packed_params):
    """Pure-JAX reference mirroring the kernel's bf16-input / f32-accum math."""
    (w1, b1, w2, b2, w3, b3, w4, b4) = packed_params
    f32 = lambda a: a.astype(jnp.float32)
    bf = lambda a: a.astype(jnp.bfloat16).astype(jnp.float32)
    x = bf(x_nchw.reshape(x_nchw.shape[0], IN_FEATURES))
    h1 = jnp.maximum(x @ f32(w1) + b1, 0.0)
    z = bf(h1) @ f32(w2) + b2
    h2 = jnp.maximum(bf(z) @ f32(w3) + b3, 0.0)
    return bf(h2) @ f32(w4) + b4


if __name__ == "__main__":
    key = jax.random.PRNGKey(0)
    k_param, k_x = jax.random.split(key)

    params = pack_params(init_params(k_param))

    # Case 1: module-native f32 images, tiny batch (single tile path).
    x = jax.random.uniform(k_x, (2, 1, IMAGE_SIZE, IMAGE_SIZE), jnp.float32)
    recon = jax.block_until_ready(network_forward(x, params))
    ref = _reference_forward(x, params)
    assert recon.shape == (2, IN_FEATURES) and recon.dtype == jnp.bfloat16
    assert jnp.allclose(recon.astype(jnp.float32), ref, atol=3e-2, rtol=3e-2)

    # Case 2: bf16 producer (halves the input HBM stream) + multi-step grid path.
    xb = jax.random.uniform(jax.random.PRNGKey(1),
                            (18, 1, IMAGE_SIZE, IMAGE_SIZE), jnp.bfloat16)
    recon_b = jax.block_until_ready(network_forward(xb, params))
    ref_b = _reference_forward(xb, params)
    assert recon_b.shape == (18, IN_FEATURES) and recon_b.dtype == jnp.bfloat16
    assert jnp.allclose(recon_b.astype(jnp.float32), ref_b, atol=3e-2, rtol=3e-2)

    print("KERNEL_OK")
</pallas_src>

<mosaic_0001>
module attributes {stable_mosaic.version = 11 : i64} {
  func.func @_ae_kernel(%arg0: i32, %arg1: memref<8x4096xf32, #tpu.memory_space<vmem>>, %arg2: memref<4096x256xbf16, #tpu.memory_space<vmem>>, %arg3: memref<1x256xf32, #tpu.memory_space<vmem>>, %arg4: memref<256x128xbf16, #tpu.memory_space<vmem>>, %arg5: memref<1x128xf32, #tpu.memory_space<vmem>>, %arg6: memref<128x256xbf16, #tpu.memory_space<vmem>>, %arg7: memref<1x256xf32, #tpu.memory_space<vmem>>, %arg8: memref<256x4096xbf16, #tpu.memory_space<vmem>>, %arg9: memref<1x4096xf32, #tpu.memory_space<vmem>>, %arg10: memref<8x4096xbf16, #tpu.memory_space<vmem>>) attributes {dimension_semantics = [#tpu.dimension_semantics<parallel>], iteration_bounds = array<i64: 1>, scalar_prefetch = 0 : i64, scratch_operands = 0 : i64, tpu.core_type = #tpu.core_type<tc>, window_params = [{transform_indices = @transform_0, window_bounds = array<i64: 8, 4096>}, {pipeline_mode = #tpu.pipeline_mode<synchronous>, transform_indices = @transform_1, window_bounds = array<i64: 4096, 256>}, {pipeline_mode = #tpu.pipeline_mode<synchronous>, transform_indices = @transform_2, window_bounds = array<i64: 1, 256>}, {pipeline_mode = #tpu.pipeline_mode<synchronous>, transform_indices = @transform_3, window_bounds = array<i64: 256, 128>}, {pipeline_mode = #tpu.pipeline_mode<synchronous>, transform_indices = @transform_4, window_bounds = array<i64: 1, 128>}, {pipeline_mode = #tpu.pipeline_mode<synchronous>, transform_indices = @transform_5, window_bounds = array<i64: 128, 256>}, {pipeline_mode = #tpu.pipeline_mode<synchronous>, transform_indices = @transform_6, window_bounds = array<i64: 1, 256>}, {pipeline_mode = #tpu.pipeline_mode<synchronous>, transform_indices = @transform_7, window_bounds = array<i64: 256, 4096>}, {pipeline_mode = #tpu.pipeline_mode<synchronous>, transform_indices = @transform_8, window_bounds = array<i64: 1, 4096>}, {transform_indices = @transform_9, window_bounds = array<i64: 8, 4096>}]} {
    %c0 = arith.constant 0 : index
    %c0_0 = arith.constant 0 : index
    %0 = vector.load %arg1[%c0, %c0_0] : memref<8x4096xf32, #tpu.memory_space<vmem>>, vector<8x4096xf32>
    %1 = arith.truncf %0 : vector<8x4096xf32> to vector<8x4096xbf16>
    %c0_1 = arith.constant 0 : index
    %c0_2 = arith.constant 0 : index
    %2 = vector.load %arg2[%c0_1, %c0_2] : memref<4096x256xbf16, #tpu.memory_space<vmem>>, vector<4096x256xbf16>
    %cst = arith.constant dense<0.000000e+00> : vector<8x256xf32>
    %3 = tpu.matmul %1, %2, %cst {dimension_numbers = #tpu.dot_dimension_numbers<[1], [0], [0], [1], [0, 0, 1, 1], [], []>} : vector<8x4096xbf16>, vector<4096x256xbf16>, vector<8x256xf32> -> vector<8x256xf32>
    %c0_3 = arith.constant 0 : index
    %c0_4 = arith.constant 0 : index
    %4 = vector.load %arg3[%c0_3, %c0_4] : memref<1x256xf32, #tpu.memory_space<vmem>>, vector<1x256xf32>
    %5 = vector.broadcast %4 : vector<1x256xf32> to vector<8x256xf32>
    %6 = arith.addf %3, %5 : vector<8x256xf32>
    %cst_5 = arith.constant 0.000000e+00 : f32
    %7 = vector.broadcast %cst_5 : f32 to vector<8x256xf32>
    %8 = arith.maximumf %6, %7 : vector<8x256xf32>
    %9 = arith.truncf %8 : vector<8x256xf32> to vector<8x256xbf16>
    %c0_6 = arith.constant 0 : index
    %c0_7 = arith.constant 0 : index
    %10 = vector.load %arg4[%c0_6, %c0_7] : memref<256x128xbf16, #tpu.memory_space<vmem>>, vector<256x128xbf16>
    %cst_8 = arith.constant dense<0.000000e+00> : vector<8x128xf32>
    %11 = tpu.matmul %9, %10, %cst_8 {dimension_numbers = #tpu.dot_dimension_numbers<[1], [0], [0], [1], [0, 0, 1, 1], [], []>} : vector<8x256xbf16>, vector<256x128xbf16>, vector<8x128xf32> -> vector<8x128xf32>
    %c0_9 = arith.constant 0 : index
    %c0_10 = arith.constant 0 : index
    %12 = vector.load %arg5[%c0_9, %c0_10] : memref<1x128xf32, #tpu.memory_space<vmem>>, vector<1x128xf32>
    %13 = vector.broadcast %12 : vector<1x128xf32> to vector<8x128xf32>
    %14 = arith.addf %11, %13 : vector<8x128xf32>
    %15 = arith.truncf %14 : vector<8x128xf32> to vector<8x128xbf16>
    %c0_11 = arith.constant 0 : index
    %c0_12 = arith.constant 0 : index
    %16 = vector.load %arg6[%c0_11, %c0_12] : memref<128x256xbf16, #tpu.memory_space<vmem>>, vector<128x256xbf16>
    %cst_13 = arith.constant dense<0.000000e+00> : vector<8x256xf32>
    %17 = tpu.matmul %15, %16, %cst_13 {dimension_numbers = #tpu.dot_dimension_numbers<[1], [0], [0], [1], [0, 0, 1, 1], [], []>} : vector<8x128xbf16>, vector<128x256xbf16>, vector<8x256xf32> -> vector<8x256xf32>
    %c0_14 = arith.constant 0 : index
    %c0_15 = arith.constant 0 : index
    %18 = vector.load %arg7[%c0_14, %c0_15] : memref<1x256xf32, #tpu.memory_space<vmem>>, vector<1x256xf32>
    %19 = vector.broadcast %18 : vector<1x256xf32> to vector<8x256xf32>
    %20 = arith.addf %17, %19 : vector<8x256xf32>
    %cst_16 = arith.constant 0.000000e+00 : f32
    %21 = vector.broadcast %cst_16 : f32 to vector<8x256xf32>
    %22 = arith.maximumf %20, %21 : vector<8x256xf32>
    %23 = arith.truncf %22 : vector<8x256xf32> to vector<8x256xbf16>
    %c0_17 = arith.constant 0 : index
    %c0_18 = arith.constant 0 : index
    %24 = vector.load %arg8[%c0_17, %c0_18] : memref<256x4096xbf16, #tpu.memory_space<vmem>>, vector<256x4096xbf16>
    %cst_19 = arith.constant dense<0.000000e+00> : vector<8x4096xf32>
    %25 = tpu.matmul %23, %24, %cst_19 {dimension_numbers = #tpu.dot_dimension_numbers<[1], [0], [0], [1], [0, 0, 1, 1], [], []>} : vector<8x256xbf16>, vector<256x4096xbf16>, vector<8x4096xf32> -> vector<8x4096xf32>
    %c0_20 = arith.constant 0 : index
    %c0_21 = arith.constant 0 : index
    %26 = vector.load %arg9[%c0_20, %c0_21] : memref<1x4096xf32, #tpu.memory_space<vmem>>, vector<1x4096xf32>
    %27 = vector.broadcast %26 : vector<1x4096xf32> to vector<8x4096xf32>
    %28 = arith.addf %25, %27 : vector<8x4096xf32>
    %29 = arith.truncf %28 : vector<8x4096xf32> to vector<8x4096xbf16>
    %c0_22 = arith.constant 0 : index
    %c0_23 = arith.constant 0 : index
    %30 = vector.load %arg10[%c0_22, %c0_23] : memref<8x4096xbf16, #tpu.memory_space<vmem>>, vector<8x4096xbf16>
    tpu.vector_store %arg10[%c0_22, %c0_23], %29 {strides = array<i32>} : memref<8x4096xbf16, #tpu.memory_space<vmem>>, vector<8x4096xbf16>,
    return
  }
  func.func @transform_0(%arg0: i32) -> (i32, i32) {
    %c0_i32 = arith.constant 0 : i32
    %c0_i32_0 = arith.constant 0 : i32
    return %arg0, %c0_i32 : i32, i32
  }
  func.func @transform_1(%arg0: i32) -> (i32, i32) {
    %c0_i32 = arith.constant 0 : i32
    %c0_i32_0 = arith.constant 0 : i32
    %c0_i32_1 = arith.constant 0 : i32
    return %c0_i32, %c0_i32_0 : i32, i32
  }
  func.func @transform_2(%arg0: i32) -> (i32, i32) {
    %c0_i32 = arith.constant 0 : i32
    %c0_i32_0 = arith.constant 0 : i32
    %c0_i32_1 = arith.constant 0 : i32
    return %c0_i32, %c0_i32_0 : i32, i32
  }
  func.func @transform_3(%arg0: i32) -> (i32, i32) {
    %c0_i32 = arith.constant 0 : i32
    %c0_i32_0 = arith.constant 0 : i32
    %c0_i32_1 = arith.constant 0 : i32
    return %c0_i32, %c0_i32_0 : i32, i32
  }
  func.func @transform_4(%arg0: i32) -> (i32, i32) {
    %c0_i32 = arith.constant 0 : i32
    %c0_i32_0 = arith.constant 0 : i32
    %c0_i32_1 = arith.constant 0 : i32
    return %c0_i32, %c0_i32_0 : i32, i32
  }
  func.func @transform_5(%arg0: i32) -> (i32, i32) {
    %c0_i32 = arith.constant 0 : i32
    %c0_i32_0 = arith.constant 0 : i32
    %c0_i32_1 = arith.constant 0 : i32
    return %c0_i32, %c0_i32_0 : i32, i32
  }
  func.func @transform_6(%arg0: i32) -> (i32, i32) {
    %c0_i32 = arith.constant 0 : i32
    %c0_i32_0 = arith.constant 0 : i32
    %c0_i32_1 = arith.constant 0 : i32
    return %c0_i32, %c0_i32_0 : i32, i32
  }
  func.func @transform_7(%arg0: i32) -> (i32, i32) {
    %c0_i32 = arith.constant 0 : i32
    %c0_i32_0 = arith.constant 0 : i32
    %c0_i32_1 = arith.constant 0 : i32
    return %c0_i32, %c0_i32_0 : i32, i32
  }
  func.func @transform_8(%arg0: i32) -> (i32, i32) {
    %c0_i32 = arith.constant 0 : i32
    %c0_i32_0 = arith.constant 0 : i32
    %c0_i32_1 = arith.constant 0 : i32
    return %c0_i32, %c0_i32_0 : i32, i32
  }
  func.func @transform_9(%arg0: i32) -> (i32, i32) {
    %c0_i32 = arith.constant 0 : i32
    %c0_i32_0 = arith.constant 0 : i32
    return %arg0, %c0_i32 : i32, i32
  }
}

</mosaic_0001>

<bundles_post_ra>
// kernel: network_forward.1
= control target key start
LH: loop header
LB: loop body
LE: loop exit
PB: predicated region body
PF: predicated region fallthrough
CT: control target
= control target key end

     0   :  { %14 = vsyncpa [#allocation3], 0  ;;  %s10815_s0 = inlined_call_operand.vmem [shape: f32[8,4096], index: 0, kind: input, shape index: {}]   ;;  %s10816_s1 = inlined_call_operand.hbm [shape: bf16[4096,256], index: 1, kind: input, shape index: {}]   ;;  %s10817_s2 = inlined_call_operand.hbm [shape: f32[1,256], index: 2, kind: input, shape index: {}]   ;;  %s10818_s3 = inlined_call_operand.hbm [shape: bf16[256,128], index: 3, kind: input, shape index: {}]   ;;  %s10819_s4 = inlined_call_operand.hbm [shape: f32[1,128], index: 4, kind: input, shape index: {}]   ;;  %s10820_s5 = inlined_call_operand.hbm [shape: bf16[128,256], index: 5, kind: input, shape index: {}]   ;;  %s10821_s6 = inlined_call_operand.hbm [shape: f32[1,256], index: 6, kind: input, shape index: {}]   ;;  %s10822_s7 = inlined_call_operand.hbm [shape: bf16[256,4096], index: 7, kind: input, shape index: {}]   ;;  %s10823_s8 = inlined_call_operand.hbm [shape: f32[1,4096], index: 8, kind: input, shape index: {}]   ;;  %s10824_s9 = inlined_call_operand.vmem [shape: bf16[8,4096], index: 9, kind: output, shape index: {}]  }
   0x1   :  { %15 = vsyncpa [#allocation5], 0 }
   0x2   :  { %16 = vsyncpa [#allocation8], 0 }
   0x3   :  { %17 = vsyncpa [#allocation11], 0 }
   0x4   :  { %18 = vsyncpa [#allocation14], 0  ;;  %s10423_s30 = smov [#allocation4]   ;;  %s10424_s11 = smov [#allocation7]  }
   0x5   :  { %s39_s10 = sshll.u32 %s10423_s30, 4  ;;  %s61_s12 = sshll.u32 %s10424_s11, 4  ;;  %s40_s10 = int_to_ptr.vmem [resolvable:$true] %s39_s10  ;;  %s62_s12 = int_to_ptr.vmem [resolvable:$true] %s61_s12 }
   0x6   :  { %s10261_s13 = scalar_lea.vmem %s40_s10, 32  ;;  %p10266_p1 = scmp.lt.s32.totalorder %s40_s10, %s40_s10 }
   0x7   :  { %p10262_p0 = scmp.ne.s32.totalorder %s40_s10, %s10261_s13  ;;  %p10267_p2 = scmp.lt.s32.totalorder %s10261_s13, %s10261_s13 }
   0x9   :  { %p10268_p3 = por %p10267_p2, %p10266_p1 }
   0xb   :  { %p10269_p4 = pnand %p10268_p3, %p10262_p0 }
   0xd   :  { %10272 = shalt.err (!%p10269_p4)
}
   0xe   :  { %42 = dma.hbm_to_vmem [thread:$0]  %s10817_s2, 32, %s40_s10, [#allocation5]  }
   0xf   :  { %s10281_s16 = scalar_lea.vmem %s62_s12, 16  ;;  %s10285_s17 = scalar_lea.vmem %s62_s12, 32 }
  0x10   :  { %p10282_p5 = scmp.ne.s32.totalorder %s62_s12, %s10281_s16  ;;  %p10286_p6 = scmp.lt.s32.totalorder %s62_s12, %s62_s12 }
  0x11   :  { %p10287_p7 = scmp.lt.s32.totalorder %s10285_s17, %s10281_s16 }
  0x13   :  { %p10288_p8 = por %p10287_p7, %p10286_p6 }
  0x15   :  { %p10289_p9 = pnand %p10288_p8, %p10282_p5 }
  0x17   :  { %10292 = shalt.err (!%p10289_p9)
}
  0x18   :  { %64 = dma.hbm_to_vmem [thread:$0]  %s10819_s4, 16, %s62_s12, [#allocation8]  }
  0x19   :  { %s10425_s20 = smov [#allocation10]   ;;  %s10426_s22 = smov [#allocation2]  }
  0x1a   :  { %s83_s21 = sshll.u32 %s10425_s20, 4  ;;  %s26_s23 = sshll.u32 %s10426_s22, 4  ;;  %s84_s21 = int_to_ptr.vmem [resolvable:$true] %s83_s21  ;;  %s27_s23 = int_to_ptr.vmem [resolvable:$true] %s26_s23 }
  0x1b   :  { %s10301_s24 = scalar_lea.vmem %s84_s21, 32  ;;  %p10306_p11 = scmp.lt.s32.totalorder %s84_s21, %s84_s21 }
  0x1c   :  { %p10302_p10 = scmp.ne.s32.totalorder %s84_s21, %s10301_s24  ;;  %p10307_p12 = scmp.lt.s32.totalorder %s10301_s24, %s10301_s24 }
  0x1e   :  { %p10308_p13 = por %p10307_p12, %p10306_p11 }
  0x20   :  { %p10309_p0 = pnand %p10308_p13, %p10302_p10 }
  0x22   :  { %10312 = shalt.err (!%p10309_p0)
}
  0x23   :  { %86 = dma.hbm_to_vmem [thread:$0]  %s10821_s6, 32, %s84_s21, [#allocation11]  }
  0x24   :  { %s10321_s26 = scalar_lea.vmem %s27_s23, 65536  ;;  %p10326_p2 = scmp.lt.s32.totalorder %s27_s23, %s27_s23 }
  0x25   :  { %p10322_p1 = scmp.ne.s32.totalorder %s27_s23, %s10321_s26  ;;  %p10327_p3 = scmp.lt.s32.totalorder %s10321_s26, %s10321_s26 }
  0x27   :  { %p10328_p4 = por %p10327_p3, %p10326_p2 }
  0x29   :  { %p10329_p5 = pnand %p10328_p4, %p10322_p1 }
  0x2b   :  { %10332 = shalt.err (!%p10329_p5)
}
  0x2c   :  { %s10427_s4 = smov 128   ;;  %s10428_s27 = smov 8  }
  0x2d   :  { %32 = dma.hbm_to_vmem [thread:$0]  %s10816_s1, 65536, %s27_s23, [#allocation3], %s10427_s4, %s10427_s4, %s10428_s27  }
  0x2e   :  { %s10429_s30 = smov [#allocation6]  }
  0x2f   :  { %s48_s10 = sshll.u32 %s10429_s30, 4  ;;  %s49_s10 = int_to_ptr.vmem [resolvable:$true] %s48_s10 }
  0x30   :  { %s10341_s6 = scalar_lea.vmem %s49_s10, 2048  ;;  %p10346_p7 = scmp.lt.s32.totalorder %s49_s10, %s49_s10 }
  0x31   :  { %p10342_p6 = scmp.ne.s32.totalorder %s49_s10, %s10341_s6  ;;  %p10347_p8 = scmp.lt.s32.totalorder %s10341_s6, %s10341_s6 }
  0x33   :  { %p10348_p9 = por %p10347_p8, %p10346_p7 }
  0x35   :  { %p10349_p10 = pnand %p10348_p9, %p10342_p6 }
  0x37   :  { %10352 = shalt.err (!%p10349_p10)
}
  0x38   :  { %s10430_s11 = smov 64   ;;  %s10431_s12 = smov 4  }
  0x39   :  { %54 = dma.hbm_to_vmem [thread:$0]  %s10818_s3, 2048, %s49_s10, [#allocation5], %s10430_s11, %s10430_s11, %s10431_s12  }
  0x3a   :  { %s10432_s15 = smov [#allocation9]   ;;  %s10433_s1 = smov [#allocation12]  }
  0x3b   :  { %s70_s16 = sshll.u32 %s10432_s15, 4  ;;  %s92_s17 = sshll.u32 %s10433_s1, 4  ;;  %s71_s16 = int_to_ptr.vmem [resolvable:$true] %s70_s16  ;;  %s93_s17 = int_to_ptr.vmem [resolvable:$true] %s92_s17 }
  0x3c   :  { %s10361_s18 = scalar_lea.vmem %s71_s16, 2048  ;;  %p10366_p12 = scmp.lt.s32.totalorder %s71_s16, %s71_s16 }
  0x3d   :  { %p10362_p11 = scmp.ne.s32.totalorder %s71_s16, %s10361_s18  ;;  %p10367_p13 = scmp.lt.s32.totalorder %s10361_s18, %s10361_s18 }
  0x3f   :  { %p10368_p0 = por %p10367_p13, %p10366_p12 }
  0x41   :  { %p10369_p1 = pnand %p10368_p0, %p10362_p11 }
  0x43   :  { %10372 = shalt.err (!%p10369_p1)
}
  0x44   :  { %76 = dma.hbm_to_vmem [thread:$0]  %s10820_s5, 2048, %s71_s16, [#allocation8], %s10427_s4, %s10427_s4, %s10428_s27  }
  0x45   :  { %s10381_s3 = scalar_lea.vmem %s93_s17, 65536  ;;  %p10386_p3 = scmp.lt.s32.totalorder %s93_s17, %s93_s17 }
  0x46   :  { %p10382_p2 = scmp.ne.s32.totalorder %s93_s17, %s10381_s3  ;;  %p10387_p4 = scmp.lt.s32.totalorder %s10381_s3, %s10381_s3 }
  0x48   :  { %p10388_p5 = por %p10387_p4, %p10386_p3 }
  0x4a   :  { %p10389_p6 = pnand %p10388_p5, %p10382_p2 }
  0x4c   :  { %10392 = shalt.err (!%p10389_p6)
}
  0x4d   :  { %s10434_s21 = smov 2048   ;;  %s10435_s24 = smov [#allocation13]  }
  0x4e   :  { %98 = dma.hbm_to_vmem [thread:$0]  %s10822_s7, 65536, %s93_s17, [#allocation11], %s10434_s21, %s10434_s21, %s10427_s4  }
  0x4f   :  { %s105_s2 = sshll.u32 %s10435_s24, 4  ;;  %s106_s2 = int_to_ptr.vmem [resolvable:$true] %s105_s2 }
  0x50   :  { %s10401_s25 = scalar_lea.vmem %s106_s2, 512  ;;  %p10406_p8 = scmp.lt.s32.totalorder %s106_s2, %s106_s2 }
  0x51   :  { %p10402_p7 = scmp.ne.s32.totalorder %s106_s2, %s10401_s25  ;;  %p10407_p9 = scmp.lt.s32.totalorder %s10401_s25, %s10401_s25 }
  0x53   :  { %p10408_p10 = por %p10407_p9, %p10406_p8 }
  0x55   :  { %p10409_p11 = pnand %p10408_p10, %p10402_p7 }
  0x57   :  { %10412 = shalt.err (!%p10409_p11)
}
  0x58   :  { %108 = dma.hbm_to_vmem [thread:$0]  %s10823_s8, 512, %s106_s2, [#allocation14]  }
  0x59   :  { %10413 = dma.done.wait [#allocation3], 65536  }
  0x5a   :  { %10414 = vsyncadd [#allocation3], 4294901760 }
  0x5b   :  { %10415 = dma.done.wait [#allocation5], 2080  }
  0x5c   :  { %10416 = vsyncadd [#allocation5], 4294965216 }
  0x5d   :  { %10417 = dma.done.wait [#allocation8], 2064  }
  0x5e   :  { %10418 = vsyncadd [#allocation8], 4294965232 }
  0x5f   :  { %10419 = dma.done.wait [#allocation11], 65568  }
  0x60   :  { %10420 = vsyncadd [#allocation11], 4294901728 }
  0x61   :  { %10421 = dma.done.wait [#allocation14], 512  }
  0x62   :  { %10422 = vsyncadd [#allocation14], 4294966784  ;;  %v9445_v0 = vld [vmem:[#allocation2 + $0x74] ss:$8 sps:$4 sm:$0xff]   ;;  %v9449_v2 = vld [vmem:[#allocation2 + $0x70] ss:$8 sps:$4 sm:$0xff]  }
  0x63   :  { %v9447_v1 = vld [vmem:[#allocation2 + $0x174] ss:$8 sps:$4 sm:$0xff]   ;;  %3282 = vmatprep.subr.bf16.mxu0 %v9445_v0  ;;  %v9450_v3 = vld [vmem:[#allocation2 + $0x170] ss:$8 sps:$4 sm:$0xff]   ;;  %v9451_v4 = vld [vmem:[#allocation2 + $0x64] ss:$8 sps:$4 sm:$0xff]  }
  0x64   :  { %3323 = vmatprep.subr.bf16.mxu1 %v9447_v1  ;;  %3283 = vmatpush1.bf16.msra.mxu0 %v9449_v2  ;;  %v9453_v5 = vld [vmem:[#allocation2 + $0x164] ss:$8 sps:$4 sm:$0xff]   ;;  %v9455_v6 = vld [vmem:[#allocation2 + $0x60] ss:$8 sps:$4 sm:$0xff]   ;;  %v9457_v8 = vld [vmem:[#allocation2 + $0x54] ss:$8 sps:$4 sm:$0xff]  }
  0x65   :  { %3324 = vmatpush1.bf16.msra.mxu1 %v9450_v3  ;;  %3284 = vmatprep.subr.bf16.mxu0 %v9451_v4  ;;  %v9456_v7 = vld [vmem:[#allocation2 + $0x160] ss:$8 sps:$4 sm:$0xff]   ;;  %v9459_v9 = vld [vmem:[#allocation2 + $0x154] ss:$8 sps:$4 sm:$0xff]   ;;  %v9461_v10 = vld [vmem:[#allocation2 + $0x50] ss:$8 sps:$4 sm:$0xff]  }
  0x66   :  { %3325 = vmatprep.subr.bf16.mxu1 %v9453_v5  ;;  %v9462_v11 = vld [vmem:[#allocation2 + $0x150] ss:$8 sps:$4 sm:$0xff]   ;;  %v9463_v12 = vld [vmem:[#allocation2 + $0x44] ss:$8 sps:$4 sm:$0xff]   ;;  %v9467_v14 = vld [vmem:[#allocation2 + $0x40] ss:$8 sps:$4 sm:$0xff]  }
  0x67   :  { %v9465_v13 = vld [vmem:[#allocation2 + $0x144] ss:$8 sps:$4 sm:$0xff]   ;;  %v9468_v15 = vld [vmem:[#allocation2 + $0x140] ss:$8 sps:$4 sm:$0xff]   ;;  %v9469_v16 = vld [vmem:[#allocation2 + $0x34] ss:$8 sps:$4 sm:$0xff]  }
  0x68   :  { %3285 = vmatpush1.bf16.msra.mxu0 %v9455_v6  ;;  %v9471_v17 = vld [vmem:[#allocation2 + $0x134] ss:$8 sps:$4 sm:$0xff]   ;;  %v9473_v18 = vld [vmem:[#allocation2 + $0x30] ss:$8 sps:$4 sm:$0xff]   ;;  %v9475_v20 = vld [vmem:[#allocation2 + $0x24] ss:$8 sps:$4 sm:$0xff]  }
  0x69   :  { %3326 = vmatpush1.bf16.msra.mxu1 %v9456_v7  ;;  %3286 = vmatprep.subr.bf16.mxu0 %v9457_v8  ;;  %v9474_v19 = vld [vmem:[#allocation2 + $0x130] ss:$8 sps:$4 sm:$0xff]   ;;  %v9477_v21 = vld [vmem:[#allocation2 + $0x124] ss:$8 sps:$4 sm:$0xff]   ;;  %v9479_v22 = vld [vmem:[#allocation2 + $0x20] ss:$8 sps:$4 sm:$0xff]  }
  0x6a   :  { %3327 = vmatprep.subr.bf16.mxu1 %v9459_v9  ;;  %v9480_v23 = vld [vmem:[#allocation2 + $0x120] ss:$8 sps:$4 sm:$0xff]   ;;  %v9481_v24 = vld [vmem:[#allocation2 + $0x14] ss:$8 sps:$4 sm:$0xff]   ;;  %v9485_v26 = vld [vmem:[#allocation2 + $0x10] ss:$8 sps:$4 sm:$0xff]  }
  0x6b   :  { %v9483_v25 = vld [vmem:[#allocation2 + $0x114] ss:$8 sps:$4 sm:$0xff]   ;;  %v9486_v27 = vld [vmem:[#allocation2 + $0x110] ss:$8 sps:$4 sm:$0xff]   ;;  %v9487_v28 = vld [vmem:[#allocation2 + $0x4] ss:$8 sps:$4 sm:$0xff]  }
  0x6c   :  { %3287 = vmatpush1.bf16.msra.mxu0 %v9461_v10  ;;  %v9489_v29 = vld [vmem:[#allocation2 + $0x104] ss:$8 sps:$4 sm:$0xff]   ;;  %v9491_v30 = vld [vmem:[#allocation2] ss:$8 sps:$4 sm:$0xff]   ;;  %v9493_v32 = vld [vmem:[#allocation2 + $0xf4] ss:$8 sps:$4 sm:$0xff]  }
  0x6d   :  { %3328 = vmatpush1.bf16.msra.mxu1 %v9462_v11  ;;  %3288 = vmatprep.subr.bf16.mxu0 %v9463_v12  ;;  %v9492_v31 = vld [vmem:[#allocation2 + $0x100] ss:$8 sps:$4 sm:$0xff]   ;;  %v9495_v33 = vld [vmem:[#allocation2 + $0x1f4] ss:$8 sps:$4 sm:$0xff]   ;;  %v9497_v34 = vld [vmem:[#allocation2 + $0xf0] ss:$8 sps:$4 sm:$0xff]  }
  0x6e   :  { %3329 = vmatprep.subr.bf16.mxu1 %v9465_v13  ;;  %v9498_v35 = vld [vmem:[#allocation2 + $0x1f0] ss:$8 sps:$4 sm:$0xff]   ;;  %v9499_v36 = vld [vmem:[#allocation2 + $0xe4] ss:$8 sps:$4 sm:$0xff]   ;;  %v9503_v38 = vld [vmem:[#allocation2 + $0xe0] ss:$8 sps:$4 sm:$0xff]  }
  0x6f   :  { %v9501_v37 = vld [vmem:[#allocation2 + $0x1e4] ss:$8 sps:$4 sm:$0xff]   ;;  %v9504_v39 = vld [vmem:[#allocation2 + $0x1e0] ss:$8 sps:$4 sm:$0xff]   ;;  %v9505_v40 = vld [vmem:[#allocation2 + $0xd4] ss:$8 sps:$4 sm:$0xff]  }
  0x70   :  { %3289 = vmatpush1.bf16.msra.mxu0 %v9467_v14  ;;  %v9507_v41 = vld [vmem:[#allocation2 + $0x1d4] ss:$8 sps:$4 sm:$0xff]   ;;  %v9509_v42 = vld [vmem:[#allocation2 + $0xd0] ss:$8 sps:$4 sm:$0xff]   ;;  %v9511_v44 = vld [vmem:[#allocation2 + $0xc4] ss:$8 sps:$4 sm:$0xff]  }
  0x71   :  { %3330 = vmatpush1.bf16.msra.mxu1 %v9468_v15  ;;  %3290 = vmatprep.subr.bf16.mxu0 %v9469_v16  ;;  %v9510_v43 = vld [vmem:[#allocation2 + $0x1d0] ss:$8 sps:$4 sm:$0xff]   ;;  %v9513_v45 = vld [vmem:[#allocation2 + $0x1c4] ss:$8 sps:$4 sm:$0xff]   ;;  %v9515_v47 = vld [vmem:[#allocation2 + $0xc0] ss:$8 sps:$4 sm:$0xff]  }
  0x72   :  { %3331 = vmatprep.subr.bf16.mxu1 %v9471_v17  ;;  %v135_v46 = vld [vmem:[%s10815_s0 + $0x8] sm:$0xff]  ;;  %v137_v50 = vld [vmem:[%s10815_s0 + $0x18] sm:$0xff]  ;;  %v134_v4 = vld [vmem:[%s10815_s0] sm:$0xff] }
  0x73   :  { %v9516_v48 = vld [vmem:[#allocation2 + $0x1c0] ss:$8 sps:$4 sm:$0xff]   ;;  %v167_v49 = vpack.c.bf16 %v135_v46, %v135_v46  ;;  %v9517_v51 = vld [vmem:[#allocation2 + $0xb4] ss:$8 sps:$4 sm:$0xff]   ;;  %v169_v52 = vpack.c.bf16 %v137_v50, %v137_v50  ;;  %v9521_v54 = vld [vmem:[#allocation2 + $0xb0] ss:$8 sps:$4 sm:$0xff]   ;;  %v166_v8 = vpack.c.bf16 %v134_v4, %v134_v4 }
  0x74   :  { %3291 = vmatpush1.bf16.msra.mxu0 %v9473_v18  ;;  %v9519_v53 = vld [vmem:[#allocation2 + $0x1b4] ss:$8 sps:$4 sm:$0xff]   ;;  %v9522_v55 = vld [vmem:[#allocation2 + $0x1b0] ss:$8 sps:$4 sm:$0xff]   ;;  %v9523_v56 = vld [vmem:[#allocation2 + $0xa4] ss:$8 sps:$4 sm:$0xff]  }
  0x75   :  { %3332 = vmatpush1.bf16.msra.mxu1 %v9474_v19  ;;  %3292 = vmatprep.subr.bf16.mxu0 %v9475_v20  ;;  %v9525_v57 = vld [vmem:[#allocation2 + $0x1a4] ss:$8 sps:$4 sm:$0xff]   ;;  %v9527_v58 = vld [vmem:[#allocation2 + $0xa0] ss:$8 sps:$4 sm:$0xff]   ;;  %v9529_v60 = vld [vmem:[#allocation2 + $0x94] ss:$8 sps:$4 sm:$0xff]  }
  0x76   :  { %3333 = vmatprep.subr.bf16.mxu1 %v9477_v21  ;;  %3314 = vmatprep.mubr.bf16.mxu0 %v167_v49  ;;  %v9528_v59 = vld [vmem:[#allocation2 + $0x1a0] ss:$8 sps:$4 sm:$0xff]   ;;  %v9531_v61 = vld [vmem:[#allocation2 + $0x194] ss:$8 sps:$4 sm:$0xff]   ;;  %v9533_v62 = vld [vmem:[#allocation2 + $0x90] ss:$8 sps:$4 sm:$0xff]  }
  0x77   :  { %3355 = vmatprep.mubr.bf16.mxu1 %v169_v52  ;;  %v9534_v63 = vld [vmem:[#allocation2 + $0x190] ss:$8 sps:$4 sm:$0xff]   ;;  %v9535_v0 = vld [vmem:[#allocation2 + $0x84] ss:$8 sps:$4 sm:$0xff]   ;;  %v9539_v2 = vld [vmem:[#allocation2 + $0x80] ss:$8 sps:$4 sm:$0xff]  }
  0x78   :  { %3293 = vmatpush1.bf16.msra.mxu0 %v9479_v22  ;;  %v9537_v1 = vld [vmem:[#allocation2 + $0x184] ss:$8 sps:$4 sm:$0xff]   ;;  %v9540_v3 = vld [vmem:[#allocation2 + $0x180] ss:$8 sps:$4 sm:$0xff]   ;;  %v136_v5 = vld [vmem:[%s10815_s0 + $0x10] sm:$0xff] }
  0x79   :  { %3334 = vmatpush1.bf16.msra.mxu1 %v9480_v23  ;;  %3294 = vmatprep.subr.bf16.mxu0 %v9481_v24  ;;  %v9543_v6 = vld [vmem:[#allocation2 + $0x274] ss:$8 sps:$4 sm:$0xff]   ;;  %v168_v9 = vpack.c.bf16 %v136_v5, %v136_v5  ;;  %v9541_v10 = vld [vmem:[#allocation2 + $0x270] ss:$8 sps:$4 sm:$0xff]   ;;  %v9549_v12 = vld [vmem:[#allocation2 + $0x264] ss:$8 sps:$4 sm:$0xff]  }
  0x7a   :  { %3335 = vmatprep.subr.bf16.mxu1 %v9483_v25  ;;  %v9546_v7 = vld [vmem:[#allocation2 + $0x374] ss:$8 sps:$4 sm:$0xff]   ;;  %v9544_v11 = vld [vmem:[#allocation2 + $0x370] ss:$8 sps:$4 sm:$0xff]   ;;  %v9552_v13 = vld [vmem:[#allocation2 + $0x364] ss:$8 sps:$4 sm:$0xff]  }
  0x7b   :  { %v9547_v14 = vld [vmem:[#allocation2 + $0x260] ss:$8 sps:$4 sm:$0xff]   ;;  %v9555_v16 = vld [vmem:[#allocation2 + $0x254] ss:$8 sps:$4 sm:$0xff]   ;;  %v9553_v18 = vld [vmem:[#allocation2 + $0x250] ss:$8 sps:$4 sm:$0xff]  }
  0x7c   :  { %3295 = vmatpush1.bf16.msra.mxu0 %v9485_v26  ;;  %v9550_v15 = vld [vmem:[#allocation2 + $0x360] ss:$8 sps:$4 sm:$0xff]   ;;  %v9558_v17 = vld [vmem:[#allocation2 + $0x354] ss:$8 sps:$4 sm:$0xff]   ;;  %v9556_v19 = vld [vmem:[#allocation2 + $0x350] ss:$8 sps:$4 sm:$0xff]  }
  0x7d   :  { %3336 = vmatpush1.bf16.msra.mxu1 %v9486_v27  ;;  %3296 = vmatprep.subr.bf16.mxu0 %v9487_v28  ;;  %v9561_v20 = vld [vmem:[#allocation2 + $0x244] ss:$8 sps:$4 sm:$0xff]   ;;  %v9559_v22 = vld [vmem:[#allocation2 + $0x240] ss:$8 sps:$4 sm:$0xff]   ;;  %v9567_v24 = vld [vmem:[#allocation2 + $0x234] ss:$8 sps:$4 sm:$0xff]  }
  0x7e   :  { %3337 = vmatprep.subr.bf16.mxu1 %v9489_v29  ;;  %v9564_v21 = vld [vmem:[#allocation2 + $0x344] ss:$8 sps:$4 sm:$0xff]   ;;  %v9562_v23 = vld [vmem:[#allocation2 + $0x340] ss:$8 sps:$4 sm:$0xff]   ;;  %v9570_v25 = vld [vmem:[#allocation2 + $0x334] ss:$8 sps:$4 sm:$0xff]  }
  0x7f   :  { %v9565_v26 = vld [vmem:[#allocation2 + $0x230] ss:$8 sps:$4 sm:$0xff]   ;;  %v9573_v28 = vld [vmem:[#allocation2 + $0x224] ss:$8 sps:$4 sm:$0xff]   ;;  %v9595_v50 = vld [vmem:[#allocation2 + $0x2e0] ss:$8 sps:$4 sm:$0xff]  }
  0x80   :  { %3297 = vmatpush1.bf16.msra.mxu0 %v9491_v30  ;;  %v9568_v27 = vld [vmem:[#allocation2 + $0x330] ss:$8 sps:$4 sm:$0xff]   ;;  %v9576_v29 = vld [vmem:[#allocation2 + $0x324] ss:$8 sps:$4 sm:$0xff]   ;;  %v9571_v30 = vld [vmem:[#allocation2 + $0x220] ss:$8 sps:$4 sm:$0xff]  }
  0x81   :  { %3338 = vmatpush1.bf16.msra.mxu1 %v9492_v31  ;;  %3298 = vmatprep.subr.bf16.mxu0 %v9493_v32  ;;  %v9574_v31 = vld [vmem:[#allocation2 + $0x320] ss:$8 sps:$4 sm:$0xff]   ;;  %v9579_v32 = vld [vmem:[#allocation2 + $0x214] ss:$8 sps:$4 sm:$0xff]   ;;  %v9589_v46 = vld [vmem:[#allocation2 + $0x2f0] ss:$8 sps:$4 sm:$0xff]  }
  0x82   :  { %3339 = vmatprep.subr.bf16.mxu1 %v9495_v33  ;;  %v9582_v33 = vld [vmem:[#allocation2 + $0x314] ss:$8 sps:$4 sm:$0xff]   ;;  %v9600_v49 = vld [vmem:[#allocation2 + $0x3e4] ss:$8 sps:$4 sm:$0xff]  }
  0x83   :  { %v9603_v52 = vld [vmem:[#allocation2 + $0x2d4] ss:$8 sps:$4 sm:$0xff]  }
  0x84   :  { %3299 = vmatpush2.bf16.msra.mxu0 %v9497_v34  ;;  %v139_v34 = vld [vmem:[%s10815_s0 + $0x28] sm:$0xff]  ;;  %v9627_v4 = vld [vmem:[#allocation2 + $0x294] ss:$8 sps:$4 sm:$0xff]  }
  0x85   :  { %3340 = vmatpush2.bf16.msra.mxu1 %v9498_v35  ;;  %3300 = vmatprep.subr.bf16.mxu0 %v9499_v36  ;;  %v9577_v35 = vld [vmem:[#allocation2 + $0x210] ss:$8 sps:$4 sm:$0xff]   ;;  %v9630_v5 = vld [vmem:[#allocation2 + $0x394] ss:$8 sps:$4 sm:$0xff]  }
  0x86   :  { %3341 = vmatprep.subr.bf16.mxu1 %v9501_v37  ;;  %v9580_v36 = vld [vmem:[#allocation2 + $0x310] ss:$8 sps:$4 sm:$0xff]   ;;  %v171_v37 = vpack.c.bf16 %v139_v34, %v139_v34  ;;  %v9655_v34 = vld [vmem:[#allocation2 + $0x440] ss:$8 sps:$4 sm:$0xff]  }
  0x88   :  { %3301 = vmatpush2.bf16.msra.mxu0 %v9503_v38  ;;  %v141_v38 = vld [vmem:[%s10815_s0 + $0x38] sm:$0xff] }
  0x89   :  { %3342 = vmatpush2.bf16.msra.mxu1 %v9504_v39  ;;  %3302 = vmatprep.subr.bf16.mxu0 %v9505_v40  ;;  %v9585_v39 = vld [vmem:[#allocation2 + $0x204] ss:$8 sps:$4 sm:$0xff]   ;;  %v173_v40 = vpack.c.bf16 %v141_v38, %v141_v38  ;;  %v9661_v38 = vld [vmem:[#allocation2 + $0x430] ss:$8 sps:$4 sm:$0xff]  }
  0x8a   :  { %3343 = vmatprep.subr.bf16.mxu1 %v9507_v41  ;;  %v9588_v41 = vld [vmem:[#allocation2 + $0x304] ss:$8 sps:$4 sm:$0xff]  }
  0x8c   :  { %3303 = vmatpush2.bf16.msra.mxu0 %v9509_v42  ;;  %v9583_v42 = vld [vmem:[#allocation2 + $0x200] ss:$8 sps:$4 sm:$0xff]  }
  0x8d   :  { %3344 = vmatpush2.bf16.msra.mxu1 %v9510_v43  ;;  %3304 = vmatprep.subr.bf16.mxu0 %v9511_v44  ;;  %v9586_v43 = vld [vmem:[#allocation2 + $0x300] ss:$8 sps:$4 sm:$0xff]   ;;  %v9591_v44 = vld [vmem:[#allocation2 + $0x2f4] ss:$8 sps:$4 sm:$0xff]  }
  0x8e   :  { %3345 = vmatprep.subr.bf16.mxu1 %v9513_v45  ;;  %v9594_v45 = vld [vmem:[#allocation2 + $0x3f4] ss:$8 sps:$4 sm:$0xff]  }
  0x90   :  { %3305 = vmatpush2.bf16.msra.mxu0 %v9515_v47  ;;  %v9592_v47 = vld [vmem:[#allocation2 + $0x3f0] ss:$8 sps:$4 sm:$0xff]  }
  0x91   :  { %3346 = vmatpush2.bf16.msra.mxu1 %v9516_v48  ;;  %3306 = vmatprep.subr.bf16.mxu0 %v9517_v51  ;;  %v9597_v48 = vld [vmem:[#allocation2 + $0x2e4] ss:$8 sps:$4 sm:$0xff]   ;;  %v9598_v51 = vld [vmem:[#allocation2 + $0x3e0] ss:$8 sps:$4 sm:$0xff]  }
  0x92   :  { %3347 = vmatprep.subr.bf16.mxu1 %v9519_v53  ;;  %v9606_v53 = vld [vmem:[#allocation2 + $0x3d4] ss:$8 sps:$4 sm:$0xff]  }
  0x94   :  { %3307 = vmatpush2.bf16.msra.mxu0 %v9521_v54  ;;  %v9601_v54 = vld [vmem:[#allocation2 + $0x2d0] ss:$8 sps:$4 sm:$0xff]  }
  0x95   :  { %3348 = vmatpush2.bf16.msra.mxu1 %v9522_v55  ;;  %3308 = vmatprep.subr.bf16.mxu0 %v9523_v56  ;;  %v9604_v55 = vld [vmem:[#allocation2 + $0x3d0] ss:$8 sps:$4 sm:$0xff]   ;;  %v9609_v56 = vld [vmem:[#allocation2 + $0x2c4] ss:$8 sps:$4 sm:$0xff]  }
  0x96   :  { %3349 = vmatprep.subr.bf16.mxu1 %v9525_v57  ;;  %v9612_v57 = vld [vmem:[#allocation2 + $0x3c4] ss:$8 sps:$4 sm:$0xff]  }
  0x98   :  { %3309 = vmatpush2.bf16.msra.mxu0 %v9527_v58  ;;  %v9607_v58 = vld [vmem:[#allocation2 + $0x2c0] ss:$8 sps:$4 sm:$0xff]  }
  0x99   :  { %3350 = vmatpush2.bf16.msra.mxu1 %v9528_v59  ;;  %3310 = vmatprep.subr.bf16.mxu0 %v9529_v60  ;;  %v9610_v59 = vld [vmem:[#allocation2 + $0x3c0] ss:$8 sps:$4 sm:$0xff]   ;;  %v9615_v60 = vld [vmem:[#allocation2 + $0x2b4] ss:$8 sps:$4 sm:$0xff]  }
  0x9a   :  { %3351 = vmatprep.subr.bf16.mxu1 %v9531_v61  ;;  %v9618_v61 = vld [vmem:[#allocation2 + $0x3b4] ss:$8 sps:$4 sm:$0xff]  }
  0x9c   :  { %3311 = vmatpush2.bf16.msra.mxu0 %v9533_v62  ;;  %v9613_v62 = vld [vmem:[#allocation2 + $0x2b0] ss:$8 sps:$4 sm:$0xff]  }
  0x9d   :  { %3352 = vmatpush2.bf16.msra.mxu1 %v9534_v63  ;;  %3312 = vmatprep.subr.bf16.mxu0 %v9535_v0  ;;  %v9616_v63 = vld [vmem:[#allocation2 + $0x3b0] ss:$8 sps:$4 sm:$0xff]   ;;  %v9621_v0 = vld [vmem:[#allocation2 + $0x2a4] ss:$8 sps:$4 sm:$0xff]  }
  0x9e   :  { %3353 = vmatprep.subr.bf16.mxu1 %v9537_v1  ;;  %v9624_v1 = vld [vmem:[#allocation2 + $0x3a4] ss:$8 sps:$4 sm:$0xff]  }
  0xa0   :  { %3313 = vmatpush2.bf16.msra.mxu0 %v9539_v2  ;;  %v9619_v2 = vld [vmem:[#allocation2 + $0x2a0] ss:$8 sps:$4 sm:$0xff]  }
  0xa1   :  { %3354 = vmatpush2.bf16.msra.mxu1 %v9540_v3  ;;  %3364 = vmatprep.subr.bf16.mxu0 %v9543_v6  ;;  %v9622_v3 = vld [vmem:[#allocation2 + $0x3a0] ss:$8 sps:$4 sm:$0xff]   ;;  %v9625_v6 = vld [vmem:[#allocation2 + $0x290] ss:$8 sps:$4 sm:$0xff]  }
  0xa2   :  { %3405 = vmatprep.subr.bf16.mxu1 %v9546_v7  ;;  %v9628_v7 = vld [vmem:[#allocation2 + $0x390] ss:$8 sps:$4 sm:$0xff]  }
  0xa3   :  { %3315 = vmatmul.mubr.bf16.vlgmr.msra.gmra.mxu0 %v166_v8  ;;  %v9633_v8 = vld [vmem:[#allocation2 + $0x284] ss:$8 sps:$4 sm:$0xff]  }
  0xa4   :  { %3356 = vmatmul.mubr.bf16.vlgmr.msra.gmra.mxu1 %v168_v9  ;;  %3365 = vmatpush1.bf16.msra.mxu0 %v9541_v10  ;;  %v9636_v9 = vld [vmem:[#allocation2 + $0x384] ss:$8 sps:$4 sm:$0xff]   ;;  %v9631_v10 = vld [vmem:[#allocation2 + $0x280] ss:$8 sps:$4 sm:$0xff]  }
  0xa5   :  { %3406 = vmatpush1.bf16.msra.mxu1 %v9544_v11  ;;  %3366 = vmatprep.subr.bf16.mxu0 %v9549_v12  ;;  %v9634_v11 = vld [vmem:[#allocation2 + $0x380] ss:$8 sps:$4 sm:$0xff]  }
  0xa6   :  { %3407 = vmatprep.subr.bf16.mxu1 %v9552_v13  ;;  %3396 = vmatprep.mubr.bf16.mxu0 %v171_v37  ;;  %v138_v12 = vld [vmem:[%s10815_s0 + $0x20] sm:$0xff]  ;;  %v140_v13 = vld [vmem:[%s10815_s0 + $0x30] sm:$0xff] }
  0xa7   :  { %3437 = vmatprep.mubr.bf16.mxu1 %v173_v40  ;;  %v9666_v37 = vld [vmem:[#allocation2 + $0x534] ss:$8 sps:$4 sm:$0xff]   ;;  %v9669_v40 = vld [vmem:[#allocation2 + $0x424] ss:$8 sps:$4 sm:$0xff]  }
  0xa8   :  { %3367 = vmatpush1.bf16.msra.mxu0 %v9547_v14  ;;  %v9639_v14 = vld [vmem:[#allocation2 + $0x474] ss:$8 sps:$4 sm:$0xff]  }
  0xa9   :  { %3408 = vmatpush1.bf16.msra.mxu1 %v9550_v15  ;;  %3368 = vmatprep.subr.bf16.mxu0 %v9555_v16  ;;  %v9642_v15 = vld [vmem:[#allocation2 + $0x574] ss:$8 sps:$4 sm:$0xff]   ;;  %v170_v16 = vpack.c.bf16 %v138_v12, %v138_v12 }
  0xaa   :  { %3409 = vmatprep.subr.bf16.mxu1 %v9558_v17  ;;  %v172_v17 = vpack.c.bf16 %v140_v13, %v140_v13  ;;  %v9723_v12 = vld [vmem:[#allocation2 + $0x494] ss:$8 sps:$4 sm:$0xff]  }
  0xab   :  { %v9726_v13 = vld [vmem:[#allocation2 + $0x594] ss:$8 sps:$4 sm:$0xff]  }
  0xac   :  { %3369 = vmatpush1.bf16.msra.mxu0 %v9553_v18  ;;  %v9637_v18 = vld [vmem:[#allocation2 + $0x470] ss:$8 sps:$4 sm:$0xff]  }
  0xad   :  { %3410 = vmatpush1.bf16.msra.mxu1 %v9556_v19  ;;  %3370 = vmatprep.subr.bf16.mxu0 %v9561_v20  ;;  %v9640_v19 = vld [vmem:[#allocation2 + $0x570] ss:$8 sps:$4 sm:$0xff]   ;;  %v9645_v20 = vld [vmem:[#allocation2 + $0x464] ss:$8 sps:$4 sm:$0xff]  }
  0xae   :  { %3411 = vmatprep.subr.bf16.mxu1 %v9564_v21  ;;  %v9648_v21 = vld [vmem:[#allocation2 + $0x564] ss:$8 sps:$4 sm:$0xff]  }
  0xb0   :  { %3371 = vmatpush1.bf16.msra.mxu0 %v9559_v22  ;;  %v143_v22 = vld [vmem:[%s10815_s0 + $0x48] sm:$0xff] }
  0xb1   :  { %3412 = vmatpush1.bf16.msra.mxu1 %v9562_v23  ;;  %3372 = vmatprep.subr.bf16.mxu0 %v9567_v24  ;;  %v9643_v23 = vld [vmem:[#allocation2 + $0x460] ss:$8 sps:$4 sm:$0xff]  }
  0xb2   :  { %3413 = vmatprep.subr.bf16.mxu1 %v9570_v25  ;;  %v9646_v24 = vld [vmem:[#allocation2 + $0x560] ss:$8 sps:$4 sm:$0xff]   ;;  %v175_v25 = vpack.c.bf16 %v143_v22, %v143_v22  ;;  %v9735_v22 = vld [vmem:[#allocation2 + $0x674] ss:$8 sps:$4 sm:$0xff]  }
  0xb4   :  { %3373 = vmatpush1.bf16.msra.mxu0 %v9565_v26  ;;  %v145_v26 = vld [vmem:[%s10815_s0 + $0x58] sm:$0xff] }
  0xb5   :  { %3414 = vmatpush1.bf16.msra.mxu1 %v9568_v27  ;;  %3374 = vmatprep.subr.bf16.mxu0 %v9573_v28  ;;  %v9651_v27 = vld [vmem:[#allocation2 + $0x454] ss:$8 sps:$4 sm:$0xff]   ;;  %v177_v28 = vpack.c.bf16 %v145_v26, %v145_v26 }
  0xb6   :  { %3415 = vmatprep.subr.bf16.mxu1 %v9576_v29  ;;  %v9654_v29 = vld [vmem:[#allocation2 + $0x554] ss:$8 sps:$4 sm:$0xff]  }
  0xb8   :  { %3375 = vmatpush1.bf16.msra.mxu0 %v9571_v30  ;;  %v9649_v30 = vld [vmem:[#allocation2 + $0x450] ss:$8 sps:$4 sm:$0xff]  }
  0xb9   :  { %3416 = vmatpush1.bf16.msra.mxu1 %v9574_v31  ;;  %3376 = vmatprep.subr.bf16.mxu0 %v9579_v32  ;;  %v9652_v31 = vld [vmem:[#allocation2 + $0x550] ss:$8 sps:$4 sm:$0xff]   ;;  %v9657_v32 = vld [vmem:[#allocation2 + $0x444] ss:$8 sps:$4 sm:$0xff]  }
  0xba   :  { %3417 = vmatprep.subr.bf16.mxu1 %v9582_v33  ;;  %v9660_v33 = vld [vmem:[#allocation2 + $0x544] ss:$8 sps:$4 sm:$0xff]  }
  0xbc   :  { %3377 = vmatpush1.bf16.msra.mxu0 %v9577_v35  ;;  %v9658_v35 = vld [vmem:[#allocation2 + $0x540] ss:$8 sps:$4 sm:$0xff]  }
  0xbd   :  { %3418 = vmatpush1.bf16.msra.mxu1 %v9580_v36  ;;  %3378 = vmatprep.subr.bf16.mxu0 %v9585_v39  ;;  %v9663_v36 = vld [vmem:[#allocation2 + $0x434] ss:$8 sps:$4 sm:$0xff]   ;;  %v9664_v39 = vld [vmem:[#allocation2 + $0x530] ss:$8 sps:$4 sm:$0xff]  }
  0xbe   :  { %3419 = vmatprep.subr.bf16.mxu1 %v9588_v41  ;;  %v9672_v41 = vld [vmem:[#allocation2 + $0x524] ss:$8 sps:$4 sm:$0xff]  }
  0xc0   :  { %3379 = vmatpush1.bf16.msra.mxu0 %v9583_v42  ;;  %v9667_v42 = vld [vmem:[#allocation2 + $0x420] ss:$8 sps:$4 sm:$0xff]  }
  0xc1   :  { %3420 = vmatpush1.bf16.msra.mxu1 %v9586_v43  ;;  %3380 = vmatprep.subr.bf16.mxu0 %v9591_v44  ;;  %v9670_v43 = vld [vmem:[#allocation2 + $0x520] ss:$8 sps:$4 sm:$0xff]   ;;  %v9675_v44 = vld [vmem:[#allocation2 + $0x414] ss:$8 sps:$4 sm:$0xff]  }
  0xc2   :  { %3421 = vmatprep.subr.bf16.mxu1 %v9594_v45  ;;  %v9678_v45 = vld [vmem:[#allocation2 + $0x514] ss:$8 sps:$4 sm:$0xff]  }
  0xc4   :  { %3381 = vmatpush2.bf16.msra.mxu0 %v9589_v46  ;;  %v9673_v46 = vld [vmem:[#allocation2 + $0x410] ss:$8 sps:$4 sm:$0xff]  }
  0xc5   :  { %3422 = vmatpush2.bf16.msra.mxu1 %v9592_v47  ;;  %3382 = vmatprep.subr.bf16.mxu0 %v9597_v48  ;;  %v9676_v47 = vld [vmem:[#allocation2 + $0x510] ss:$8 sps:$4 sm:$0xff]   ;;  %v9681_v48 = vld [vmem:[#allocation2 + $0x404] ss:$8 sps:$4 sm:$0xff]  }
  0xc6   :  { %3423 = vmatprep.subr.bf16.mxu1 %v9600_v49  ;;  %v9684_v49 = vld [vmem:[#allocation2 + $0x504] ss:$8 sps:$4 sm:$0xff]  }
  0xc8   :  { %3383 = vmatpush2.bf16.msra.mxu0 %v9595_v50  ;;  %v9679_v50 = vld [vmem:[#allocation2 + $0x400] ss:$8 sps:$4 sm:$0xff]  }
  0xc9   :  { %3424 = vmatpush2.bf16.msra.mxu1 %v9598_v51  ;;  %3384 = vmatprep.subr.bf16.mxu0 %v9603_v52  ;;  %v9682_v51 = vld [vmem:[#allocation2 + $0x500] ss:$8 sps:$4 sm:$0xff]   ;;  %v9687_v52 = vld [vmem:[#allocation2 + $0x4f4] ss:$8 sps:$4 sm:$0xff]  }
  0xca   :  { %3425 = vmatprep.subr.bf16.mxu1 %v9606_v53  ;;  %v9690_v53 = vld [vmem:[#allocation2 + $0x5f4] ss:$8 sps:$4 sm:$0xff]  }
  0xcc   :  { %3385 = vmatpush2.bf16.msra.mxu0 %v9601_v54  ;;  %v9685_v54 = vld [vmem:[#allocation2 + $0x4f0] ss:$8 sps:$4 sm:$0xff]  }
  0xcd   :  { %3426 = vmatpush2.bf16.msra.mxu1 %v9604_v55  ;;  %3386 = vmatprep.subr.bf16.mxu0 %v9609_v56  ;;  %v9688_v55 = vld [vmem:[#allocation2 + $0x5f0] ss:$8 sps:$4 sm:$0xff]   ;;  %v9693_v56 = vld [vmem:[#allocation2 + $0x4e4] ss:$8 sps:$4 sm:$0xff]  }
  0xce   :  { %3427 = vmatprep.subr.bf16.mxu1 %v9612_v57  ;;  %v9696_v57 = vld [vmem:[#allocation2 + $0x5e4] ss:$8 sps:$4 sm:$0xff]  }
  0xd0   :  { %3387 = vmatpush2.bf16.msra.mxu0 %v9607_v58  ;;  %v9691_v58 = vld [vmem:[#allocation2 + $0x4e0] ss:$8 sps:$4 sm:$0xff]  }
  0xd1   :  { %3428 = vmatpush2.bf16.msra.mxu1 %v9610_v59  ;;  %3388 = vmatprep.subr.bf16.mxu0 %v9615_v60  ;;  %v9694_v59 = vld [vmem:[#allocation2 + $0x5e0] ss:$8 sps:$4 sm:$0xff]   ;;  %v9699_v60 = vld [vmem:[#allocation2 + $0x4d4] ss:$8 sps:$4 sm:$0xff]  }
  0xd2   :  { %3429 = vmatprep.subr.bf16.mxu1 %v9618_v61  ;;  %v9702_v61 = vld [vmem:[#allocation2 + $0x5d4] ss:$8 sps:$4 sm:$0xff]  }
  0xd4   :  { %3389 = vmatpush2.bf16.msra.mxu0 %v9613_v62  ;;  %v9697_v62 = vld [vmem:[#allocation2 + $0x4d0] ss:$8 sps:$4 sm:$0xff]  }
  0xd5   :  { %3430 = vmatpush2.bf16.msra.mxu1 %v9616_v63  ;;  %3390 = vmatprep.subr.bf16.mxu0 %v9621_v0  ;;  %v9700_v63 = vld [vmem:[#allocation2 + $0x5d0] ss:$8 sps:$4 sm:$0xff]   ;;  %v9705_v0 = vld [vmem:[#allocation2 + $0x4c4] ss:$8 sps:$4 sm:$0xff]  }
  0xd6   :  { %3431 = vmatprep.subr.bf16.mxu1 %v9624_v1  ;;  %v9708_v1 = vld [vmem:[#allocation2 + $0x5c4] ss:$8 sps:$4 sm:$0xff]  }
  0xd8   :  { %3391 = vmatpush2.bf16.msra.mxu0 %v9619_v2  ;;  %v9703_v2 = vld [vmem:[#allocation2 + $0x4c0] ss:$8 sps:$4 sm:$0xff]  }
  0xd9   :  { %3432 = vmatpush2.bf16.msra.mxu1 %v9622_v3  ;;  %3392 = vmatprep.subr.bf16.mxu0 %v9627_v4  ;;  %v9706_v3 = vld [vmem:[#allocation2 + $0x5c0] ss:$8 sps:$4 sm:$0xff]   ;;  %v9711_v4 = vld [vmem:[#allocation2 + $0x4b4] ss:$8 sps:$4 sm:$0xff]  }
  0xda   :  { %3433 = vmatprep.subr.bf16.mxu1 %v9630_v5  ;;  %v9714_v5 = vld [vmem:[#allocation2 + $0x5b4] ss:$8 sps:$4 sm:$0xff]  }
  0xdc   :  { %3393 = vmatpush2.bf16.msra.mxu0 %v9625_v6  ;;  %v9709_v6 = vld [vmem:[#allocation2 + $0x4b0] ss:$8 sps:$4 sm:$0xff]  }
  0xdd   :  { %3434 = vmatpush2.bf16.msra.mxu1 %v9628_v7  ;;  %3394 = vmatprep.subr.bf16.mxu0 %v9633_v8  ;;  %v9712_v7 = vld [vmem:[#allocation2 + $0x5b0] ss:$8 sps:$4 sm:$0xff]   ;;  %v9717_v8 = vld [vmem:[#allocation2 + $0x4a4] ss:$8 sps:$4 sm:$0xff]  }
  0xde   :  { %3435 = vmatprep.subr.bf16.mxu1 %v9636_v9  ;;  %v9720_v9 = vld [vmem:[#allocation2 + $0x5a4] ss:$8 sps:$4 sm:$0xff]  }
  0xe0   :  { %3395 = vmatpush2.bf16.msra.mxu0 %v9631_v10  ;;  %v9715_v10 = vld [vmem:[#allocation2 + $0x4a0] ss:$8 sps:$4 sm:$0xff]  }
  0xe1   :  { %3436 = vmatpush2.bf16.msra.mxu1 %v9634_v11  ;;  %3446 = vmatprep.subr.bf16.mxu0 %v9639_v14  ;;  %v9718_v11 = vld [vmem:[#allocation2 + $0x5a0] ss:$8 sps:$4 sm:$0xff]   ;;  %v9721_v14 = vld [vmem:[#allocation2 + $0x490] ss:$8 sps:$4 sm:$0xff]  }
  0xe2   :  { %3487 = vmatprep.subr.bf16.mxu1 %v9642_v15  ;;  %v9724_v15 = vld [vmem:[#allocation2 + $0x590] ss:$8 sps:$4 sm:$0xff]  }
  0xe3   :  { %3397 = vmatmul.mubr.bf16.vlgmr.msra.gmra.mxu0 %v170_v16  ;;  %v9729_v16 = vld [vmem:[#allocation2 + $0x484] ss:$8 sps:$4 sm:$0xff]  }
  0xe4   :  { %3438 = vmatmul.mubr.bf16.vlgmr.msra.gmra.mxu1 %v172_v17  ;;  %3447 = vmatpush1.bf16.msra.mxu0 %v9637_v18  ;;  %v9732_v17 = vld [vmem:[#allocation2 + $0x584] ss:$8 sps:$4 sm:$0xff]   ;;  %v9727_v18 = vld [vmem:[#allocation2 + $0x480] ss:$8 sps:$4 sm:$0xff]  }
  0xe5   :  { %3488 = vmatpush1.bf16.msra.mxu1 %v9640_v19  ;;  %3448 = vmatprep.subr.bf16.mxu0 %v9645_v20  ;;  %v9730_v19 = vld [vmem:[#allocation2 + $0x580] ss:$8 sps:$4 sm:$0xff]  }
  0xe6   :  { %3489 = vmatprep.subr.bf16.mxu1 %v9648_v21  ;;  %3478 = vmatprep.mubr.bf16.mxu0 %v175_v25  ;;  %v142_v20 = vld [vmem:[%s10815_s0 + $0x40] sm:$0xff]  ;;  %v144_v21 = vld [vmem:[%s10815_s0 + $0x50] sm:$0xff]  ;;  %v147_v25 = vld [vmem:[%s10815_s0 + $0x68] sm:$0xff] }
  0xe7   :  { %3519 = vmatprep.mubr.bf16.mxu1 %v177_v28  ;;  %v174_v26 = vpack.c.bf16 %v142_v20, %v142_v20  ;;  %v149_v28 = vld [vmem:[%s10815_s0 + $0x78] sm:$0xff]  ;;  %v712_v20 = vlaneseq }
  0xe8   :  { %3449 = vmatpush1.bf16.msra.mxu0 %v9643_v23  ;;  %v9738_v23 = vld [vmem:[#allocation2 + $0x774] ss:$8 sps:$4 sm:$0xff]  }
  0xe9   :  { %3490 = vmatpush1.bf16.msra.mxu1 %v9646_v24  ;;  %3450 = vmatprep.subr.bf16.mxu0 %v9651_v27  ;;  %v9733_v24 = vld [vmem:[#allocation2 + $0x670] ss:$8 sps:$4 sm:$0xff]   ;;  %v176_v27 = vpack.c.bf16 %v144_v21, %v144_v21  ;;  %v9819_v21 = vld [vmem:[#allocation2 + $0x694] ss:$8 sps:$4 sm:$0xff]  }
  0xea   :  { %3491 = vmatprep.subr.bf16.mxu1 %v9654_v29  ;;  %v9736_v29 = vld [vmem:[#allocation2 + $0x770] ss:$8 sps:$4 sm:$0xff]  }
  0xec   :  { %3451 = vmatpush1.bf16.msra.mxu0 %v9649_v30  ;;  %v9741_v30 = vld [vmem:[#allocation2 + $0x664] ss:$8 sps:$4 sm:$0xff]  }
  0xed   :  { %3492 = vmatpush1.bf16.msra.mxu1 %v9652_v31  ;;  %3452 = vmatprep.subr.bf16.mxu0 %v9657_v32  ;;  %v9744_v31 = vld [vmem:[#allocation2 + $0x764] ss:$8 sps:$4 sm:$0xff]   ;;  %v179_v32 = vpack.c.bf16 %v147_v25, %v147_v25  ;;  %v10560_v25 = vshrl.u32 %v712_v20, 7 }
  0xee   :  { %3493 = vmatprep.subr.bf16.mxu1 %v9660_v33  ;;  %v181_v33 = vpack.c.bf16 %v149_v28, %v149_v28  ;;  %v9823_v28 = vld [vmem:[#allocation2 + $0x680] ss:$8 sps:$4 sm:$0xff]   ;;  %v9876_v20 = vld [vmem:[#allocation2 + $0x904] ss:$8 sps:$4 sm:$0xff]  }
  0xf0   :  { %3453 = vmatpush1.bf16.msra.mxu0 %v9655_v34  ;;  %v9739_v34 = vld [vmem:[#allocation2 + $0x660] ss:$8 sps:$4 sm:$0xff]  }
  0xf1   :  { %3494 = vmatpush1.bf16.msra.mxu1 %v9658_v35  ;;  %3454 = vmatprep.subr.bf16.mxu0 %v9663_v36  ;;  %v9742_v35 = vld [vmem:[#allocation2 + $0x760] ss:$8 sps:$4 sm:$0xff]   ;;  %v9747_v36 = vld [vmem:[#allocation2 + $0x654] ss:$8 sps:$4 sm:$0xff]  }
  0xf2   :  { %3495 = vmatprep.subr.bf16.mxu1 %v9666_v37  ;;  %v9750_v37 = vld [vmem:[#allocation2 + $0x754] ss:$8 sps:$4 sm:$0xff]  }
  0xf4   :  { %3455 = vmatpush1.bf16.msra.mxu0 %v9661_v38  ;;  %v9745_v38 = vld [vmem:[#allocation2 + $0x650] ss:$8 sps:$4 sm:$0xff]  }
  0xf5   :  { %3496 = vmatpush1.bf16.msra.mxu1 %v9664_v39  ;;  %3456 = vmatprep.subr.bf16.mxu0 %v9669_v40  ;;  %v9748_v39 = vld [vmem:[#allocation2 + $0x750] ss:$8 sps:$4 sm:$0xff]   ;;  %v9753_v40 = vld [vmem:[#allocation2 + $0x644] ss:$8 sps:$4 sm:$0xff]  }
  0xf6   :  { %3497 = vmatprep.subr.bf16.mxu1 %v9672_v41  ;;  %v9756_v41 = vld [vmem:[#allocation2 + $0x744] ss:$8 sps:$4 sm:$0xff]  }
  0xf8   :  { %3457 = vmatpush1.bf16.msra.mxu0 %v9667_v42  ;;  %v9751_v42 = vld [vmem:[#allocation2 + $0x640] ss:$8 sps:$4 sm:$0xff]  }
  0xf9   :  { %3498 = vmatpush1.bf16.msra.mxu1 %v9670_v43  ;;  %3458 = vmatprep.subr.bf16.mxu0 %v9675_v44  ;;  %v9754_v43 = vld [vmem:[#allocation2 + $0x740] ss:$8 sps:$4 sm:$0xff]   ;;  %v9759_v44 = vld [vmem:[#allocation2 + $0x634] ss:$8 sps:$4 sm:$0xff]  }
  0xfa   :  { %3499 = vmatprep.subr.bf16.mxu1 %v9678_v45  ;;  %v9762_v45 = vld [vmem:[#allocation2 + $0x734] ss:$8 sps:$4 sm:$0xff]  }
  0xfc   :  { %3459 = vmatpush1.bf16.msra.mxu0 %v9673_v46  ;;  %v9757_v46 = vld [vmem:[#allocation2 + $0x630] ss:$8 sps:$4 sm:$0xff]  }
  0xfd   :  { %3500 = vmatpush1.bf16.msra.mxu1 %v9676_v47  ;;  %3460 = vmatprep.subr.bf16.mxu0 %v9681_v48  ;;  %v9760_v47 = vld [vmem:[#allocation2 + $0x730] ss:$8 sps:$4 sm:$0xff]   ;;  %v9765_v48 = vld [vmem:[#allocation2 + $0x624] ss:$8 sps:$4 sm:$0xff]  }
  0xfe   :  { %3501 = vmatprep.subr.bf16.mxu1 %v9684_v49  ;;  %v9768_v49 = vld [vmem:[#allocation2 + $0x724] ss:$8 sps:$4 sm:$0xff]  }
 0x100   :  { %3461 = vmatpush1.bf16.msra.mxu0 %v9679_v50  ;;  %v9763_v50 = vld [vmem:[#allocation2 + $0x620] ss:$8 sps:$4 sm:$0xff]  }
 0x101   :  { %3502 = vmatpush1.bf16.msra.mxu1 %v9682_v51  ;;  %3462 = vmatprep.subr.bf16.mxu0 %v9687_v52  ;;  %v9766_v51 = vld [vmem:[#allocation2 + $0x720] ss:$8 sps:$4 sm:$0xff]   ;;  %v9771_v52 = vld [vmem:[#allocation2 + $0x614] ss:$8 sps:$4 sm:$0xff]  }
 0x102   :  { %3503 = vmatprep.subr.bf16.mxu1 %v9690_v53  ;;  %v9774_v53 = vld [vmem:[#allocation2 + $0x714] ss:$8 sps:$4 sm:$0xff]  }
 0x104   :  { %3463 = vmatpush2.bf16.msra.mxu0 %v9685_v54  ;;  %v9769_v54 = vld [vmem:[#allocation2 + $0x610] ss:$8 sps:$4 sm:$0xff]  }
 0x105   :  { %3504 = vmatpush2.bf16.msra.mxu1 %v9688_v55  ;;  %3464 = vmatprep.subr.bf16.mxu0 %v9693_v56  ;;  %v9772_v55 = vld [vmem:[#allocation2 + $0x710] ss:$8 sps:$4 sm:$0xff]   ;;  %v9777_v56 = vld [vmem:[#allocation2 + $0x604] ss:$8 sps:$4 sm:$0xff]  }
 0x106   :  { %3505 = vmatprep.subr.bf16.mxu1 %v9696_v57  ;;  %v9780_v57 = vld [vmem:[#allocation2 + $0x704] ss:$8 sps:$4 sm:$0xff]  }
 0x108   :  { %3465 = vmatpush2.bf16.msra.mxu0 %v9691_v58  ;;  %v9775_v58 = vld [vmem:[#allocation2 + $0x600] ss:$8 sps:$4 sm:$0xff]  }
 0x109   :  { %3506 = vmatpush2.bf16.msra.mxu1 %v9694_v59  ;;  %3466 = vmatprep.subr.bf16.mxu0 %v9699_v60  ;;  %v9778_v59 = vld [vmem:[#allocation2 + $0x700] ss:$8 sps:$4 sm:$0xff]   ;;  %v9783_v60 = vld [vmem:[#allocation2 + $0x6f4] ss:$8 sps:$4 sm:$0xff]  }
 0x10a   :  { %3507 = vmatprep.subr.bf16.mxu1 %v9702_v61  ;;  %v9786_v61 = vld [vmem:[#allocation2 + $0x7f4] ss:$8 sps:$4 sm:$0xff]  }
 0x10c   :  { %3467 = vmatpush2.bf16.msra.mxu0 %v9697_v62  ;;  %v9781_v62 = vld [vmem:[#allocation2 + $0x6f0] ss:$8 sps:$4 sm:$0xff]  }
 0x10d   :  { %3508 = vmatpush2.bf16.msra.mxu1 %v9700_v63  ;;  %3468 = vmatprep.subr.bf16.mxu0 %v9705_v0  ;;  %v9784_v63 = vld [vmem:[#allocation2 + $0x7f0] ss:$8 sps:$4 sm:$0xff]   ;;  %v9789_v0 = vld [vmem:[#allocation2 + $0x6e4] ss:$8 sps:$4 sm:$0xff]  }
 0x10e   :  { %3509 = vmatprep.subr.bf16.mxu1 %v9708_v1  ;;  %v9792_v1 = vld [vmem:[#allocation2 + $0x7e4] ss:$8 sps:$4 sm:$0xff]  }
 0x110   :  { %3469 = vmatpush2.bf16.msra.mxu0 %v9703_v2  ;;  %v9787_v2 = vld [vmem:[#allocation2 + $0x6e0] ss:$8 sps:$4 sm:$0xff]  }
 0x111   :  { %3510 = vmatpush2.bf16.msra.mxu1 %v9706_v3  ;;  %3470 = vmatprep.subr.bf16.mxu0 %v9711_v4  ;;  %v9790_v3 = vld [vmem:[#allocation2 + $0x7e0] ss:$8 sps:$4 sm:$0xff]   ;;  %v9795_v4 = vld [vmem:[#allocation2 + $0x6d4] ss:$8 sps:$4 sm:$0xff]  }
 0x112   :  { %3511 = vmatprep.subr.bf16.mxu1 %v9714_v5  ;;  %v9798_v5 = vld [vmem:[#allocation2 + $0x7d4] ss:$8 sps:$4 sm:$0xff]  }
 0x114   :  { %3471 = vmatpush2.bf16.msra.mxu0 %v9709_v6  ;;  %v9793_v6 = vld [vmem:[#allocation2 + $0x6d0] ss:$8 sps:$4 sm:$0xff]  }
 0x115   :  { %3512 = vmatpush2.bf16.msra.mxu1 %v9712_v7  ;;  %3472 = vmatprep.subr.bf16.mxu0 %v9717_v8  ;;  %v9796_v7 = vld [vmem:[#allocation2 + $0x7d0] ss:$8 sps:$4 sm:$0xff]   ;;  %v9801_v8 = vld [vmem:[#allocation2 + $0x6c4] ss:$8 sps:$4 sm:$0xff]  }
 0x116   :  { %3513 = vmatprep.subr.bf16.mxu1 %v9720_v9  ;;  %v9804_v9 = vld [vmem:[#allocation2 + $0x7c4] ss:$8 sps:$4 sm:$0xff]  }
 0x118   :  { %3473 = vmatpush2.bf16.msra.mxu0 %v9715_v10  ;;  %v9799_v10 = vld [vmem:[#allocation2 + $0x6c0] ss:$8 sps:$4 sm:$0xff]  }
 0x119   :  { %3514 = vmatpush2.bf16.msra.mxu1 %v9718_v11  ;;  %3474 = vmatprep.subr.bf16.mxu0 %v9723_v12  ;;  %v9802_v11 = vld [vmem:[#allocation2 + $0x7c0] ss:$8 sps:$4 sm:$0xff]   ;;  %v9807_v12 = vld [vmem:[#allocation2 + $0x6b4] ss:$8 sps:$4 sm:$0xff]  }
 0x11a   :  { %3515 = vmatprep.subr.bf16.mxu1 %v9726_v13  ;;  %v9810_v13 = vld [vmem:[#allocation2 + $0x7b4] ss:$8 sps:$4 sm:$0xff]  }
 0x11c   :  { %3475 = vmatpush2.bf16.msra.mxu0 %v9721_v14  ;;  %v9805_v14 = vld [vmem:[#allocation2 + $0x6b0] ss:$8 sps:$4 sm:$0xff]  }
 0x11d   :  { %3516 = vmatpush2.bf16.msra.mxu1 %v9724_v15  ;;  %3476 = vmatprep.subr.bf16.mxu0 %v9729_v16  ;;  %v9808_v15 = vld [vmem:[#allocation2 + $0x7b0] ss:$8 sps:$4 sm:$0xff]   ;;  %v9813_v16 = vld [vmem:[#allocation2 + $0x6a4] ss:$8 sps:$4 sm:$0xff]  }
 0x11e   :  { %3517 = vmatprep.subr.bf16.mxu1 %v9732_v17  ;;  %v9816_v17 = vld [vmem:[#allocation2 + $0x7a4] ss:$8 sps:$4 sm:$0xff]  }
 0x120   :  { %3477 = vmatpush2.bf16.msra.mxu0 %v9727_v18  ;;  %v9811_v18 = vld [vmem:[#allocation2 + $0x6a0] ss:$8 sps:$4 sm:$0xff]  }
 0x121   :  { %3518 = vmatpush2.bf16.msra.mxu1 %v9730_v19  ;;  %3528 = vmatprep.subr.bf16.mxu0 %v9735_v22  ;;  %v9814_v19 = vld [vmem:[#allocation2 + $0x7a0] ss:$8 sps:$4 sm:$0xff]   ;;  %v9822_v22 = vld [vmem:[#allocation2 + $0x794] ss:$8 sps:$4 sm:$0xff]  }
 0x122   :  { %3569 = vmatprep.subr.bf16.mxu1 %v9738_v23  ;;  %v9817_v23 = vld [vmem:[#allocation2 + $0x690] ss:$8 sps:$4 sm:$0xff]  }
 0x123   :  { %3479 = vmatmul.mubr.bf16.vlgmr.msra.gmra.mxu0 %v174_v26  ;;  %v9825_v26 = vld [vmem:[#allocation2 + $0x684] ss:$8 sps:$4 sm:$0xff]  }
 0x124   :  { %3520 = vmatmul.mubr.bf16.vlgmr.msra.gmra.mxu1 %v176_v27  ;;  %3529 = vmatpush1.bf16.msra.mxu0 %v9733_v24  ;;  %v9820_v24 = vld [vmem:[#allocation2 + $0x790] ss:$8 sps:$4 sm:$0xff]   ;;  %v9828_v27 = vld [vmem:[#allocation2 + $0x784] ss:$8 sps:$4 sm:$0xff]  }
 0x125   :  { %3570 = vmatpush1.bf16.msra.mxu1 %v9736_v29  ;;  %3530 = vmatprep.subr.bf16.mxu0 %v9741_v30  ;;  %v9826_v29 = vld [vmem:[#allocation2 + $0x780] ss:$8 sps:$4 sm:$0xff]  }
 0x126   :  { %3571 = vmatprep.subr.bf16.mxu1 %v9744_v31  ;;  %3560 = vmatprep.mubr.bf16.mxu0 %v179_v32  ;;  %v710_v30 = vld [vmem:[#allocation4] sm:$0x3]  ;;  %v10566_v32 = vsub.s32 0, %v10560_v25 }
 0x127   :  { %3601 = vmatprep.mubr.bf16.mxu1 %v181_v33  ;;  %v146_v31 = vld [vmem:[%s10815_s0 + $0x60] sm:$0xff]  ;;  %v148_v33 = vld [vmem:[%s10815_s0 + $0x70] sm:$0xff] }
 0x128   :  { %3531 = vmatpush1.bf16.msra.mxu0 %v9739_v34  ;;  %v9831_v34 = vld [vmem:[#allocation2 + $0x874] ss:$8 sps:$4 sm:$0xff]  }
 0x129   :  { %3572 = vmatpush1.bf16.msra.mxu1 %v9742_v35  ;;  %3532 = vmatprep.subr.bf16.mxu0 %v9747_v36  ;;  %v9834_v35 = vld [vmem:[#allocation2 + $0x974] ss:$8 sps:$4 sm:$0xff]   ;;  %v9829_v36 = vld [vmem:[#allocation2 + $0x870] ss:$8 sps:$4 sm:$0xff]  }
 0x12a   :  { %3573 = vmatprep.subr.bf16.mxu1 %v9750_v37  ;;  %v10572_v37 = vsub.s32 1, %v10560_v25 }
 0x12c   :  { %3533 = vmatpush1.bf16.msra.mxu0 %v9745_v38  ;;  %v151_v38 = vld [vmem:[%s10815_s0 + $0x88] sm:$0xff] }
 0x12d   :  { %3574 = vmatpush1.bf16.msra.mxu1 %v9748_v39  ;;  %3534 = vmatprep.subr.bf16.mxu0 %v9753_v40  ;;  %v178_v39 = vpack.c.bf16 %v146_v31, %v146_v31  ;;  %v180_v40 = vpack.c.bf16 %v148_v33, %v148_v33  ;;  %v9886_v31 = vld [vmem:[#allocation2 + $0x9e0] ss:$8 sps:$4 sm:$0xff]   ;;  %v9891_v33 = vld [vmem:[#allocation2 + $0x8d4] ss:$8 sps:$4 sm:$0xff]  }
 0x12e   :  { %3575 = vmatprep.subr.bf16.mxu1 %v9756_v41  ;;  %v153_v41 = vld [vmem:[%s10815_s0 + $0x98] sm:$0xff] }
 0x130   :  { %3535 = vmatpush1.bf16.msra.mxu0 %v9751_v42  ;;  %v715_v42 = vrot.slane %v710_v30, %v10566_v32 }
 0x131   :  { %3576 = vmatpush1.bf16.msra.mxu1 %v9754_v43  ;;  %3536 = vmatprep.subr.bf16.mxu0 %v9759_v44  ;;  %v9832_v43 = vld [vmem:[#allocation2 + $0x970] ss:$8 sps:$4 sm:$0xff]   ;;  %v9837_v44 = vld [vmem:[#allocation2 + $0x864] ss:$8 sps:$4 sm:$0xff]  }
 0x132   :  { %3577 = vmatprep.subr.bf16.mxu1 %v9762_v45  ;;  %v9840_v45 = vld [vmem:[#allocation2 + $0x964] ss:$8 sps:$4 sm:$0xff]  }
 0x134   :  { %3537 = vmatpush1.bf16.msra.mxu0 %v9757_v46  ;;  %v719_v46 = vrot.slane %v710_v30, %v10572_v37  ;;  %v9883_v30 = vld [vmem:[#allocation2 + $0x8e0] ss:$8 sps:$4 sm:$0xff]  }
 0x135   :  { %3578 = vmatpush1.bf16.msra.mxu1 %v9760_v47  ;;  %3538 = vmatprep.subr.bf16.mxu0 %v9765_v48  ;;  %v183_v47 = vpack.c.bf16 %v151_v38, %v151_v38  ;;  %v185_v48 = vpack.c.bf16 %v153_v41, %v153_v41  ;;  %v9897_v38 = vld [vmem:[#allocation2 + $0x8c4] ss:$8 sps:$4 sm:$0xff]   ;;  %v9898_v41 = vld [vmem:[#allocation2 + $0x9c0] ss:$8 sps:$4 sm:$0xff]  }
 0x136   :  { %3579 = vmatprep.subr.bf16.mxu1 %v9768_v49 }
 0x138   :  { %3539 = vmatpush1.bf16.msra.mxu0 %v9763_v50 }
 0x139   :  { %3580 = vmatpush1.bf16.msra.mxu1 %v9766_v51  ;;  %3540 = vmatprep.subr.bf16.mxu0 %v9771_v52  ;;  %v9835_v51 = vld [vmem:[#allocation2 + $0x860] ss:$8 sps:$4 sm:$0xff]  }
 0x13a   :  { %3581 = vmatprep.subr.bf16.mxu1 %v9774_v53  ;;  %v9838_v53 = vld [vmem:[#allocation2 + $0x960] ss:$8 sps:$4 sm:$0xff]  }
 0x13c   :  { %3541 = vmatpush1.bf16.msra.mxu0 %v9769_v54 }
 0x13d   :  { %3582 = vmatpush1.bf16.msra.mxu1 %v9772_v55  ;;  %3542 = vmatprep.subr.bf16.mxu0 %v9777_v56  ;;  %v9843_v56 = vld [vmem:[#allocation2 + $0x854] ss:$8 sps:$4 sm:$0xff]  }
 0x13e   :  { %3583 = vmatprep.subr.bf16.mxu1 %v9780_v57  ;;  %v9846_v57 = vld [vmem:[#allocation2 + $0x954] ss:$8 sps:$4 sm:$0xff]  }
 0x140   :  { %3543 = vmatpush1.bf16.msra.mxu0 %v9775_v58 }
 0x141   :  { %3584 = vmatpush1.bf16.msra.mxu1 %v9778_v59  ;;  %3544 = vmatprep.subr.bf16.mxu0 %v9783_v60 }
 0x142   :  { %3585 = vmatprep.subr.bf16.mxu1 %v9786_v61 }
 0x144   :  { %3545 = vmatpush2.bf16.msra.mxu0 %v9781_v62  ;;  %v9841_v62 = vld [vmem:[#allocation2 + $0x850] ss:$8 sps:$4 sm:$0xff]  }
 0x145   :  { %3586 = vmatpush2.bf16.msra.mxu1 %v9784_v63  ;;  %3546 = vmatprep.subr.bf16.mxu0 %v9789_v0  ;;  %v9844_v0 = vld [vmem:[#allocation2 + $0x950] ss:$8 sps:$4 sm:$0xff]  }
 0x146   :  { %3587 = vmatprep.subr.bf16.mxu1 %v9792_v1 }
 0x148   :  { %3547 = vmatpush2.bf16.msra.mxu0 %v9787_v2 }
 0x149   :  { %3588 = vmatpush2.bf16.msra.mxu1 %v9790_v3  ;;  %3548 = vmatprep.subr.bf16.mxu0 %v9795_v4  ;;  %v9849_v3 = vld [vmem:[#allocation2 + $0x844] ss:$8 sps:$4 sm:$0xff]  }
 0x14a   :  { %3589 = vmatprep.subr.bf16.mxu1 %v9798_v5  ;;  %v9852_v4 = vld [vmem:[#allocation2 + $0x944] ss:$8 sps:$4 sm:$0xff]   ;;  %v9847_v5 = vld [vmem:[#allocation2 + $0x840] ss:$8 sps:$4 sm:$0xff]  }
 0x14c   :  { %3549 = vmatpush2.bf16.msra.mxu0 %v9793_v6  ;;  %v9850_v6 = vld [vmem:[#allocation2 + $0x940] ss:$8 sps:$4 sm:$0xff]  }
 0x14d   :  { %3590 = vmatpush2.bf16.msra.mxu1 %v9796_v7  ;;  %3550 = vmatprep.subr.bf16.mxu0 %v9801_v8  ;;  %v9855_v7 = vld [vmem:[#allocation2 + $0x834] ss:$8 sps:$4 sm:$0xff]  }
 0x14e   :  { %3591 = vmatprep.subr.bf16.mxu1 %v9804_v9  ;;  %v9858_v8 = vld [vmem:[#allocation2 + $0x934] ss:$8 sps:$4 sm:$0xff]   ;;  %v9853_v9 = vld [vmem:[#allocation2 + $0x830] ss:$8 sps:$4 sm:$0xff]  }
 0x150   :  { %3551 = vmatpush2.bf16.msra.mxu0 %v9799_v10  ;;  %v9856_v10 = vld [vmem:[#allocation2 + $0x930] ss:$8 sps:$4 sm:$0xff]  }
 0x151   :  { %3592 = vmatpush2.bf16.msra.mxu1 %v9802_v11  ;;  %3552 = vmatprep.subr.bf16.mxu0 %v9807_v12  ;;  %v9861_v11 = vld [vmem:[#allocation2 + $0x824] ss:$8 sps:$4 sm:$0xff]  }
 0x152   :  { %3593 = vmatprep.subr.bf16.mxu1 %v9810_v13  ;;  %v9864_v12 = vld [vmem:[#allocation2 + $0x924] ss:$8 sps:$4 sm:$0xff]   ;;  %v9859_v13 = vld [vmem:[#allocation2 + $0x820] ss:$8 sps:$4 sm:$0xff]  }
 0x154   :  { %3553 = vmatpush2.bf16.msra.mxu0 %v9805_v14  ;;  %v9862_v14 = vld [vmem:[#allocation2 + $0x920] ss:$8 sps:$4 sm:$0xff]  }
 0x155   :  { %3594 = vmatpush2.bf16.msra.mxu1 %v9808_v15  ;;  %3554 = vmatprep.subr.bf16.mxu0 %v9813_v16  ;;  %v9867_v15 = vld [vmem:[#allocation2 + $0x814] ss:$8 sps:$4 sm:$0xff]  }
 0x156   :  { %3595 = vmatprep.subr.bf16.mxu1 %v9816_v17  ;;  %v9870_v16 = vld [vmem:[#allocation2 + $0x914] ss:$8 sps:$4 sm:$0xff]   ;;  %v9865_v17 = vld [vmem:[#allocation2 + $0x810] ss:$8 sps:$4 sm:$0xff]  }
 0x158   :  { %3555 = vmatpush2.bf16.msra.mxu0 %v9811_v18  ;;  %v9868_v18 = vld [vmem:[#allocation2 + $0x910] ss:$8 sps:$4 sm:$0xff]  }
 0x159   :  { %3596 = vmatpush2.bf16.msra.mxu1 %v9814_v19  ;;  %3556 = vmatprep.subr.bf16.mxu0 %v9819_v21  ;;  %v9873_v19 = vld [vmem:[#allocation2 + $0x804] ss:$8 sps:$4 sm:$0xff]   ;;  %v9871_v21 = vld [vmem:[#allocation2 + $0x800] ss:$8 sps:$4 sm:$0xff]  }
 0x15a   :  { %3597 = vmatprep.subr.bf16.mxu1 %v9822_v22  ;;  %v9874_v22 = vld [vmem:[#allocation2 + $0x900] ss:$8 sps:$4 sm:$0xff]  }
 0x15c   :  { %3557 = vmatpush2.bf16.msra.mxu0 %v9817_v23  ;;  %v9879_v23 = vld [vmem:[#allocation2 + $0x8f4] ss:$8 sps:$4 sm:$0xff]  }
 0x15d   :  { %3598 = vmatpush2.bf16.msra.mxu1 %v9820_v24  ;;  %3558 = vmatprep.subr.bf16.mxu0 %v9825_v26  ;;  %v9882_v24 = vld [vmem:[#allocation2 + $0x9f4] ss:$8 sps:$4 sm:$0xff]   ;;  %v9877_v26 = vld [vmem:[#allocation2 + $0x8f0] ss:$8 sps:$4 sm:$0xff]  }
 0x15e   :  { %3599 = vmatprep.subr.bf16.mxu1 %v9828_v27  ;;  %v9880_v27 = vld [vmem:[#allocation2 + $0x9f0] ss:$8 sps:$4 sm:$0xff]  }
 0x160   :  { %3559 = vmatpush2.bf16.msra.mxu0 %v9823_v28  ;;  %v9885_v28 = vld [vmem:[#allocation2 + $0x8e4] ss:$8 sps:$4 sm:$0xff]  }
 0x161   :  { %3600 = vmatpush2.bf16.msra.mxu1 %v9826_v29  ;;  %3610 = vmatprep.subr.bf16.mxu0 %v9831_v34  ;;  %v9888_v29 = vld [vmem:[#allocation2 + $0x9e4] ss:$8 sps:$4 sm:$0xff]   ;;  %v9894_v34 = vld [vmem:[#allocation2 + $0x9d4] ss:$8 sps:$4 sm:$0xff]  }
 0x162   :  { %3651 = vmatprep.subr.bf16.mxu1 %v9834_v35  ;;  %v9889_v35 = vld [vmem:[#allocation2 + $0x8d0] ss:$8 sps:$4 sm:$0xff]  }
 0x163   :  { %v3316_v49 = vpop.f32.mrf.mxu0  ;;  %3561 = vmatmul.mubr.bf16.vlgmr.msra.gmra.mxu0 %v178_v39  ;;  %v9900_v39 = vld [vmem:[#allocation2 + $0x9c4] ss:$8 sps:$4 sm:$0xff]  }
 0x164   :  { %v3357_v50 = vpop.f32.mrf.mxu1  ;;  %3602 = vmatmul.mubr.bf16.vlgmr.msra.gmra.mxu1 %v180_v40  ;;  %v3317_v52 = vadd.f32 %v3316_v49, %v715_v42  ;;  %3611 = vmatpush1.bf16.msra.mxu0 %v9829_v36  ;;  %v9892_v36 = vld [vmem:[#allocation2 + $0x9d0] ss:$8 sps:$4 sm:$0xff]   ;;  %v9895_v40 = vld [vmem:[#allocation2 + $0x8c0] ss:$8 sps:$4 sm:$0xff]   ;;  %v9903_v42 = vld [vmem:[#allocation2 + $0x8b4] ss:$8 sps:$4 sm:$0xff]  }
 0x165   :  { %3652 = vmatpush1.bf16.msra.mxu1 %v9832_v43  ;;  %v3318_v54 = vpop.f32.mrf.mxu0  ;;  %3612 = vmatprep.subr.bf16.mxu0 %v9837_v44  ;;  %v9906_v43 = vld [vmem:[#allocation2 + $0x9b4] ss:$8 sps:$4 sm:$0xff]   ;;  %v9901_v44 = vld [vmem:[#allocation2 + $0x8b0] ss:$8 sps:$4 sm:$0xff]   ;;  %v9910_v49 = vld [vmem:[#allocation2 + $0x9a0] ss:$8 sps:$4 sm:$0xff]  }
 0x166   :  { %v3359_v55 = vpop.f32.mrf.mxu1  ;;  %3653 = vmatprep.subr.bf16.mxu1 %v9840_v45  ;;  %v10582_v58 = vadd.f32 %v3357_v50, %v3317_v52  ;;  %v3319_v59 = vadd.f32 %v3318_v54, %v719_v46  ;;  %3642 = vmatprep.mubr.bf16.mxu0 %v183_v47  ;;  %v9904_v45 = vld [vmem:[#allocation2 + $0x9b0] ss:$8 sps:$4 sm:$0xff]   ;;  %v9909_v46 = vld [vmem:[#allocation2 + $0x8a4] ss:$8 sps:$4 sm:$0xff]   ;;  %v9915_v50 = vld [vmem:[#allocation2 + $0x894] ss:$8 sps:$4 sm:$0xff]  }
 0x167   :  { %3683 = vmatprep.mubr.bf16.mxu1 %v185_v48  ;;  %v3320_v60 = vpop.f32.mrf.mxu0  ;;  %v9912_v47 = vld [vmem:[#allocation2 + $0x9a4] ss:$8 sps:$4 sm:$0xff]   ;;  %v9907_v48 = vld [vmem:[#allocation2 + $0x8a0] ss:$8 sps:$4 sm:$0xff]   ;;  %v9913_v52 = vld [vmem:[#allocation2 + $0x890] ss:$8 sps:$4 sm:$0xff]  }
 0x168   :  { %v3361_v61 = vpop.f32.mrf.mxu1  ;;  %v10584_v63 = vadd.f32 %v3359_v55, %v3319_v59  ;;  %3613 = vmatpush1.bf16.msra.mxu0 %v9835_v51  ;;  %v9918_v51 = vld [vmem:[#allocation2 + $0x994] ss:$8 sps:$4 sm:$0xff]   ;;  %v9921_v54 = vld [vmem:[#allocation2 + $0x884] ss:$8 sps:$4 sm:$0xff]  }
 0x169   :  { %3654 = vmatpush1.bf16.msra.mxu1 %v9838_v53  ;;  %v3321_v1 = vpop.f32.mrf.mxu0  ;;  %3614 = vmatprep.subr.bf16.mxu0 %v9843_v56  ;;  %v9916_v53 = vld [vmem:[#allocation2 + $0x990] ss:$8 sps:$4 sm:$0xff]   ;;  %v9924_v55 = vld [vmem:[#allocation2 + $0x984] ss:$8 sps:$4 sm:$0xff]   ;;  %v9919_v56 = vld [vmem:[#allocation2 + $0x880] ss:$8 sps:$4 sm:$0xff]  }
 0x16a   :  { %v3362_v2 = vpop.f32.mrf.mxu1  ;;  %3655 = vmatprep.subr.bf16.mxu1 %v9846_v57  ;;  %v9922_v57 = vld [vmem:[#allocation2 + $0x980] ss:$8 sps:$4 sm:$0xff]   ;;  %v152_v60 = vld [vmem:[%s10815_s0 + $0x90] sm:$0xff] }
 0x16b   :  { %v150_v59 = vld [vmem:[%s10815_s0 + $0x80] sm:$0xff]  ;;  %v9927_v61 = vld [vmem:[#allocation2 + $0xa74] ss:$8 sps:$4 sm:$0xff]   ;;  %v184_v1 = vpack.c.bf16 %v152_v60, %v152_v60  ;;  %v155_v2 = vld [vmem:[%s10815_s0 + $0xa8] sm:$0xff] }
 0x16c   :  { %3615 = vmatpush1.bf16.msra.mxu0 %v9841_v62  ;;  %v9930_v62 = vld [vmem:[#allocation2 + $0xb74] ss:$8 sps:$4 sm:$0xff]   ;;  %v9985_v60 = vld [vmem:[#allocation2 + $0xad0] ss:$8 sps:$4 sm:$0xff]  }
 0x16d   :  { %3656 = vmatpush1.bf16.msra.mxu1 %v9844_v0  ;;  %3616 = vmatprep.subr.bf16.mxu0 %v9849_v3  ;;  %v182_v0 = vpack.c.bf16 %v150_v59, %v150_v59  ;;  %v157_v3 = vld [vmem:[%s10815_s0 + $0xb8] sm:$0xff] }
 0x16e   :  { %3657 = vmatprep.subr.bf16.mxu1 %v9852_v4  ;;  %v9925_v4 = vld [vmem:[#allocation2 + $0xa70] ss:$8 sps:$4 sm:$0xff]   ;;  %v9990_v59 = vld [vmem:[#allocation2 + $0xbd4] ss:$8 sps:$4 sm:$0xff]  }
 0x170   :  { %3617 = vmatpush1.bf16.msra.mxu0 %v9847_v5  ;;  %v9928_v5 = vld [vmem:[#allocation2 + $0xb70] ss:$8 sps:$4 sm:$0xff]  }
 0x171   :  { %3658 = vmatpush1.bf16.msra.mxu1 %v9850_v6  ;;  %3618 = vmatprep.subr.bf16.mxu0 %v9855_v7  ;;  %v9933_v6 = vld [vmem:[#allocation2 + $0xa64] ss:$8 sps:$4 sm:$0xff]  }
 0x172   :  { %3659 = vmatprep.subr.bf16.mxu1 %v9858_v8  ;;  %v9936_v7 = vld [vmem:[#allocation2 + $0xb64] ss:$8 sps:$4 sm:$0xff]   ;;  %v9931_v8 = vld [vmem:[#allocation2 + $0xa60] ss:$8 sps:$4 sm:$0xff]  }
 0x174   :  { %3619 = vmatpush1.bf16.msra.mxu0 %v9853_v9  ;;  %v9934_v9 = vld [vmem:[#allocation2 + $0xb60] ss:$8 sps:$4 sm:$0xff]  }
 0x175   :  { %3660 = vmatpush1.bf16.msra.mxu1 %v9856_v10  ;;  %3620 = vmatprep.subr.bf16.mxu0 %v9861_v11  ;;  %v187_v10 = vpack.c.bf16 %v155_v2, %v155_v2  ;;  %v189_v11 = vpack.c.bf16 %v157_v3, %v157_v3  ;;  %v9994_v2 = vld [vmem:[#allocation2 + $0xbc0] ss:$8 sps:$4 sm:$0xff]   ;;  %v9999_v3 = vld [vmem:[#allocation2 + $0xab4] ss:$8 sps:$4 sm:$0xff]  }
 0x176   :  { %3661 = vmatprep.subr.bf16.mxu1 %v9864_v12 }
 0x178   :  { %3621 = vmatpush1.bf16.msra.mxu0 %v9859_v13 }
 0x179   :  { %3662 = vmatpush1.bf16.msra.mxu1 %v9862_v14  ;;  %3622 = vmatprep.subr.bf16.mxu0 %v9867_v15 }
 0x17a   :  { %3663 = vmatprep.subr.bf16.mxu1 %v9870_v16 }
 0x17c   :  { %3623 = vmatpush1.bf16.msra.mxu0 %v9865_v17  ;;  %v9939_v17 = vld [vmem:[#allocation2 + $0xa54] ss:$8 sps:$4 sm:$0xff]  }
 0x17d   :  { %3664 = vmatpush1.bf16.msra.mxu1 %v9868_v18  ;;  %3624 = vmatprep.subr.bf16.mxu0 %v9873_v19  ;;  %v9942_v18 = vld [vmem:[#allocation2 + $0xb54] ss:$8 sps:$4 sm:$0xff]  }
 0x17e   :  { %3665 = vmatprep.subr.bf16.mxu1 %v9876_v20 }
 0x180   :  { %3625 = vmatpush1.bf16.msra.mxu0 %v9871_v21  ;;  %v9937_v21 = vld [vmem:[#allocation2 + $0xa50] ss:$8 sps:$4 sm:$0xff]  }
 0x181   :  { %3666 = vmatpush1.bf16.msra.mxu1 %v9874_v22  ;;  %3626 = vmatprep.subr.bf16.mxu0 %v9879_v23  ;;  %v9940_v22 = vld [vmem:[#allocation2 + $0xb50] ss:$8 sps:$4 sm:$0xff]  }
 0x182   :  { %3667 = vmatprep.subr.bf16.mxu1 %v9882_v24 }
 0x184   :  { %3627 = vmatpush2.bf16.msra.mxu0 %v9877_v26 }
 0x185   :  { %3668 = vmatpush2.bf16.msra.mxu1 %v9880_v27  ;;  %3628 = vmatprep.subr.bf16.mxu0 %v9885_v28  ;;  %v9945_v28 = vld [vmem:[#allocation2 + $0xa44] ss:$8 sps:$4 sm:$0xff]  }
 0x186   :  { %3669 = vmatprep.subr.bf16.mxu1 %v9888_v29  ;;  %v9948_v29 = vld [vmem:[#allocation2 + $0xb44] ss:$8 sps:$4 sm:$0xff]  }
 0x188   :  { %3629 = vmatpush2.bf16.msra.mxu0 %v9883_v30  ;;  %v9943_v30 = vld [vmem:[#allocation2 + $0xa40] ss:$8 sps:$4 sm:$0xff]  }
 0x189   :  { %3670 = vmatpush2.bf16.msra.mxu1 %v9886_v31  ;;  %3630 = vmatprep.subr.bf16.mxu0 %v9891_v33  ;;  %v9951_v31 = vld [vmem:[#allocation2 + $0xa34] ss:$8 sps:$4 sm:$0xff]  }
 0x18a   :  { %3671 = vmatprep.subr.bf16.mxu1 %v9894_v34  ;;  %v9954_v33 = vld [vmem:[#allocation2 + $0xb34] ss:$8 sps:$4 sm:$0xff]   ;;  %v9949_v34 = vld [vmem:[#allocation2 + $0xa30] ss:$8 sps:$4 sm:$0xff]  }
 0x18c   :  { %3631 = vmatpush2.bf16.msra.mxu0 %v9889_v35  ;;  %v9952_v35 = vld [vmem:[#allocation2 + $0xb30] ss:$8 sps:$4 sm:$0xff]  }
 0x18d   :  { %3672 = vmatpush2.bf16.msra.mxu1 %v9892_v36  ;;  %3632 = vmatprep.subr.bf16.mxu0 %v9897_v38  ;;  %v9957_v36 = vld [vmem:[#allocation2 + $0xa24] ss:$8 sps:$4 sm:$0xff]  }
 0x18e   :  { %3673 = vmatprep.subr.bf16.mxu1 %v9900_v39  ;;  %v9960_v38 = vld [vmem:[#allocation2 + $0xb24] ss:$8 sps:$4 sm:$0xff]   ;;  %v9955_v39 = vld [vmem:[#allocation2 + $0xa20] ss:$8 sps:$4 sm:$0xff]  }
 0x190   :  { %3633 = vmatpush2.bf16.msra.mxu0 %v9895_v40  ;;  %v9958_v40 = vld [vmem:[#allocation2 + $0xb20] ss:$8 sps:$4 sm:$0xff]  }
 0x191   :  { %3674 = vmatpush2.bf16.msra.mxu1 %v9898_v41  ;;  %3634 = vmatprep.subr.bf16.mxu0 %v9903_v42  ;;  %v9963_v41 = vld [vmem:[#allocation2 + $0xa14] ss:$8 sps:$4 sm:$0xff]  }
 0x192   :  { %3675 = vmatprep.subr.bf16.mxu1 %v9906_v43  ;;  %v9966_v42 = vld [vmem:[#allocation2 + $0xb14] ss:$8 sps:$4 sm:$0xff]   ;;  %v9961_v43 = vld [vmem:[#allocation2 + $0xa10] ss:$8 sps:$4 sm:$0xff]  }
 0x194   :  { %3635 = vmatpush2.bf16.msra.mxu0 %v9901_v44  ;;  %v9964_v44 = vld [vmem:[#allocation2 + $0xb10] ss:$8 sps:$4 sm:$0xff]  }
 0x195   :  { %3676 = vmatpush2.bf16.msra.mxu1 %v9904_v45  ;;  %3636 = vmatprep.subr.bf16.mxu0 %v9909_v46  ;;  %v9969_v45 = vld [vmem:[#allocation2 + $0xa04] ss:$8 sps:$4 sm:$0xff]  }
 0x196   :  { %3677 = vmatprep.subr.bf16.mxu1 %v9912_v47  ;;  %v9972_v46 = vld [vmem:[#allocation2 + $0xb04] ss:$8 sps:$4 sm:$0xff]   ;;  %v9967_v47 = vld [vmem:[#allocation2 + $0xa00] ss:$8 sps:$4 sm:$0xff]  }
 0x198   :  { %3637 = vmatpush2.bf16.msra.mxu0 %v9907_v48  ;;  %v9970_v48 = vld [vmem:[#allocation2 + $0xb00] ss:$8 sps:$4 sm:$0xff]  }
 0x199   :  { %3678 = vmatpush2.bf16.msra.mxu1 %v9910_v49  ;;  %3638 = vmatprep.subr.bf16.mxu0 %v9915_v50  ;;  %v9975_v49 = vld [vmem:[#allocation2 + $0xaf4] ss:$8 sps:$4 sm:$0xff]  }
 0x19a   :  { %3679 = vmatprep.subr.bf16.mxu1 %v9918_v51  ;;  %v9978_v50 = vld [vmem:[#allocation2 + $0xbf4] ss:$8 sps:$4 sm:$0xff]   ;;  %v9973_v51 = vld [vmem:[#allocation2 + $0xaf0] ss:$8 sps:$4 sm:$0xff]  }
 0x19c   :  { %3639 = vmatpush2.bf16.msra.mxu0 %v9913_v52  ;;  %v9976_v52 = vld [vmem:[#allocation2 + $0xbf0] ss:$8 sps:$4 sm:$0xff]  }
 0x19d   :  { %3680 = vmatpush2.bf16.msra.mxu1 %v9916_v53  ;;  %3640 = vmatprep.subr.bf16.mxu0 %v9921_v54  ;;  %v9981_v53 = vld [vmem:[#allocation2 + $0xae4] ss:$8 sps:$4 sm:$0xff]  }
 0x19e   :  { %3681 = vmatprep.subr.bf16.mxu1 %v9924_v55  ;;  %v9984_v54 = vld [vmem:[#allocation2 + $0xbe4] ss:$8 sps:$4 sm:$0xff]   ;;  %v9979_v55 = vld [vmem:[#allocation2 + $0xae0] ss:$8 sps:$4 sm:$0xff]  }
 0x1a0   :  { %3641 = vmatpush2.bf16.msra.mxu0 %v9919_v56  ;;  %v9982_v56 = vld [vmem:[#allocation2 + $0xbe0] ss:$8 sps:$4 sm:$0xff]  }
 0x1a1   :  { %3682 = vmatpush2.bf16.msra.mxu1 %v9922_v57  ;;  %3692 = vmatprep.subr.bf16.mxu0 %v9927_v61  ;;  %v9987_v57 = vld [vmem:[#allocation2 + $0xad4] ss:$8 sps:$4 sm:$0xff]   ;;  %v9988_v61 = vld [vmem:[#allocation2 + $0xbd0] ss:$8 sps:$4 sm:$0xff]  }
 0x1a2   :  { %3733 = vmatprep.subr.bf16.mxu1 %v9930_v62  ;;  %v9993_v62 = vld [vmem:[#allocation2 + $0xac4] ss:$8 sps:$4 sm:$0xff]  }
 0x1a3   :  { %v3398_v12 = vpop.f32.mrf.mxu0  ;;  %3643 = vmatmul.mubr.bf16.vlgmr.msra.gmra.mxu0 %v182_v0  ;;  %v9996_v0 = vld [vmem:[#allocation2 + $0xbc4] ss:$8 sps:$4 sm:$0xff]  }
 0x1a4   :  { %v3439_v13 = vpop.f32.mrf.mxu1  ;;  %3684 = vmatmul.mubr.bf16.vlgmr.msra.gmra.mxu1 %v184_v1  ;;  %v3399_v14 = vadd.f32 %v3398_v12, %v10582_v58  ;;  %3693 = vmatpush1.bf16.msra.mxu0 %v9925_v4  ;;  %v9991_v1 = vld [vmem:[#allocation2 + $0xac0] ss:$8 sps:$4 sm:$0xff]   ;;  %v10002_v4 = vld [vmem:[#allocation2 + $0xbb4] ss:$8 sps:$4 sm:$0xff]  }
 0x1a5   :  { %3734 = vmatpush1.bf16.msra.mxu1 %v9928_v5  ;;  %v3400_v15 = vpop.f32.mrf.mxu0  ;;  %3694 = vmatprep.subr.bf16.mxu0 %v9933_v6  ;;  %v9997_v5 = vld [vmem:[#allocation2 + $0xab0] ss:$8 sps:$4 sm:$0xff]   ;;  %v10014_v12 = vld [vmem:[#allocation2 + $0xb94] ss:$8 sps:$4 sm:$0xff]  }
 0x1a6   :  { %v3441_v16 = vpop.f32.mrf.mxu1  ;;  %3735 = vmatprep.subr.bf16.mxu1 %v9936_v7  ;;  %v10599_v19 = vadd.f32 %v3439_v13, %v3399_v14  ;;  %v3401_v20 = vadd.f32 %v3400_v15, %v10584_v63  ;;  %3724 = vmatprep.mubr.bf16.mxu0 %v187_v10  ;;  %v9946_v63 = vld [vmem:[#allocation2 + $0xb40] ss:$8 sps:$4 sm:$0xff]   ;;  %v10000_v6 = vld [vmem:[#allocation2 + $0xbb0] ss:$8 sps:$4 sm:$0xff]   ;;  %v10005_v7 = vld [vmem:[#allocation2 + $0xaa4] ss:$8 sps:$4 sm:$0xff]  }
 0x1a7   :  { %3765 = vmatprep.mubr.bf16.mxu1 %v189_v11  ;;  %v3402_v23 = vpop.f32.mrf.mxu0  ;;  %v10006_v10 = vld [vmem:[#allocation2 + $0xba0] ss:$8 sps:$4 sm:$0xff]   ;;  %v10011_v11 = vld [vmem:[#allocation2 + $0xa94] ss:$8 sps:$4 sm:$0xff]   ;;  %v10009_v13 = vld [vmem:[#allocation2 + $0xa90] ss:$8 sps:$4 sm:$0xff]  }
 0x1a8   :  { %v3443_v24 = vpop.f32.mrf.mxu1  ;;  %v10602_v26 = vadd.f32 %v3441_v16, %v3401_v20  ;;  %3695 = vmatpush1.bf16.msra.mxu0 %v9931_v8  ;;  %v10008_v8 = vld [vmem:[#allocation2 + $0xba4] ss:$8 sps:$4 sm:$0xff]   ;;  %v10012_v14 = vld [vmem:[#allocation2 + $0xb90] ss:$8 sps:$4 sm:$0xff]   ;;  %v10026_v23 = vld [vmem:[#allocation2 + $0xd74] ss:$8 sps:$4 sm:$0xff]  }
 0x1a9   :  { %3736 = vmatpush1.bf16.msra.mxu1 %v9934_v9  ;;  %v3403_v58 = vpop.f32.mrf.mxu0  ;;  %3696 = vmatprep.subr.bf16.mxu0 %v9939_v17  ;;  %v10003_v9 = vld [vmem:[#allocation2 + $0xaa0] ss:$8 sps:$4 sm:$0xff]   ;;  %v10017_v15 = vld [vmem:[#allocation2 + $0xa84] ss:$8 sps:$4 sm:$0xff]  }
 0x1aa   :  { %v3444_v27 = vpop.f32.mrf.mxu1  ;;  %3737 = vmatprep.subr.bf16.mxu1 %v9942_v18  ;;  %v10020_v16 = vld [vmem:[#allocation2 + $0xb84] ss:$8 sps:$4 sm:$0xff]   ;;  %v10015_v17 = vld [vmem:[#allocation2 + $0xa80] ss:$8 sps:$4 sm:$0xff]  }
 0x1ab   :  { %v10018_v18 = vld [vmem:[#allocation2 + $0xb80] ss:$8 sps:$4 sm:$0xff]  }
 0x1ac   :  { %3697 = vmatpush1.bf16.msra.mxu0 %v9937_v21  ;;  %v154_v20 = vld [vmem:[%s10815_s0 + $0xa0] sm:$0xff]  ;;  %v156_v21 = vld [vmem:[%s10815_s0 + $0xb0] sm:$0xff]  ;;  %v159_v27 = vld [vmem:[%s10815_s0 + $0xc8] sm:$0xff] }
 0x1ad   :  { %3738 = vmatpush1.bf16.msra.mxu1 %v9940_v22  ;;  %3698 = vmatprep.subr.bf16.mxu0 %v9945_v28  ;;  %v10023_v22 = vld [vmem:[#allocation2 + $0xc74] ss:$8 sps:$4 sm:$0xff]   ;;  %v186_v24 = vpack.c.bf16 %v154_v20, %v154_v20  ;;  %v188_v58 = vpack.c.bf16 %v156_v21, %v156_v21  ;;  %v10081_v21 = vld [vmem:[#allocation2 + $0xcd0] ss:$8 sps:$4 sm:$0xff]  }
 0x1ae   :  { %3739 = vmatprep.subr.bf16.mxu1 %v9948_v29  ;;  %v161_v28 = vld [vmem:[%s10815_s0 + $0xd8] sm:$0xff] }
 0x1af   :  { %v10021_v29 = vld [vmem:[#allocation2 + $0xc70] ss:$8 sps:$4 sm:$0xff]   ;;  %v10086_v20 = vld [vmem:[#allocation2 + $0xdd4] ss:$8 sps:$4 sm:$0xff]  }
 0x1b0   :  { %3699 = vmatpush1.bf16.msra.mxu0 %v9943_v30  ;;  %v10024_v30 = vld [vmem:[#allocation2 + $0xd70] ss:$8 sps:$4 sm:$0xff]  }
 0x1b1   :  { %3740 = vmatpush1.bf16.msra.mxu1 %v9946_v63  ;;  %3700 = vmatprep.subr.bf16.mxu0 %v9951_v31  ;;  %v10029_v63 = vld [vmem:[#allocation2 + $0xc64] ss:$8 sps:$4 sm:$0xff]  }
 0x1b2   :  { %3741 = vmatprep.subr.bf16.mxu1 %v9954_v33  ;;  %v10032_v31 = vld [vmem:[#allocation2 + $0xd64] ss:$8 sps:$4 sm:$0xff]   ;;  %v191_v33 = vpack.c.bf16 %v159_v27, %v159_v27  ;;  %v10090_v27 = vld [vmem:[#allocation2 + $0xdc0] ss:$8 sps:$4 sm:$0xff]  }
 0x1b4   :  { %3701 = vmatpush1.bf16.msra.mxu0 %v9949_v34  ;;  %v193_v34 = vpack.c.bf16 %v161_v28, %v161_v28  ;;  %v10095_v28 = vld [vmem:[#allocation2 + $0xcb4] ss:$8 sps:$4 sm:$0xff]  }
 0x1b5   :  { %3742 = vmatpush1.bf16.msra.mxu1 %v9952_v35  ;;  %3702 = vmatprep.subr.bf16.mxu0 %v9957_v36 }
 0x1b6   :  { %3743 = vmatprep.subr.bf16.mxu1 %v9960_v38 }
 0x1b8   :  { %3703 = vmatpush1.bf16.msra.mxu0 %v9955_v39  ;;  %v10027_v39 = vld [vmem:[#allocation2 + $0xc60] ss:$8 sps:$4 sm:$0xff]  }
 0x1b9   :  { %3744 = vmatpush1.bf16.msra.mxu1 %v9958_v40  ;;  %3704 = vmatprep.subr.bf16.mxu0 %v9963_v41  ;;  %v10030_v40 = vld [vmem:[#allocation2 + $0xd60] ss:$8 sps:$4 sm:$0xff]  }
 0x1ba   :  { %3745 = vmatprep.subr.bf16.mxu1 %v9966_v42 }
 0x1bc   :  { %3705 = vmatpush1.bf16.msra.mxu0 %v9961_v43  ;;  %v10035_v43 = vld [vmem:[#allocation2 + $0xc54] ss:$8 sps:$4 sm:$0xff]  }
 0x1bd   :  { %3746 = vmatpush1.bf16.msra.mxu1 %v9964_v44  ;;  %3706 = vmatprep.subr.bf16.mxu0 %v9969_v45  ;;  %v10038_v44 = vld [vmem:[#allocation2 + $0xd54] ss:$8 sps:$4 sm:$0xff]  }
 0x1be   :  { %3747 = vmatprep.subr.bf16.mxu1 %v9972_v46 }
 0x1c0   :  { %3707 = vmatpush1.bf16.msra.mxu0 %v9967_v47 }
 0x1c1   :  { %3748 = vmatpush1.bf16.msra.mxu1 %v9970_v48  ;;  %3708 = vmatprep.subr.bf16.mxu0 %v9975_v49 }
 0x1c2   :  { %3749 = vmatprep.subr.bf16.mxu1 %v9978_v50  ;;  %v10036_v50 = vld [vmem:[#allocation2 + $0xd50] ss:$8 sps:$4 sm:$0xff]  }
 0x1c4   :  { %3709 = vmatpush2.bf16.msra.mxu0 %v9973_v51 }
 0x1c5   :  { %3750 = vmatpush2.bf16.msra.mxu1 %v9976_v52  ;;  %3710 = vmatprep.subr.bf16.mxu0 %v9981_v53  ;;  %v10041_v53 = vld [vmem:[#allocation2 + $0xc44] ss:$8 sps:$4 sm:$0xff]  }
 0x1c6   :  { %3751 = vmatprep.subr.bf16.mxu1 %v9984_v54  ;;  %v10044_v54 = vld [vmem:[#allocation2 + $0xd44] ss:$8 sps:$4 sm:$0xff]  }
 0x1c8   :  { %3711 = vmatpush2.bf16.msra.mxu0 %v9979_v55  ;;  %v10039_v55 = vld [vmem:[#allocation2 + $0xc40] ss:$8 sps:$4 sm:$0xff]  }
 0x1c9   :  { %3752 = vmatpush2.bf16.msra.mxu1 %v9982_v56  ;;  %3712 = vmatprep.subr.bf16.mxu0 %v9987_v57  ;;  %v10047_v56 = vld [vmem:[#allocation2 + $0xc34] ss:$8 sps:$4 sm:$0xff]  }
 0x1ca   :  { %3753 = vmatprep.subr.bf16.mxu1 %v9990_v59  ;;  %v10050_v57 = vld [vmem:[#allocation2 + $0xd34] ss:$8 sps:$4 sm:$0xff]   ;;  %v10045_v59 = vld [vmem:[#allocation2 + $0xc30] ss:$8 sps:$4 sm:$0xff]  }
 0x1cc   :  { %3713 = vmatpush2.bf16.msra.mxu0 %v9985_v60  ;;  %v10048_v60 = vld [vmem:[#allocation2 + $0xd30] ss:$8 sps:$4 sm:$0xff]  }
 0x1cd   :  { %3754 = vmatpush2.bf16.msra.mxu1 %v9988_v61  ;;  %3714 = vmatprep.subr.bf16.mxu0 %v9993_v62  ;;  %v10053_v61 = vld [vmem:[#allocation2 + $0xc24] ss:$8 sps:$4 sm:$0xff]  }
 0x1ce   :  { %3755 = vmatprep.subr.bf16.mxu1 %v9996_v0  ;;  %v10056_v62 = vld [vmem:[#allocation2 + $0xd24] ss:$8 sps:$4 sm:$0xff]   ;;  %v10051_v0 = vld [vmem:[#allocation2 + $0xc20] ss:$8 sps:$4 sm:$0xff]  }
 0x1d0   :  { %3715 = vmatpush2.bf16.msra.mxu0 %v9991_v1  ;;  %v10054_v1 = vld [vmem:[#allocation2 + $0xd20] ss:$8 sps:$4 sm:$0xff]  }
 0x1d1   :  { %3756 = vmatpush2.bf16.msra.mxu1 %v9994_v2  ;;  %3716 = vmatprep.subr.bf16.mxu0 %v9999_v3  ;;  %v10059_v2 = vld [vmem:[#allocation2 + $0xc14] ss:$8 sps:$4 sm:$0xff]  }
 0x1d2   :  { %3757 = vmatprep.subr.bf16.mxu1 %v10002_v4  ;;  %v10062_v3 = vld [vmem:[#allocation2 + $0xd14] ss:$8 sps:$4 sm:$0xff]   ;;  %v10057_v4 = vld [vmem:[#allocation2 + $0xc10] ss:$8 sps:$4 sm:$0xff]  }
 0x1d4   :  { %3717 = vmatpush2.bf16.msra.mxu0 %v9997_v5  ;;  %v10060_v5 = vld [vmem:[#allocation2 + $0xd10] ss:$8 sps:$4 sm:$0xff]  }
 0x1d5   :  { %3758 = vmatpush2.bf16.msra.mxu1 %v10000_v6  ;;  %3718 = vmatprep.subr.bf16.mxu0 %v10005_v7  ;;  %v10065_v6 = vld [vmem:[#allocation2 + $0xc04] ss:$8 sps:$4 sm:$0xff]  }
 0x1d6   :  { %3759 = vmatprep.subr.bf16.mxu1 %v10008_v8  ;;  %v10068_v7 = vld [vmem:[#allocation2 + $0xd04] ss:$8 sps:$4 sm:$0xff]   ;;  %v10063_v8 = vld [vmem:[#allocation2 + $0xc00] ss:$8 sps:$4 sm:$0xff]  }
 0x1d8   :  { %3719 = vmatpush2.bf16.msra.mxu0 %v10003_v9  ;;  %v10066_v9 = vld [vmem:[#allocation2 + $0xd00] ss:$8 sps:$4 sm:$0xff]  }
 0x1d9   :  { %3760 = vmatpush2.bf16.msra.mxu1 %v10006_v10  ;;  %3720 = vmatprep.subr.bf16.mxu0 %v10011_v11  ;;  %v10071_v10 = vld [vmem:[#allocation2 + $0xcf4] ss:$8 sps:$4 sm:$0xff]  }
 0x1da   :  { %3761 = vmatprep.subr.bf16.mxu1 %v10014_v12  ;;  %v10074_v11 = vld [vmem:[#allocation2 + $0xdf4] ss:$8 sps:$4 sm:$0xff]   ;;  %v10069_v12 = vld [vmem:[#allocation2 + $0xcf0] ss:$8 sps:$4 sm:$0xff]  }
 0x1dc   :  { %3721 = vmatpush2.bf16.msra.mxu0 %v10009_v13  ;;  %v10072_v13 = vld [vmem:[#allocation2 + $0xdf0] ss:$8 sps:$4 sm:$0xff]  }
 0x1dd   :  { %3762 = vmatpush2.bf16.msra.mxu1 %v10012_v14  ;;  %3722 = vmatprep.subr.bf16.mxu0 %v10017_v15  ;;  %v10077_v14 = vld [vmem:[#allocation2 + $0xce4] ss:$8 sps:$4 sm:$0xff]  }
 0x1de   :  { %3763 = vmatprep.subr.bf16.mxu1 %v10020_v16  ;;  %v10080_v15 = vld [vmem:[#allocation2 + $0xde4] ss:$8 sps:$4 sm:$0xff]   ;;  %v10075_v16 = vld [vmem:[#allocation2 + $0xce0] ss:$8 sps:$4 sm:$0xff]  }
 0x1e0   :  { %3723 = vmatpush2.bf16.msra.mxu0 %v10015_v17  ;;  %v10078_v17 = vld [vmem:[#allocation2 + $0xde0] ss:$8 sps:$4 sm:$0xff]  }
 0x1e1   :  { %3764 = vmatpush2.bf16.msra.mxu1 %v10018_v18  ;;  %3774 = vmatprep.subr.bf16.mxu0 %v10023_v22  ;;  %v10083_v18 = vld [vmem:[#allocation2 + $0xcd4] ss:$8 sps:$4 sm:$0xff]   ;;  %v10084_v22 = vld [vmem:[#allocation2 + $0xdd0] ss:$8 sps:$4 sm:$0xff]  }
 0x1e2   :  { %3815 = vmatprep.subr.bf16.mxu1 %v10026_v23  ;;  %v10089_v23 = vld [vmem:[#allocation2 + $0xcc4] ss:$8 sps:$4 sm:$0xff]  }
 0x1e3   :  { %v3480_v35 = vpop.f32.mrf.mxu0  ;;  %3725 = vmatmul.mubr.bf16.vlgmr.msra.gmra.mxu0 %v186_v24  ;;  %v10092_v24 = vld [vmem:[#allocation2 + $0xdc4] ss:$8 sps:$4 sm:$0xff]  }
 0x1e4   :  { %v3521_v36 = vpop.f32.mrf.mxu1  ;;  %3766 = vmatmul.mubr.bf16.vlgmr.msra.gmra.mxu1 %v188_v58  ;;  %v3481_v38 = vadd.f32 %v3480_v35, %v10599_v19  ;;  %3775 = vmatpush1.bf16.msra.mxu0 %v10021_v29  ;;  %v10033_v19 = vld [vmem:[#allocation2 + $0xc50] ss:$8 sps:$4 sm:$0xff]   ;;  %v10087_v58 = vld [vmem:[#allocation2 + $0xcc0] ss:$8 sps:$4 sm:$0xff]   ;;  %v10098_v29 = vld [vmem:[#allocation2 + $0xdb4] ss:$8 sps:$4 sm:$0xff]  }
 0x1e5   :  { %3816 = vmatpush1.bf16.msra.mxu1 %v10024_v30  ;;  %v3482_v41 = vpop.f32.mrf.mxu0  ;;  %3776 = vmatprep.subr.bf16.mxu0 %v10029_v63  ;;  %v10093_v30 = vld [vmem:[#allocation2 + $0xcb0] ss:$8 sps:$4 sm:$0xff]   ;;  %v10102_v35 = vld [vmem:[#allocation2 + $0xda0] ss:$8 sps:$4 sm:$0xff]  }
 0x1e6   :  { %v3523_v42 = vpop.f32.mrf.mxu1  ;;  %3817 = vmatprep.subr.bf16.mxu1 %v10032_v31  ;;  %v10617_v45 = vadd.f32 %v3521_v36, %v3481_v38  ;;  %v3483_v46 = vadd.f32 %v3482_v41, %v10602_v26  ;;  %3806 = vmatprep.mubr.bf16.mxu0 %v191_v33  ;;  %v10042_v26 = vld [vmem:[#allocation2 + $0xd40] ss:$8 sps:$4 sm:$0xff]   ;;  %v10096_v63 = vld [vmem:[#allocation2 + $0xdb0] ss:$8 sps:$4 sm:$0xff]   ;;  %v10101_v31 = vld [vmem:[#allocation2 + $0xca4] ss:$8 sps:$4 sm:$0xff]  }
 0x1e7   :  { %3847 = vmatprep.mubr.bf16.mxu1 %v193_v34  ;;  %v3484_v47 = vpop.f32.mrf.mxu0  ;;  %v10104_v33 = vld [vmem:[#allocation2 + $0xda4] ss:$8 sps:$4 sm:$0xff]   ;;  %v10099_v34 = vld [vmem:[#allocation2 + $0xca0] ss:$8 sps:$4 sm:$0xff]   ;;  %v10107_v36 = vld [vmem:[#allocation2 + $0xc94] ss:$8 sps:$4 sm:$0xff]  }
 0x1e8   :  { %v3525_v48 = vpop.f32.mrf.mxu1  ;;  %v10620_v49 = vadd.f32 %v3523_v42, %v3483_v46  ;;  %3777 = vmatpush1.bf16.msra.mxu0 %v10027_v39  ;;  %v10110_v38 = vld [vmem:[#allocation2 + $0xd94] ss:$8 sps:$4 sm:$0xff]   ;;  %v10105_v39 = vld [vmem:[#allocation2 + $0xc90] ss:$8 sps:$4 sm:$0xff]   ;;  %v10113_v41 = vld [vmem:[#allocation2 + $0xc84] ss:$8 sps:$4 sm:$0xff]  }
 0x1e9   :  { %3818 = vmatpush1.bf16.msra.mxu1 %v10030_v40  ;;  %v3485_v51 = vpop.f32.mrf.mxu0  ;;  %3778 = vmatprep.subr.bf16.mxu0 %v10035_v43  ;;  %v10108_v40 = vld [vmem:[#allocation2 + $0xd90] ss:$8 sps:$4 sm:$0xff]   ;;  %v10116_v42 = vld [vmem:[#allocation2 + $0xd84] ss:$8 sps:$4 sm:$0xff]   ;;  %v10111_v43 = vld [vmem:[#allocation2 + $0xc80] ss:$8 sps:$4 sm:$0xff]  }
 0x1ea   :  { %v3526_v52 = vpop.f32.mrf.mxu1  ;;  %3819 = vmatprep.subr.bf16.mxu1 %v10038_v44  ;;  %v10114_v44 = vld [vmem:[#allocation2 + $0xd80] ss:$8 sps:$4 sm:$0xff]   ;;  %v160_v47 = vld [vmem:[%s10815_s0 + $0xd0] sm:$0xff] }
 0x1eb   :  { %v158_v46 = vld [vmem:[%s10815_s0 + $0xc0] sm:$0xff]  ;;  %v10119_v48 = vld [vmem:[#allocation2 + $0xe74] ss:$8 sps:$4 sm:$0xff]   ;;  %v192_v51 = vpack.c.bf16 %v160_v47, %v160_v47  ;;  %v163_v52 = vld [vmem:[%s10815_s0 + $0xe8] sm:$0xff] }
 0x1ec   :  { %3779 = vmatpush1.bf16.msra.mxu0 %v10033_v19  ;;  %v10122_v19 = vld [vmem:[#allocation2 + $0xf74] ss:$8 sps:$4 sm:$0xff]   ;;  %v10177_v47 = vld [vmem:[#allocation2 + $0xed0] ss:$8 sps:$4 sm:$0xff]  }
 0x1ed   :  { %3820 = vmatpush1.bf16.msra.mxu1 %v10036_v50  ;;  %3780 = vmatprep.subr.bf16.mxu0 %v10041_v53  ;;  %v190_v50 = vpack.c.bf16 %v158_v46, %v158_v46  ;;  %v165_v53 = vld [vmem:[%s10815_s0 + $0xf8] sm:$0xff] }
 0x1ee   :  { %3821 = vmatprep.subr.bf16.mxu1 %v10044_v54  ;;  %v10117_v54 = vld [vmem:[#allocation2 + $0xe70] ss:$8 sps:$4 sm:$0xff]   ;;  %v10182_v46 = vld [vmem:[#allocation2 + $0xfd4] ss:$8 sps:$4 sm:$0xff]  }
 0x1f0   :  { %3781 = vmatpush1.bf16.msra.mxu0 %v10039_v55  ;;  %v10120_v55 = vld [vmem:[#allocation2 + $0xf70] ss:$8 sps:$4 sm:$0xff]  }
 0x1f1   :  { %3822 = vmatpush1.bf16.msra.mxu1 %v10042_v26  ;;  %3782 = vmatprep.subr.bf16.mxu0 %v10047_v56  ;;  %v10125_v26 = vld [vmem:[#allocation2 + $0xe64] ss:$8 sps:$4 sm:$0xff]  }
 0x1f2   :  { %3823 = vmatprep.subr.bf16.mxu1 %v10050_v57  ;;  %v10128_v56 = vld [vmem:[#allocation2 + $0xf64] ss:$8 sps:$4 sm:$0xff]   ;;  %v195_v57 = vpack.c.bf16 %v163_v52, %v163_v52  ;;  %v10186_v52 = vld [vmem:[#allocation2 + $0xfc0] ss:$8 sps:$4 sm:$0xff]  }
 0x1f4   :  { %3783 = vmatpush1.bf16.msra.mxu0 %v10045_v59  ;;  %v197_v59 = vpack.c.bf16 %v165_v53, %v165_v53  ;;  %v10191_v53 = vld [vmem:[#allocation2 + $0xeb4] ss:$8 sps:$4 sm:$0xff]  }
 0x1f5   :  { %3824 = vmatpush1.bf16.msra.mxu1 %v10048_v60  ;;  %3784 = vmatprep.subr.bf16.mxu0 %v10053_v61 }
 0x1f6   :  { %3825 = vmatprep.subr.bf16.mxu1 %v10056_v62 }
 0x1f8   :  { %3785 = vmatpush1.bf16.msra.mxu0 %v10051_v0  ;;  %v10123_v0 = vld [vmem:[#allocation2 + $0xe60] ss:$8 sps:$4 sm:$0xff]  }
 0x1f9   :  { %3826 = vmatpush1.bf16.msra.mxu1 %v10054_v1  ;;  %3786 = vmatprep.subr.bf16.mxu0 %v10059_v2  ;;  %v10126_v1 = vld [vmem:[#allocation2 + $0xf60] ss:$8 sps:$4 sm:$0xff]  }
 0x1fa   :  { %3827 = vmatprep.subr.bf16.mxu1 %v10062_v3 }
 0x1fc   :  { %3787 = vmatpush1.bf16.msra.mxu0 %v10057_v4  ;;  %v10131_v4 = vld [vmem:[#allocation2 + $0xe54] ss:$8 sps:$4 sm:$0xff]  }
 0x1fd   :  { %3828 = vmatpush1.bf16.msra.mxu1 %v10060_v5  ;;  %3788 = vmatprep.subr.bf16.mxu0 %v10065_v6  ;;  %v10134_v5 = vld [vmem:[#allocation2 + $0xf54] ss:$8 sps:$4 sm:$0xff]  }
 0x1fe   :  { %3829 = vmatprep.subr.bf16.mxu1 %v10068_v7 }
 0x200   :  { %3789 = vmatpush1.bf16.msra.mxu0 %v10063_v8 }
 0x201   :  { %3830 = vmatpush1.bf16.msra.mxu1 %v10066_v9  ;;  %3790 = vmatprep.subr.bf16.mxu0 %v10071_v10 }
 0x202   :  { %3831 = vmatprep.subr.bf16.mxu1 %v10074_v11  ;;  %v10132_v11 = vld [vmem:[#allocation2 + $0xf50] ss:$8 sps:$4 sm:$0xff]  }
 0x204   :  { %3791 = vmatpush2.bf16.msra.mxu0 %v10069_v12 }
 0x205   :  { %3832 = vmatpush2.bf16.msra.mxu1 %v10072_v13  ;;  %3792 = vmatprep.subr.bf16.mxu0 %v10077_v14  ;;  %v10137_v14 = vld [vmem:[#allocation2 + $0xe44] ss:$8 sps:$4 sm:$0xff]  }
 0x206   :  { %3833 = vmatprep.subr.bf16.mxu1 %v10080_v15  ;;  %v10140_v15 = vld [vmem:[#allocation2 + $0xf44] ss:$8 sps:$4 sm:$0xff]  }
 0x208   :  { %3793 = vmatpush2.bf16.msra.mxu0 %v10075_v16  ;;  %v10135_v16 = vld [vmem:[#allocation2 + $0xe40] ss:$8 sps:$4 sm:$0xff]  }
 0x209   :  { %3834 = vmatpush2.bf16.msra.mxu1 %v10078_v17  ;;  %3794 = vmatprep.subr.bf16.mxu0 %v10083_v18  ;;  %v10143_v17 = vld [vmem:[#allocation2 + $0xe34] ss:$8 sps:$4 sm:$0xff]  }
 0x20a   :  { %3835 = vmatprep.subr.bf16.mxu1 %v10086_v20  ;;  %v10146_v18 = vld [vmem:[#allocation2 + $0xf34] ss:$8 sps:$4 sm:$0xff]   ;;  %v10141_v20 = vld [vmem:[#allocation2 + $0xe30] ss:$8 sps:$4 sm:$0xff]  }
 0x20c   :  { %3795 = vmatpush2.bf16.msra.mxu0 %v10081_v21  ;;  %v10144_v21 = vld [vmem:[#allocation2 + $0xf30] ss:$8 sps:$4 sm:$0xff]  }
 0x20d   :  { %3836 = vmatpush2.bf16.msra.mxu1 %v10084_v22  ;;  %3796 = vmatprep.subr.bf16.mxu0 %v10089_v23  ;;  %v10149_v22 = vld [vmem:[#allocation2 + $0xe24] ss:$8 sps:$4 sm:$0xff]  }
 0x20e   :  { %3837 = vmatprep.subr.bf16.mxu1 %v10092_v24  ;;  %v10152_v23 = vld [vmem:[#allocation2 + $0xf24] ss:$8 sps:$4 sm:$0xff]   ;;  %v10147_v24 = vld [vmem:[#allocation2 + $0xe20] ss:$8 sps:$4 sm:$0xff]  }
 0x210   :  { %3797 = vmatpush2.bf16.msra.mxu0 %v10087_v58  ;;  %v10150_v58 = vld [vmem:[#allocation2 + $0xf20] ss:$8 sps:$4 sm:$0xff]  }
 0x211   :  { %3838 = vmatpush2.bf16.msra.mxu1 %v10090_v27  ;;  %3798 = vmatprep.subr.bf16.mxu0 %v10095_v28  ;;  %v10155_v27 = vld [vmem:[#allocation2 + $0xe14] ss:$8 sps:$4 sm:$0xff]  }
 0x212   :  { %3839 = vmatprep.subr.bf16.mxu1 %v10098_v29  ;;  %v10158_v28 = vld [vmem:[#allocation2 + $0xf14] ss:$8 sps:$4 sm:$0xff]   ;;  %v10153_v29 = vld [vmem:[#allocation2 + $0xe10] ss:$8 sps:$4 sm:$0xff]  }
 0x214   :  { %3799 = vmatpush2.bf16.msra.mxu0 %v10093_v30  ;;  %v10156_v30 = vld [vmem:[#allocation2 + $0xf10] ss:$8 sps:$4 sm:$0xff]  }
 0x215   :  { %3840 = vmatpush2.bf16.msra.mxu1 %v10096_v63  ;;  %3800 = vmatprep.subr.bf16.mxu0 %v10101_v31  ;;  %v10161_v63 = vld [vmem:[#allocation2 + $0xe04] ss:$8 sps:$4 sm:$0xff]  }
 0x216   :  { %3841 = vmatprep.subr.bf16.mxu1 %v10104_v33  ;;  %v10164_v31 = vld [vmem:[#allocation2 + $0xf04] ss:$8 sps:$4 sm:$0xff]   ;;  %v10159_v33 = vld [vmem:[#allocation2 + $0xe00] ss:$8 sps:$4 sm:$0xff]  }
 0x218   :  { %3801 = vmatpush2.bf16.msra.mxu0 %v10099_v34  ;;  %v10162_v34 = vld [vmem:[#allocation2 + $0xf00] ss:$8 sps:$4 sm:$0xff]  }
 0x219   :  { %3842 = vmatpush2.bf16.msra.mxu1 %v10102_v35  ;;  %3802 = vmatprep.subr.bf16.mxu0 %v10107_v36  ;;  %v10167_v35 = vld [vmem:[#allocation2 + $0xef4] ss:$8 sps:$4 sm:$0xff]  }
 0x21a   :  { %3843 = vmatprep.subr.bf16.mxu1 %v10110_v38  ;;  %v10170_v36 = vld [vmem:[#allocation2 + $0xff4] ss:$8 sps:$4 sm:$0xff]   ;;  %v10165_v38 = vld [vmem:[#allocation2 + $0xef0] ss:$8 sps:$4 sm:$0xff]  }
 0x21c   :  { %3803 = vmatpush2.bf16.msra.mxu0 %v10105_v39  ;;  %v10168_v39 = vld [vmem:[#allocation2 + $0xff0] ss:$8 sps:$4 sm:$0xff]  }
 0x21d   :  { %3844 = vmatpush2.bf16.msra.mxu1 %v10108_v40  ;;  %3804 = vmatprep.subr.bf16.mxu0 %v10113_v41  ;;  %v10173_v40 = vld [vmem:[#allocation2 + $0xee4] ss:$8 sps:$4 sm:$0xff]  }
 0x21e   :  { %3845 = vmatprep.subr.bf16.mxu1 %v10116_v42  ;;  %v10176_v41 = vld [vmem:[#allocation2 + $0xfe4] ss:$8 sps:$4 sm:$0xff]   ;;  %v10171_v42 = vld [vmem:[#allocation2 + $0xee0] ss:$8 sps:$4 sm:$0xff]  }
 0x220   :  { %3805 = vmatpush2.bf16.msra.mxu0 %v10111_v43  ;;  %v10174_v43 = vld [vmem:[#allocation2 + $0xfe0] ss:$8 sps:$4 sm:$0xff]  }
 0x221   :  { %3846 = vmatpush2.bf16.msra.mxu1 %v10114_v44  ;;  %3856 = vmatprep.subr.bf16.mxu0 %v10119_v48  ;;  %v10179_v44 = vld [vmem:[#allocation2 + $0xed4] ss:$8 sps:$4 sm:$0xff]   ;;  %v10180_v48 = vld [vmem:[#allocation2 + $0xfd0] ss:$8 sps:$4 sm:$0xff]  }
 0x222   :  { %3897 = vmatprep.subr.bf16.mxu1 %v10122_v19  ;;  %v10185_v19 = vld [vmem:[#allocation2 + $0xec4] ss:$8 sps:$4 sm:$0xff]  }
 0x223   :  { %v3562_v60 = vpop.f32.mrf.mxu0  ;;  %3807 = vmatmul.mubr.bf16.vlgmr.msra.gmra.mxu0 %v190_v50  ;;  %v10188_v50 = vld [vmem:[#allocation2 + $0xfc4] ss:$8 sps:$4 sm:$0xff]  }
 0x224   :  { %v3603_v61 = vpop.f32.mrf.mxu1  ;;  %3848 = vmatmul.mubr.bf16.vlgmr.msra.gmra.mxu1 %v192_v51  ;;  %v3563_v62 = vadd.f32 %v3562_v60, %v10617_v45  ;;  %3857 = vmatpush1.bf16.msra.mxu0 %v10117_v54  ;;  %v10129_v45 = vld [vmem:[#allocation2 + $0xe50] ss:$8 sps:$4 sm:$0xff]   ;;  %v10183_v51 = vld [vmem:[#allocation2 + $0xec0] ss:$8 sps:$4 sm:$0xff]   ;;  %v10194_v54 = vld [vmem:[#allocation2 + $0xfb4] ss:$8 sps:$4 sm:$0xff]  }
 0x225   :  { %3898 = vmatpush1.bf16.msra.mxu1 %v10120_v55  ;;  %v3564_v2 = vpop.f32.mrf.mxu0  ;;  %3858 = vmatprep.subr.bf16.mxu0 %v10125_v26  ;;  %v10189_v55 = vld [vmem:[#allocation2 + $0xeb0] ss:$8 sps:$4 sm:$0xff]   ;;  %v10198_v60 = vld [vmem:[#allocation2 + $0xfa0] ss:$8 sps:$4 sm:$0xff]  }
 0x226   :  { %v3605_v3 = vpop.f32.mrf.mxu1  ;;  %3899 = vmatprep.subr.bf16.mxu1 %v10128_v56  ;;  %v10635_v6 = vadd.f32 %v3603_v61, %v3563_v62  ;;  %v3565_v7 = vadd.f32 %v3564_v2, %v10620_v49  ;;  %3888 = vmatprep.mubr.bf16.mxu0 %v195_v57  ;;  %v10138_v49 = vld [vmem:[#allocation2 + $0xf40] ss:$8 sps:$4 sm:$0xff]   ;;  %v10192_v26 = vld [vmem:[#allocation2 + $0xfb0] ss:$8 sps:$4 sm:$0xff]   ;;  %v10197_v56 = vld [vmem:[#allocation2 + $0xea4] ss:$8 sps:$4 sm:$0xff]  }
 0x227   :  { %3929 = vmatprep.mubr.bf16.mxu1 %v197_v59  ;;  %v3566_v8 = vpop.f32.mrf.mxu0  ;;  %v10200_v57 = vld [vmem:[#allocation2 + $0xfa4] ss:$8 sps:$4 sm:$0xff]   ;;  %v10195_v59 = vld [vmem:[#allocation2 + $0xea0] ss:$8 sps:$4 sm:$0xff]   ;;  %v10203_v61 = vld [vmem:[#allocation2 + $0xe94] ss:$8 sps:$4 sm:$0xff]  }
 0x228   :  { %v3607_v9 = vpop.f32.mrf.mxu1  ;;  %v10638_v10 = vadd.f32 %v3605_v3, %v3565_v7  ;;  %3859 = vmatpush1.bf16.msra.mxu0 %v10123_v0  ;;  %v10206_v62 = vld [vmem:[#allocation2 + $0xf94] ss:$8 sps:$4 sm:$0xff]   ;;  %v10201_v0 = vld [vmem:[#allocation2 + $0xe90] ss:$8 sps:$4 sm:$0xff]   ;;  %v10209_v2 = vld [vmem:[#allocation2 + $0xe84] ss:$8 sps:$4 sm:$0xff]  }
 0x229   :  { %3900 = vmatpush1.bf16.msra.mxu1 %v10126_v1  ;;  %v3567_v12 = vpop.f32.mrf.mxu0  ;;  %3860 = vmatprep.subr.bf16.mxu0 %v10131_v4  ;;  %v10204_v1 = vld [vmem:[#allocation2 + $0xf90] ss:$8 sps:$4 sm:$0xff]   ;;  %v10212_v3 = vld [vmem:[#allocation2 + $0xf84] ss:$8 sps:$4 sm:$0xff]   ;;  %v10207_v4 = vld [vmem:[#allocation2 + $0xe80] ss:$8 sps:$4 sm:$0xff]  }
 0x22a   :  { %v3608_v13 = vpop.f32.mrf.mxu1  ;;  %3901 = vmatprep.subr.bf16.mxu1 %v10134_v5  ;;  %v10210_v5 = vld [vmem:[#allocation2 + $0xf80] ss:$8 sps:$4 sm:$0xff]   ;;  %v164_v8 = vld [vmem:[%s10815_s0 + $0xf0] sm:$0xff] }
 0x22b   :  { %v162_v7 = vld [vmem:[%s10815_s0 + $0xe0] sm:$0xff] }
 0x22c   :  { %3861 = vmatpush1.bf16.msra.mxu0 %v10129_v45  ;;  %v194_v9 = vpack.c.bf16 %v162_v7, %v162_v7  ;;  %v196_v45 = vpack.c.bf16 %v164_v8, %v164_v8 }
 0x22d   :  { %3902 = vmatpush1.bf16.msra.mxu1 %v10132_v11  ;;  %3862 = vmatprep.subr.bf16.mxu0 %v10137_v14 }
 0x22e   :  { %3903 = vmatprep.subr.bf16.mxu1 %v10140_v15 }
 0x230   :  { %3863 = vmatpush1.bf16.msra.mxu0 %v10135_v16 }
 0x231   :  { %3904 = vmatpush1.bf16.msra.mxu1 %v10138_v49  ;;  %3864 = vmatprep.subr.bf16.mxu0 %v10143_v17 }
 0x232   :  { %3905 = vmatprep.subr.bf16.mxu1 %v10146_v18 }
 0x234   :  { %3865 = vmatpush1.bf16.msra.mxu0 %v10141_v20 }
 0x235   :  { %3906 = vmatpush1.bf16.msra.mxu1 %v10144_v21  ;;  %3866 = vmatprep.subr.bf16.mxu0 %v10149_v22 }
 0x236   :  { %3907 = vmatprep.subr.bf16.mxu1 %v10152_v23  ;;  %v10213_v23 = vld [vmem:[#allocation6 + $0x78] sm:$0xff]  }
 0x238   :  { %3867 = vmatpush1.bf16.msra.mxu0 %v10147_v24  ;;  %v10214_v24 = vld [vmem:[#allocation6 + $0x38] sm:$0xff]  }
 0x239   :  { %3908 = vmatpush1.bf16.msra.mxu1 %v10150_v58  ;;  %3868 = vmatprep.subr.bf16.mxu0 %v10155_v27  ;;  %v10215_v58 = vld [vmem:[#allocation6 + $0x70] sm:$0xff]  }
 0x23a   :  { %3909 = vmatprep.subr.bf16.mxu1 %v10158_v28  ;;  %v10216_v27 = vld [vmem:[#allocation6 + $0x30] sm:$0xff]   ;;  %v10217_v28 = vld [vmem:[#allocation6 + $0x68] sm:$0xff]  }
 0x23c   :  { %3869 = vmatpush1.bf16.msra.mxu0 %v10153_v29  ;;  %v10219_v29 = vld [vmem:[#allocation6 + $0x60] sm:$0xff]  }
 0x23d   :  { %3910 = vmatpush1.bf16.msra.mxu1 %v10156_v30  ;;  %3870 = vmatprep.subr.bf16.mxu0 %v10161_v63  ;;  %v10220_v30 = vld [vmem:[#allocation6 + $0x20] sm:$0xff]   ;;  %v10222_v63 = vld [vmem:[#allocation6 + $0x18] sm:$0xff]  }
 0x23e   :  { %3911 = vmatprep.subr.bf16.mxu1 %v10164_v31  ;;  %v10223_v31 = vld [vmem:[#allocation6 + $0x50] sm:$0xff]  }
 0x240   :  { %3871 = vmatpush1.bf16.msra.mxu0 %v10159_v33  ;;  %v10224_v33 = vld [vmem:[#allocation6 + $0x10] sm:$0xff]  }
 0x241   :  { %3912 = vmatpush1.bf16.msra.mxu1 %v10162_v34  ;;  %3872 = vmatprep.subr.bf16.mxu0 %v10167_v35 }
 0x242   :  { %3913 = vmatprep.subr.bf16.mxu1 %v10170_v36 }
 0x244   :  { %3873 = vmatpush2.bf16.msra.mxu0 %v10165_v38 }
 0x245   :  { %3914 = vmatpush2.bf16.msra.mxu1 %v10168_v39  ;;  %3874 = vmatprep.subr.bf16.mxu0 %v10173_v40  ;;  %v10225_v40 = vld [vmem:[#allocation6 + $0x48] sm:$0xff]  }
 0x246   :  { %3915 = vmatprep.subr.bf16.mxu1 %v10176_v41 }
 0x248   :  { %3875 = vmatpush2.bf16.msra.mxu0 %v10171_v42 }
 0x249   :  { %3916 = vmatpush2.bf16.msra.mxu1 %v10174_v43  ;;  %3876 = vmatprep.subr.bf16.mxu0 %v10179_v44  ;;  %v10226_v43 = vld [vmem:[#allocation6 + $0x8] sm:$0xff]  }
 0x24a   :  { %3917 = vmatprep.subr.bf16.mxu1 %v10182_v46 }
 0x24c   :  { %3877 = vmatpush2.bf16.msra.mxu0 %v10177_v47 }
 0x24d   :  { %3918 = vmatpush2.bf16.msra.mxu1 %v10180_v48  ;;  %3878 = vmatprep.subr.bf16.mxu0 %v10185_v19 }
 0x24e   :  { %3919 = vmatprep.subr.bf16.mxu1 %v10188_v50  ;;  %v10227_v50 = vld [vmem:[#allocation6 + $0x40] sm:$0xff]  }
 0x250   :  { %3879 = vmatpush2.bf16.msra.mxu0 %v10183_v51  ;;  %v10228_v51 = vld [vmem:[#allocation6] sm:$0xff]  }
 0x251   :  { %3920 = vmatpush2.bf16.msra.mxu1 %v10186_v52  ;;  %3880 = vmatprep.subr.bf16.mxu0 %v10191_v53  ;;  %v10229_v52 = vld [vmem:[#allocation9 + $0x70] ss:$8 sps:$4 sm:$0xff]   ;;  %v10231_v53 = vld [vmem:[#allocation9 + $0x74] ss:$8 sps:$4 sm:$0xff]  }
 0x252   :  { %3921 = vmatprep.subr.bf16.mxu1 %v10194_v54  ;;  %v10234_v54 = vld [vmem:[#allocation9 + $0x64] ss:$8 sps:$4 sm:$0xff]  }
 0x254   :  { %3881 = vmatpush2.bf16.msra.mxu0 %v10189_v55  ;;  %v10232_v55 = vld [vmem:[#allocation9 + $0x60] ss:$8 sps:$4 sm:$0xff]  }
 0x255   :  { %3922 = vmatpush2.bf16.msra.mxu1 %v10192_v26  ;;  %3882 = vmatprep.subr.bf16.mxu0 %v10197_v56  ;;  %v10237_v26 = vld [vmem:[#allocation9 + $0x54] ss:$8 sps:$4 sm:$0xff]   ;;  %v10235_v56 = vld [vmem:[#allocation9 + $0x50] ss:$8 sps:$4 sm:$0xff]  }
 0x256   :  { %3923 = vmatprep.subr.bf16.mxu1 %v10200_v57  ;;  %v10240_v57 = vld [vmem:[#allocation9 + $0x44] ss:$8 sps:$4 sm:$0xff]  }
 0x258   :  { %3883 = vmatpush2.bf16.msra.mxu0 %v10195_v59  ;;  %v10238_v59 = vld [vmem:[#allocation9 + $0x40] ss:$8 sps:$4 sm:$0xff]  }
 0x259   :  { %3924 = vmatpush2.bf16.msra.mxu1 %v10198_v60  ;;  %3884 = vmatprep.subr.bf16.mxu0 %v10203_v61  ;;  %v10243_v60 = vld [vmem:[#allocation9 + $0x34] ss:$8 sps:$4 sm:$0xff]   ;;  %v10241_v61 = vld [vmem:[#allocation9 + $0x30] ss:$8 sps:$4 sm:$0xff]  }
 0x25a   :  { %3925 = vmatprep.subr.bf16.mxu1 %v10206_v62  ;;  %v10246_v62 = vld [vmem:[#allocation9 + $0x24] ss:$8 sps:$4 sm:$0xff]  }
 0x25c   :  { %3885 = vmatpush2.bf16.msra.mxu0 %v10201_v0  ;;  %v10244_v0 = vld [vmem:[#allocation9 + $0x20] ss:$8 sps:$4 sm:$0xff]  }
 0x25d   :  { %3926 = vmatpush2.bf16.msra.mxu1 %v10204_v1  ;;  %3886 = vmatprep.subr.bf16.mxu0 %v10209_v2 }
 0x25e   :  { %3927 = vmatprep.subr.bf16.mxu1 %v10212_v3 }
 0x260   :  { %3887 = vmatpush2.bf16.msra.mxu0 %v10207_v4 }
 0x261   :  { %3928 = vmatpush2.bf16.msra.mxu1 %v10210_v5  ;;  %9409 = vmatprep.subr.bf16.mxu0 %v10213_v23 }
 0x262   :  { %4226 = vmatprep.subr.bf16.mxu1 %v10231_v53  ;;  %v4415_v53 = vld [vmem:[#allocation12 + $0x480] sm:$0xff] }
 0x263   :  { %v3644_v11 = vpop.f32.mrf.mxu0  ;;  %3889 = vmatmul.mubr.bf16.vlgmr.msra.gmra.mxu0 %v194_v9 }
 0x264   :  { %v3685_v12 = vpop.f32.mrf.mxu1  ;;  %3930 = vmatmul.mubr.bf16.vlgmr.msra.gmra.mxu1 %v196_v45  ;;  %v3645_v13 = vadd.f32 %v3644_v11, %v10635_v6  ;;  %9410 = vmatpush3.bf16.msra.mxu0 %v10214_v24  ;;  %v10218_v6 = vld [vmem:[#allocation6 + $0x28] sm:$0xff]  }
 0x265   :  { %v3646_v14 = vpop.f32.mrf.mxu0  ;;  %9411 = vmatprep.subr.bf16.mxu0 %v10215_v58  ;;  %4227 = vmatpush1.bf16.msra.mxu1 %v10229_v52  ;;  %v4399_v52 = vld [vmem:[#allocation12 + $0x400] sm:$0xff] }
 0x266   :  { %v3687_v15 = vpop.f32.mrf.mxu1  ;;  %v3686_v16 = vadd.f32 %v3685_v12, %v3645_v13  ;;  %v3647_v49 = vadd.f32 %v3646_v14, %v10638_v10  ;;  %v10221_v10 = vld [vmem:[#allocation6 + $0x58] sm:$0xff]   ;;  %4228 = vmatprep.subr.bf16.mxu1 %v10234_v54  ;;  %v8994_v54 = vcombine.high %v4399_v52, %v4415_v53 }
 0x267   :  { %v3648_v17 = vpop.f32.mrf.mxu0 }
 0x268   :  { %v3689_v18 = vpop.f32.mrf.mxu1  ;;  %v3688_v20 = vadd.f32 %v3687_v15, %v3647_v49  ;;  %9412 = vmatpush3.bf16.msra.mxu0 %v10216_v27 }
 0x269   :  { %v3649_v21 = vpop.f32.mrf.mxu0  ;;  %9413 = vmatprep.subr.bf16.mxu0 %v10217_v28  ;;  %4229 = vmatpush1.bf16.msra.mxu1 %v10232_v55  ;;  %v8993_v55 = vcombine.low %v4399_v52, %v4415_v53  ;;  %v4400_v53 = vld [vmem:[#allocation12 + $0x408] sm:$0xff] }
 0x26a   :  { %v3690_v22 = vpop.f32.mrf.mxu1  ;;  %4230 = vmatprep.subr.bf16.mxu1 %v10237_v26  ;;  %v4367_v26 = vld [vmem:[#allocation12 + $0x300] sm:$0xff] }
 0x26c   :  { %9414 = vmatpush3.bf16.msra.mxu0 %v10218_v6 }
 0x26d   :  { %9415 = vmatprep.subr.bf16.mxu0 %v10219_v29  ;;  %4231 = vmatpush1.bf16.msra.mxu1 %v10235_v56  ;;  %v4383_v56 = vld [vmem:[#allocation12 + $0x380] sm:$0xff] }
 0x26e   :  { %4232 = vmatprep.subr.bf16.mxu1 %v10240_v57  ;;  %v8962_v57 = vcombine.high %v4367_v26, %v4383_v56 }
 0x270   :  { %9416 = vmatpush3.bf16.msra.mxu0 %v10220_v30  ;;  %v10249_v30 = vld [vmem:[#allocation9 + $0x14] ss:$8 sps:$4 sm:$0xff]  }
 0x271   :  { %9417 = vmatprep.subr.bf16.mxu0 %v10221_v10  ;;  %4233 = vmatpush1.bf16.msra.mxu1 %v10238_v59  ;;  %v10247_v10 = vld [vmem:[#allocation9 + $0x10] ss:$8 sps:$4 sm:$0xff]   ;;  %v8961_v59 = vcombine.low %v4367_v26, %v4383_v56 }
 0x272   :  { %4234 = vmatprep.subr.bf16.mxu1 %v10243_v60  ;;  %v4335_v60 = vld [vmem:[#allocation12 + $0x200] sm:$0xff]  ;;  %v4368_v56 = vld [vmem:[#allocation12 + $0x308] sm:$0xff] }
 0x274   :  { %9418 = vmatpush3.bf16.msra.mxu0 %v10222_v63  ;;  %v10252_v63 = vld [vmem:[#allocation9 + $0x4] ss:$8 sps:$4 sm:$0xff]  }
 0x275   :  { %9419 = vmatprep.subr.bf16.mxu0 %v10223_v31  ;;  %4235 = vmatpush1.bf16.msra.mxu1 %v10241_v61  ;;  %v10250_v31 = vld [vmem:[#allocation9] ss:$8 sps:$4 sm:$0xff]  }
 0x276   :  { %4236 = vmatprep.subr.bf16.mxu1 %v10246_v62  ;;  %v4351_v61 = vld [vmem:[#allocation12 + $0x280] sm:$0xff] }
 0x277   :  { %v8930_v62 = vcombine.high %v4335_v60, %v4351_v61 }
 0x278   :  { %9420 = vmatpush3.bf16.msra.mxu0 %v10224_v33  ;;  %v10436_v33 = vmov 0  }
 0x279   :  { %9421 = vmatprep.subr.bf16.mxu0 %v10225_v40  ;;  %4237 = vmatpush1.bf16.msra.mxu1 %v10244_v0  ;;  %v10650_v40 = vld [vmem:[#allocation12 + $0x788] sm:$0xff]  ;;  %v8929_v0 = vcombine.low %v4335_v60, %v4351_v61 }
 0x27a   :  { %4238 = vmatprep.subr.bf16.mxu1 %v10249_v30  ;;  %4258 = vmatprep.mubr.bf16.mxu1 %v10436_v33  ;;  %v4591_v30 = vld [vmem:[#allocation12 + $0xa00] sm:$0xff]  ;;  %v4336_v61 = vld [vmem:[#allocation12 + $0x208] sm:$0xff] }
 0x27c   :  { %9422 = vmatpush3.bf16.msra.mxu0 %v10226_v43 }
 0x27d   :  { %9423 = vmatprep.subr.bf16.mxu0 %v10227_v50  ;;  %4239 = vmatpush1.bf16.msra.mxu1 %v10247_v10  ;;  %v4607_v10 = vld [vmem:[#allocation12 + $0xa80] sm:$0xff] }
 0x27e   :  { %4240 = vmatprep.subr.bf16.mxu1 %v10252_v63  ;;  %v9186_v63 = vcombine.high %v4591_v30, %v4607_v10 }
 0x280   :  { %9424 = vmatpush3.bf16.msra.mxu0 %v10228_v51 }
 0x281   :  { %4241 = vmatpush1.bf16.msra.mxu1 %v10250_v31  ;;  %v9185_v31 = vcombine.low %v4591_v30, %v4607_v10 }
 0x2a3   :  { %v3726_v34 = vpop.f32.mrf.mxu0 }
 0x2a4   :  { %v3767_v35 = vpop.f32.mrf.mxu1  ;;  %v3727_v36 = vadd.f32 %v3726_v34, %v3686_v16  ;;  %v4495_v34 = vld [vmem:[#allocation12 + $0x700] sm:$0xff] }
 0x2a5   :  { %v3728_v38 = vpop.f32.mrf.mxu0 }
 0x2a6   :  { %v3769_v39 = vpop.f32.mrf.mxu1  ;;  %v3768_v41 = vadd.f32 %v3767_v35, %v3727_v36  ;;  %v3729_v42 = vadd.f32 %v3728_v38, %v3688_v20  ;;  %v4511_v35 = vld [vmem:[#allocation12 + $0x780] sm:$0xff]  ;;  %v10648_v36 = vld [vmem:[#allocation12 + $0x708] sm:$0xff] }
 0x2a7   :  { %v3730_v44 = vpop.f32.mrf.mxu0  ;;  %v9089_v38 = vcombine.low %v4495_v34, %v4511_v35  ;;  %v9091_v43 = vcombine.low %v10648_v36, %v10650_v40 }
 0x2a8   :  { %v3771_v46 = vpop.f32.mrf.mxu1  ;;  %v3770_v47 = vadd.f32 %v3769_v39, %v3729_v42  ;;  %v9090_v39 = vcombine.high %v4495_v34, %v4511_v35  ;;  %v4479_v42 = vld [vmem:[#allocation12 + $0x680] sm:$0xff]  ;;  %v9092_v44 = vcombine.high %v10648_v36, %v10650_v40  ;;  %v8832_v34 = vld [vmem:[#allocation7] ss:$0 sm:$0xff] }
 0x2a9   :  { %v3731_v48 = vpop.f32.mrf.mxu0 }
 0x2aa   :  { %v3772_v19 = vpop.f32.mrf.mxu1  ;;  %7511 = vmatprep.subr.bf16.mxu0 %v9090_v39  ;;  %7552 = vmatprep.subr.bf16.mxu1 %v9092_v44  ;;  %v4431_v48 = vld [vmem:[#allocation12 + $0x500] sm:$0xff] }
 0x2ab   :  { %v4447_v19 = vld [vmem:[#allocation12 + $0x580] sm:$0xff] }
 0x2ac   :  { %v9026_v50 = vcombine.high %v4431_v48, %v4447_v19  ;;  %v9025_v51 = vcombine.low %v4431_v48, %v4447_v19  ;;  %v4432_v19 = vld [vmem:[#allocation12 + $0x508] sm:$0xff] }
 0x2e3   :  { %v3808_v1 = vpop.f32.mrf.mxu0 }
 0x2e4   :  { %v3849_v2 = vpop.f32.mrf.mxu1  ;;  %v3809_v3 = vadd.f32 %v3808_v1, %v3768_v41  ;;  %v4463_v41 = vld [vmem:[#allocation12 + $0x600] sm:$0xff] }
 0x2e5   :  { %v3810_v4 = vpop.f32.mrf.mxu0  ;;  %v9058_v46 = vcombine.high %v4463_v41, %v4479_v42  ;;  %v4303_v1 = vld [vmem:[#allocation12 + $0x100] sm:$0xff] }
 0x2e6   :  { %v3851_v5 = vpop.f32.mrf.mxu1  ;;  %v3850_v7 = vadd.f32 %v3849_v2, %v3809_v3  ;;  %v3811_v12 = vadd.f32 %v3810_v4, %v3770_v47  ;;  %v9057_v47 = vcombine.low %v4463_v41, %v4479_v42  ;;  %v4319_v2 = vld [vmem:[#allocation12 + $0x180] sm:$0xff]  ;;  %v4464_v41 = vld [vmem:[#allocation12 + $0x608] sm:$0xff] }
 0x2e7   :  { %v3812_v8 = vpop.f32.mrf.mxu0  ;;  %v8898_v3 = vcombine.high %v4303_v1, %v4319_v2  ;;  %v8897_v4 = vcombine.low %v4303_v1, %v4319_v2  ;;  %v4480_v42 = vld [vmem:[#allocation12 + $0x688] sm:$0xff] }
 0x2e8   :  { %v3853_v9 = vpop.f32.mrf.mxu1  ;;  %v3852_v15 = vadd.f32 %v3851_v5, %v3811_v12  ;;  %v4271_v5 = vld [vmem:[#allocation12] sm:$0xff]  ;;  %v9060_v48 = vcombine.high %v4464_v41, %v4480_v42 }
 0x2e9   :  { %v3813_v45 = vpop.f32.mrf.mxu0 }
 0x2ea   :  { %v3854_v11 = vpop.f32.mrf.mxu1  ;;  %v4751_v45 = vld [vmem:[#allocation12 + $0xf00] sm:$0xff] }
 0x2eb   :  { %v4767_v11 = vld [vmem:[#allocation12 + $0xf80] sm:$0xff] }
 0x2ec   :  { %v9346_v12 = vcombine.high %v4751_v45, %v4767_v11 }
 0x323   :  { %v3890_v13 = vpop.f32.mrf.mxu0 }
 0x324   :  { %v3931_v14 = vpop.f32.mrf.mxu1  ;;  %v3891_v16 = vadd.f32 %v3890_v13, %v3850_v7  ;;  %v4287_v7 = vld [vmem:[#allocation12 + $0x80] sm:$0xff]  ;;  %v9345_v13 = vcombine.low %v4751_v45, %v4767_v11 }
 0x325   :  { %v3892_v49 = vpop.f32.mrf.mxu0  ;;  %v8866_v8 = vcombine.high %v4271_v5, %v4287_v7  ;;  %v8865_v9 = vcombine.low %v4271_v5, %v4287_v7 }
 0x326   :  { %v3933_v17 = vpop.f32.mrf.mxu1  ;;  %v3932_v18 = vadd.f32 %v3931_v14, %v3891_v16  ;;  %v3893_v20 = vadd.f32 %v3892_v49, %v3852_v15  ;;  %v4719_v14 = vld [vmem:[#allocation12 + $0xe00] sm:$0xff] }
 0x327   :  { %v3894_v21 = vpop.f32.mrf.mxu0  ;;  %v4735_v15 = vld [vmem:[#allocation12 + $0xe80] sm:$0xff] }
 0x328   :  { %v3935_v22 = vpop.f32.mrf.mxu1  ;;  %v3934_v23 = vadd.f32 %v3933_v17, %v3893_v20  ;;  %v3938_v24 = vmax.f32 %v3932_v18, 0.0  ;;  %v9314_v16 = vcombine.high %v4719_v14, %v4735_v15  ;;  %v9313_v49 = vcombine.low %v4719_v14, %v4735_v15  ;;  %v4687_v17 = vld [vmem:[#allocation12 + $0xd00] sm:$0xff] }
 0x329   :  { %v3895_v58 = vpop.f32.mrf.mxu0  ;;  %v4703_v18 = vld [vmem:[#allocation12 + $0xd80] sm:$0xff] }
 0x32a   :  { %v3936_v27 = vpop.f32.mrf.mxu1  ;;  %v3939_v28 = vmax.f32 %v3934_v23, 0.0  ;;  %v3940_v29 = vpack.c.bf16 %v3938_v24, %v3938_v24  ;;  %v9282_v20 = vcombine.high %v4687_v17, %v4703_v18  ;;  %v9281_v21 = vcombine.low %v4687_v17, %v4703_v18  ;;  %v4655_v22 = vld [vmem:[#allocation12 + $0xc00] sm:$0xff] }
 0x32b   :  { %v4671_v23 = vld [vmem:[#allocation12 + $0xc80] sm:$0xff] }
 0x32c   :  { %v3941_v6 = vpack.c.bf16 %v3939_v28, %v3939_v28  ;;  %v9250_v24 = vcombine.high %v4655_v22, %v4671_v23  ;;  %v9249_v58 = vcombine.low %v4655_v22, %v4671_v23  ;;  %v4623_v27 = vld [vmem:[#allocation12 + $0xb00] sm:$0xff] }
 0x32d   :  { %v4639_v28 = vld [vmem:[#allocation12 + $0xb80] sm:$0xff] }
 0x32e   :  { %4109 = vmatprep.mubr.bf16.mxu0 %v3941_v6  ;;  %v9218_v6 = vcombine.high %v4623_v27, %v4639_v28 }
 0x32f   :  { %4110 = vmatmul.mubr.bf16.vlgmr.msra.gmra.mxu0 %v3940_v29  ;;  %v9217_v29 = vcombine.low %v4623_v27, %v4639_v28 }
 0x330   :  { %7512 = vmatpush1.bf16.msra.mxu0 %v9089_v38 }
 0x331   :  { %7513 = vmatprep.subr.bf16.mxu0 %v9058_v46 }
 0x334   :  { %7514 = vmatpush1.bf16.msra.mxu0 %v9057_v47 }
 0x335   :  { %7515 = vmatprep.subr.bf16.mxu0 %v9026_v50  ;;  %v4448_v50 = vld [vmem:[#allocation12 + $0x588] sm:$0xff] }
 0x336   :  { %v9028_v52 = vcombine.high %v4432_v19, %v4448_v50 }
 0x338   :  { %7516 = vmatpush1.bf16.msra.mxu0 %v9025_v51  ;;  %v9059_v51 = vcombine.low %v4464_v41, %v4480_v42 }
 0x339   :  { %7517 = vmatprep.subr.bf16.mxu0 %v8994_v54  ;;  %v4416_v54 = vld [vmem:[#allocation12 + $0x488] sm:$0xff] }
 0x33a   :  { %v8996_v26 = vcombine.high %v4400_v53, %v4416_v54 }
 0x33c   :  { %7518 = vmatpush1.bf16.msra.mxu0 %v8993_v55  ;;  %v9027_v55 = vcombine.low %v4432_v19, %v4448_v50  ;;  %v4544_v19 = vld [vmem:[#allocation12 + $0x888] sm:$0xff] }
 0x33d   :  { %7519 = vmatprep.subr.bf16.mxu0 %v8962_v57  ;;  %v4384_v57 = vld [vmem:[#allocation12 + $0x388] sm:$0xff] }
 0x33e   :  { %v8964_v60 = vcombine.high %v4368_v56, %v4384_v57  ;;  %v8963_v36 = vcombine.low %v4368_v56, %v4384_v57  ;;  %v4514_v56 = vld [vmem:[#allocation12 + $0x798] sm:$0xff] }
 0x340   :  { %7520 = vmatpush1.bf16.msra.mxu0 %v8961_v59  ;;  %v8995_v59 = vcombine.low %v4400_v53, %v4416_v54  ;;  %v4497_v53 = vld [vmem:[#allocation12 + $0x710] sm:$0xff] }
 0x341   :  { %7521 = vmatprep.subr.bf16.mxu0 %v8930_v62  ;;  %v4352_v62 = vld [vmem:[#allocation12 + $0x288] sm:$0xff]  ;;  %v4513_v54 = vld [vmem:[#allocation12 + $0x790] sm:$0xff] }
 0x342   :  { %v8932_v40 = vcombine.high %v4336_v61, %v4352_v62  ;;  %v8931_v1 = vcombine.low %v4336_v61, %v4352_v62  ;;  %v9093_v57 = vcombine.low %v4497_v53, %v4513_v54  ;;  %v4134_v61 = vld [vmem:[#allocation10] sm:$0x3] }
 0x343   :  { %v4139_v62 = vrot.slane %v4134_v61, %v10566_v32 }
 0x344   :  { %7522 = vmatpush1.bf16.msra.mxu0 %v8929_v0  ;;  %v4320_v0 = vld [vmem:[#allocation12 + $0x188] sm:$0xff] }
 0x345   :  { %7523 = vmatprep.subr.bf16.mxu0 %v8898_v3  ;;  %v4272_v3 = vld [vmem:[#allocation12 + $0x8] sm:$0xff] }
 0x348   :  { %7524 = vmatpush1.bf16.msra.mxu0 %v8897_v4  ;;  %v4288_v4 = vld [vmem:[#allocation12 + $0x88] sm:$0xff] }
 0x349   :  { %7525 = vmatprep.subr.bf16.mxu0 %v8866_v8  ;;  %v8868_v7 = vcombine.high %v4272_v3, %v4288_v4  ;;  %v4752_v8 = vld [vmem:[#allocation12 + $0xf08] sm:$0xff]  ;;  %v8867_v45 = vcombine.low %v4272_v3, %v4288_v4 }
 0x34c   :  { %7526 = vmatpush1.bf16.msra.mxu0 %v8865_v9  ;;  %v4768_v9 = vld [vmem:[#allocation12 + $0xf88] sm:$0xff] }
 0x34d   :  { %7527 = vmatprep.subr.bf16.mxu0 %v9346_v12  ;;  %v9348_v11 = vcombine.high %v4752_v8, %v4768_v9  ;;  %v4720_v12 = vld [vmem:[#allocation12 + $0xe08] sm:$0xff]  ;;  %v9347_v14 = vcombine.low %v4752_v8, %v4768_v9  ;;  %v4481_v8 = vld [vmem:[#allocation12 + $0x690] sm:$0xff]  ;;  %v4466_v9 = vld [vmem:[#allocation12 + $0x618] sm:$0xff] }
 0x350   :  { %7528 = vmatpush2.bf16.msra.mxu0 %v9345_v13  ;;  %v4736_v13 = vld [vmem:[#allocation12 + $0xe88] sm:$0xff] }
 0x351   :  { %7529 = vmatprep.subr.bf16.mxu0 %v9314_v16  ;;  %v9316_v15 = vcombine.high %v4720_v12, %v4736_v13  ;;  %v4688_v16 = vld [vmem:[#allocation12 + $0xd08] sm:$0xff]  ;;  %v9315_v17 = vcombine.low %v4720_v12, %v4736_v13  ;;  %v4433_v13 = vld [vmem:[#allocation12 + $0x510] sm:$0xff] }
 0x354   :  { %7530 = vmatpush2.bf16.msra.mxu0 %v9313_v49  ;;  %v4704_v49 = vld [vmem:[#allocation12 + $0xd88] sm:$0xff] }
 0x355   :  { %7531 = vmatprep.subr.bf16.mxu0 %v9282_v20  ;;  %v9284_v18 = vcombine.high %v4688_v16, %v4704_v49  ;;  %v4656_v20 = vld [vmem:[#allocation12 + $0xc08] sm:$0xff]  ;;  %v9283_v22 = vcombine.low %v4688_v16, %v4704_v49  ;;  %v4449_v16 = vld [vmem:[#allocation12 + $0x590] sm:$0xff]  ;;  %v4434_v49 = vld [vmem:[#allocation12 + $0x518] sm:$0xff] }
 0x358   :  { %7532 = vmatpush2.bf16.msra.mxu0 %v9281_v21  ;;  %v4672_v21 = vld [vmem:[#allocation12 + $0xc88] sm:$0xff] }
 0x359   :  { %7533 = vmatprep.subr.bf16.mxu0 %v9250_v24  ;;  %v9252_v23 = vcombine.high %v4656_v20, %v4672_v21  ;;  %v4624_v24 = vld [vmem:[#allocation12 + $0xb08] sm:$0xff]  ;;  %v9251_v27 = vcombine.low %v4656_v20, %v4672_v21  ;;  %v9030_v21 = vcombine.high %v4433_v13, %v4449_v16 }
 0x35c   :  { %7534 = vmatpush2.bf16.msra.mxu0 %v9249_v58  ;;  %v4640_v58 = vld [vmem:[#allocation12 + $0xb88] sm:$0xff] }
 0x35d   :  { %7535 = vmatprep.subr.bf16.mxu0 %v9218_v6  ;;  %v9220_v28 = vcombine.high %v4624_v24, %v4640_v58  ;;  %v4592_v6 = vld [vmem:[#allocation12 + $0xa08] sm:$0xff]  ;;  %v9219_v30 = vcombine.low %v4624_v24, %v4640_v58  ;;  %v4417_v24 = vld [vmem:[#allocation12 + $0x490] sm:$0xff]  ;;  %v4402_v58 = vld [vmem:[#allocation12 + $0x418] sm:$0xff] }
 0x360   :  { %7536 = vmatpush2.bf16.msra.mxu0 %v9217_v29  ;;  %v4608_v29 = vld [vmem:[#allocation12 + $0xa88] sm:$0xff] }
 0x361   :  { %7537 = vmatprep.subr.bf16.mxu0 %v9186_v63  ;;  %v9188_v10 = vcombine.high %v4592_v6, %v4608_v29  ;;  %v9187_v63 = vcombine.low %v4592_v6, %v4608_v29 }
 0x364   :  { %7538 = vmatpush2.bf16.msra.mxu0 %v9185_v31  ;;  %v4559_v31 = vld [vmem:[#allocation12 + $0x900] sm:$0xff] }
 0x3ef   :  { %v9425_v33 = vpop.f32.mrf.mxu0 }
 0x3f1   :  { %v9426_v35 = vpop.f32.mrf.mxu0 }
 0x3f2   :  { %v9427_v38 = vadd.f32 %v9426_v35, %v9425_v33  ;;  %v4575_v33 = vld [vmem:[#allocation12 + $0x980] sm:$0xff] }
 0x3f3   :  { %v9428_v39 = vpop.f32.mrf.mxu0  ;;  %v9154_v35 = vcombine.high %v4559_v31, %v4575_v33 }
 0x3f4   :  { %v4112_v44 = vadd.f32 %v9427_v38, %v8832_v34  ;;  %v4560_v34 = vld [vmem:[#allocation12 + $0x908] sm:$0xff]  ;;  %v9153_v39 = vcombine.low %v4559_v31, %v4575_v33  ;;  %v4370_v31 = vld [vmem:[#allocation12 + $0x318] sm:$0xff] }
 0x3f5   :  { %v9429_v46 = vpop.f32.mrf.mxu0  ;;  %v4576_v38 = vld [vmem:[#allocation12 + $0x988] sm:$0xff]  ;;  %7539 = vmatprep.subr.bf16.mxu0 %v9154_v35  ;;  %v4386_v33 = vld [vmem:[#allocation12 + $0x398] sm:$0xff] }
 0x3f6   :  { %v4117_v47 = vpack.c.bf16 %v4112_v44, %v4112_v44  ;;  %v9155_v41 = vcombine.low %v4560_v34, %v4576_v38  ;;  %v9156_v42 = vcombine.high %v4560_v34, %v4576_v38  ;;  %7540 = vmatpush2.bf16.msra.mxu0 %v9153_v39  ;;  %v4527_v44 = vld [vmem:[#allocation12 + $0x800] sm:$0xff]  ;;  %v8968_v39 = vcombine.high %v4370_v31, %v4386_v33 }
 0x3f7   :  { %v4543_v46 = vld [vmem:[#allocation12 + $0x880] sm:$0xff] }
 0x3f8   :  { %4259 = vmatmul.mubr.bf16.vlgmr.msra.gmra.mxu1 %v4117_v47  ;;  %v4528_v47 = vld [vmem:[#allocation12 + $0x808] sm:$0xff]  ;;  %v9121_v50 = vcombine.low %v4527_v44, %v4543_v46 }
 0x3f9   :  { %7553 = vmatpush1.bf16.msra.mxu1 %v9091_v43  ;;  %v4304_v43 = vld [vmem:[#allocation12 + $0x108] sm:$0xff] }
 0x3fa   :  { %7554 = vmatprep.subr.bf16.mxu1 %v9060_v48  ;;  %v8900_v2 = vcombine.high %v4304_v43, %v4320_v0  ;;  %v8899_v5 = vcombine.low %v4304_v43, %v4320_v0  ;;  %v9122_v48 = vcombine.high %v4527_v44, %v4543_v46  ;;  %v4338_v44 = vld [vmem:[#allocation12 + $0x218] sm:$0xff] }
 0x3fb   :  { %v4354_v46 = vld [vmem:[#allocation12 + $0x298] sm:$0xff] }
 0x3fc   :  { %7541 = vmatprep.subr.bf16.mxu0 %v9122_v48  ;;  %v8967_v48 = vcombine.low %v4370_v31, %v4386_v33 }
 0x3fd   :  { %7555 = vmatpush1.bf16.msra.mxu1 %v9059_v51  ;;  %v9123_v51 = vcombine.low %v4528_v47, %v4544_v19  ;;  %7542 = vmatpush2.bf16.msra.mxu0 %v9121_v50  ;;  %v8936_v50 = vcombine.high %v4338_v44, %v4354_v46 }
 0x3fe   :  { %7556 = vmatprep.subr.bf16.mxu1 %v9028_v52  ;;  %v9124_v52 = vcombine.high %v4528_v47, %v4544_v19 }
 0x401   :  { %7557 = vmatpush1.bf16.msra.mxu1 %v9027_v55  ;;  %v4498_v55 = vld [vmem:[#allocation12 + $0x718] sm:$0xff] }
 0x402   :  { %7558 = vmatprep.subr.bf16.mxu1 %v8996_v26  ;;  %v9094_v26 = vcombine.high %v4497_v53, %v4513_v54  ;;  %v4306_v53 = vld [vmem:[#allocation12 + $0x118] sm:$0xff] }
 0x403   :  { %v4322_v54 = vld [vmem:[#allocation12 + $0x198] sm:$0xff] }
 0x404   :  { %7593 = vmatprep.subr.bf16.mxu0 %v9094_v26  ;;  %v8935_v26 = vcombine.low %v4338_v44, %v4354_v46 }
 0x405   :  { %7559 = vmatpush1.bf16.msra.mxu1 %v8995_v59  ;;  %v9095_v59 = vcombine.low %v4498_v55, %v4514_v56 }
 0x406   :  { %7560 = vmatprep.subr.bf16.mxu1 %v8964_v60  ;;  %v9096_v60 = vcombine.high %v4498_v55, %v4514_v56 }
 0x409   :  { %7561 = vmatpush1.bf16.msra.mxu1 %v8963_v36  ;;  %v4143_v36 = vrot.slane %v4134_v61, %v10572_v37  ;;  %v4274_v61 = vld [vmem:[#allocation12 + $0x18] sm:$0xff] }
 0x40a   :  { %7562 = vmatprep.subr.bf16.mxu1 %v8932_v40 }
 0x40d   :  { %7563 = vmatpush1.bf16.msra.mxu1 %v8931_v1 }
 0x40e   :  { %7564 = vmatprep.subr.bf16.mxu1 %v8900_v2 }
 0x411   :  { %7565 = vmatpush1.bf16.msra.mxu1 %v8899_v5  ;;  %v4465_v5 = vld [vmem:[#allocation12 + $0x610] sm:$0xff] }
 0x412   :  { %7566 = vmatprep.subr.bf16.mxu1 %v8868_v7 }
 0x415   :  { %7567 = vmatpush1.bf16.msra.mxu1 %v8867_v45  ;;  %v4482_v45 = vld [vmem:[#allocation12 + $0x698] sm:$0xff] }
 0x416   :  { %7568 = vmatprep.subr.bf16.mxu1 %v9348_v11  ;;  %v9063_v20 = vcombine.low %v4466_v9, %v4482_v45 }
 0x419   :  { %7569 = vmatpush2.bf16.msra.mxu1 %v9347_v14  ;;  %v9062_v14 = vcombine.high %v4465_v5, %v4481_v8 }
 0x41a   :  { %7570 = vmatprep.subr.bf16.mxu1 %v9316_v15  ;;  %v9064_v15 = vcombine.high %v4466_v9, %v4482_v45  ;;  %v4721_v45 = vld [vmem:[#allocation12 + $0xe10] sm:$0xff] }
 0x41d   :  { %7571 = vmatpush2.bf16.msra.mxu1 %v9315_v17  ;;  %v4450_v17 = vld [vmem:[#allocation12 + $0x598] sm:$0xff] }
 0x41e   :  { %7572 = vmatprep.subr.bf16.mxu1 %v9284_v18  ;;  %v9061_v18 = vcombine.low %v4465_v5, %v4481_v8  ;;  %v9031_v6 = vcombine.low %v4434_v49, %v4450_v17 }
 0x421   :  { %7573 = vmatpush2.bf16.msra.mxu1 %v9283_v22  ;;  %v9032_v22 = vcombine.high %v4434_v49, %v4450_v17 }
 0x422   :  { %7574 = vmatprep.subr.bf16.mxu1 %v9252_v23  ;;  %v4401_v23 = vld [vmem:[#allocation12 + $0x410] sm:$0xff] }
 0x423   :  { %v8998_v29 = vcombine.high %v4401_v23, %v4417_v24  ;;  %v8997_v34 = vcombine.low %v4401_v23, %v4417_v24  ;;  %v4706_v23 = vld [vmem:[#allocation12 + $0xd98] sm:$0xff] }
 0x425   :  { %7575 = vmatpush2.bf16.msra.mxu1 %v9251_v27  ;;  %v4418_v27 = vld [vmem:[#allocation12 + $0x498] sm:$0xff] }
 0x426   :  { %7576 = vmatprep.subr.bf16.mxu1 %v9220_v28  ;;  %v9029_v28 = vcombine.low %v4433_v13, %v4449_v16  ;;  %v8999_v35 = vcombine.low %v4402_v58, %v4418_v27  ;;  %v4737_v13 = vld [vmem:[#allocation12 + $0xe90] sm:$0xff] }
 0x427   :  { %v9318_v17 = vcombine.high %v4721_v45, %v4737_v13  ;;  %v9317_v24 = vcombine.low %v4721_v45, %v4737_v13  ;;  %v4516_v45 = vld [vmem:[#allocation12 + $0x7a8] sm:$0xff] }
 0x429   :  { %7577 = vmatpush2.bf16.msra.mxu1 %v9219_v30  ;;  %v9000_v30 = vcombine.high %v4402_v58, %v4418_v27 }
 0x42a   :  { %7578 = vmatprep.subr.bf16.mxu1 %v9188_v10  ;;  %v4369_v10 = vld [vmem:[#allocation12 + $0x310] sm:$0xff] }
 0x42d   :  { %7579 = vmatpush2.bf16.msra.mxu1 %v9187_v63  ;;  %v4385_v63 = vld [vmem:[#allocation12 + $0x390] sm:$0xff] }
 0x42e   :  { %7580 = vmatprep.subr.bf16.mxu1 %v9156_v42  ;;  %v8966_v38 = vcombine.high %v4369_v10, %v4385_v63  ;;  %v4353_v42 = vld [vmem:[#allocation12 + $0x290] sm:$0xff]  ;;  %v8965_v47 = vcombine.low %v4369_v10, %v4385_v63  ;;  %v4674_v10 = vld [vmem:[#allocation12 + $0xc98] sm:$0xff] }
 0x431   :  { %7581 = vmatpush2.bf16.msra.mxu1 %v9155_v41  ;;  %v4337_v41 = vld [vmem:[#allocation12 + $0x210] sm:$0xff] }
 0x432   :  { %7582 = vmatprep.subr.bf16.mxu1 %v9124_v52  ;;  %v8934_v19 = vcombine.high %v4337_v41, %v4353_v42  ;;  %v4321_v52 = vld [vmem:[#allocation12 + $0x190] sm:$0xff]  ;;  %v8933_v55 = vcombine.low %v4337_v41, %v4353_v42  ;;  %v4642_v41 = vld [vmem:[#allocation12 + $0xb98] sm:$0xff] }
 0x435   :  { %7583 = vmatpush2.bf16.msra.mxu1 %v9123_v51  ;;  %v4305_v51 = vld [vmem:[#allocation12 + $0x110] sm:$0xff] }
 0x436   :  { %7634 = vmatprep.subr.bf16.mxu1 %v9096_v60  ;;  %v8902_v56 = vcombine.high %v4305_v51, %v4321_v52  ;;  %v4289_v60 = vld [vmem:[#allocation12 + $0x90] sm:$0xff] }
 0x4b8   :  { %v4260_v40 = vpop.f32.mrf.mxu1 }
 0x4b9   :  { %v4261_v43 = vadd.f32 %v4260_v40, %v4139_v62  ;;  %v4290_v62 = vld [vmem:[#allocation12 + $0x98] sm:$0xff]  ;;  %v8903_v40 = vcombine.low %v4306_v53, %v4322_v54 }
 0x4ba   :  { %v4262_v0 = vpop.f32.mrf.mxu1 }
 0x4bb   :  { %v4263_v1 = vadd.f32 %v4262_v0, %v4143_v36  ;;  %v4267_v2 = vmax.f32 %v4261_v43, 0.0  ;;  %v8901_v36 = vcombine.low %v4305_v51, %v4321_v52  ;;  %v8872_v0 = vcombine.high %v4274_v61, %v4290_v62  ;;  %v4610_v51 = vld [vmem:[#allocation12 + $0xa98] sm:$0xff] }
 0x4bc   :  { %v4264_v3 = vpop.f32.mrf.mxu1 }
 0x4bd   :  { %v4268_v4 = vmax.f32 %v4263_v1, 0.0  ;;  %v10663_v12 = vpack.c.bf16 %v4267_v2, %v4267_v2  ;;  %v4753_v1 = vld [vmem:[#allocation12 + $0xf10] sm:$0xff]  ;;  %v4754_v3 = vld [vmem:[#allocation12 + $0xf18] sm:$0xff] }
 0x4be   :  { %v4265_v7 = vpop.f32.mrf.mxu1  ;;  %v4769_v2 = vld [vmem:[#allocation12 + $0xf90] sm:$0xff] }
 0x4bf   :  { %v10661_v11 = vpack.c.bf16 %v4268_v4, %v4268_v4  ;;  %v4770_v4 = vld [vmem:[#allocation12 + $0xf98] sm:$0xff]  ;;  %v8871_v7 = vcombine.low %v4274_v61, %v4290_v62  ;;  %v9350_v8 = vcombine.high %v4753_v1, %v4769_v2  ;;  %v9349_v16 = vcombine.low %v4753_v1, %v4769_v2 }
 0x4c0   :  { %v9352_v9 = vcombine.high %v4754_v3, %v4770_v4  ;;  %v9351_v49 = vcombine.low %v4754_v3, %v4770_v4  ;;  %v4546_v1 = vld [vmem:[#allocation12 + $0x898] sm:$0xff] }
 0x4c1   :  { %7543 = vmatprep.mubr.bf16.mxu0 %v10661_v11  ;;  %7584 = vmatprep.mubr.bf16.mxu1 %v10661_v11 }
 0x4c2   :  { %7544 = vmatmul.mubr.bf16.vlgmr.msra.gmra.mxu0 %v10663_v12  ;;  %7585 = vmatmul.mubr.bf16.vlgmr.msra.gmra.mxu1 %v10663_v12 }
 0x4c3   :  { %7594 = vmatpush1.bf16.msra.mxu0 %v9093_v57  ;;  %7635 = vmatpush1.bf16.msra.mxu1 %v9095_v59  ;;  %v8904_v57 = vcombine.high %v4306_v53, %v4322_v54  ;;  %v4273_v59 = vld [vmem:[#allocation12 + $0x10] sm:$0xff] }
 0x4c4   :  { %7625 = vmatprep.mubr.bf16.mxu0 %v10661_v11  ;;  %7666 = vmatprep.mubr.bf16.mxu1 %v10661_v11  ;;  %v8870_v43 = vcombine.high %v4273_v59, %v4289_v60  ;;  %v8869_v5 = vcombine.low %v4273_v59, %v4289_v60  ;;  %v4578_v59 = vld [vmem:[#allocation12 + $0x998] sm:$0xff] }
 0x4c5   :  { %7595 = vmatprep.subr.bf16.mxu0 %v9062_v14  ;;  %7636 = vmatprep.subr.bf16.mxu1 %v9064_v15  ;;  %v4722_v14 = vld [vmem:[#allocation12 + $0xe18] sm:$0xff] }
 0x4c6   :  { %v4738_v15 = vld [vmem:[#allocation12 + $0xe98] sm:$0xff] }
 0x4c7   :  { %7596 = vmatpush1.bf16.msra.mxu0 %v9061_v18  ;;  %7637 = vmatpush1.bf16.msra.mxu1 %v9063_v20  ;;  %v9320_v18 = vcombine.high %v4722_v14, %v4738_v15  ;;  %v4689_v20 = vld [vmem:[#allocation12 + $0xd10] sm:$0xff]  ;;  %v9319_v58 = vcombine.low %v4722_v14, %v4738_v15 }
 0x4c8   :  { %7597 = vmatprep.subr.bf16.mxu0 %v9030_v21  ;;  %7638 = vmatprep.subr.bf16.mxu1 %v9032_v22  ;;  %v4705_v21 = vld [vmem:[#allocation12 + $0xd90] sm:$0xff]  ;;  %v4690_v22 = vld [vmem:[#allocation12 + $0xd18] sm:$0xff] }
 0x4c9   :  { %v9286_v27 = vcombine.high %v4689_v20, %v4705_v21  ;;  %v9285_v63 = vcombine.low %v4689_v20, %v4705_v21  ;;  %v9287_v31 = vcombine.low %v4690_v22, %v4706_v23  ;;  %v4484_v20 = vld [vmem:[#allocation12 + $0x6a8] sm:$0xff] }
 0x4cb   :  { %7598 = vmatpush1.bf16.msra.mxu0 %v9029_v28  ;;  %7639 = vmatpush1.bf16.msra.mxu1 %v9031_v6  ;;  %v9288_v28 = vcombine.high %v4690_v22, %v4706_v23  ;;  %v4657_v6 = vld [vmem:[#allocation12 + $0xc10] sm:$0xff] }
 0x4cc   :  { %7599 = vmatprep.subr.bf16.mxu0 %v8998_v29  ;;  %7640 = vmatprep.subr.bf16.mxu1 %v9000_v30  ;;  %v4673_v29 = vld [vmem:[#allocation12 + $0xc90] sm:$0xff]  ;;  %v4658_v30 = vld [vmem:[#allocation12 + $0xc18] sm:$0xff] }
 0x4cd   :  { %v9254_v33 = vcombine.high %v4657_v6, %v4673_v29  ;;  %v9253_v42 = vcombine.low %v4657_v6, %v4673_v29  ;;  %v9255_v44 = vcombine.low %v4658_v30, %v4674_v10  ;;  %v4452_v6 = vld [vmem:[#allocation12 + $0x5a8] sm:$0xff] }
 0x4cf   :  { %7600 = vmatpush1.bf16.msra.mxu0 %v8997_v34  ;;  %7641 = vmatpush1.bf16.msra.mxu1 %v8999_v35  ;;  %v9256_v34 = vcombine.high %v4658_v30, %v4674_v10  ;;  %v4625_v35 = vld [vmem:[#allocation12 + $0xb10] sm:$0xff] }
 0x4d0   :  { %7601 = vmatprep.subr.bf16.mxu0 %v8966_v38  ;;  %7642 = vmatprep.subr.bf16.mxu1 %v8968_v39  ;;  %v4641_v38 = vld [vmem:[#allocation12 + $0xb90] sm:$0xff]  ;;  %v4626_v39 = vld [vmem:[#allocation12 + $0xb18] sm:$0xff] }
 0x4d1   :  { %v9222_v46 = vcombine.high %v4625_v35, %v4641_v38  ;;  %v9221_v52 = vcombine.low %v4625_v35, %v4641_v38  ;;  %v9223_v53 = vcombine.low %v4626_v39, %v4642_v41  ;;  %v4420_v35 = vld [vmem:[#allocation12 + $0x4a8] sm:$0xff] }
 0x4d3   :  { %7602 = vmatpush1.bf16.msra.mxu0 %v8965_v47  ;;  %7643 = vmatpush1.bf16.msra.mxu1 %v8967_v48  ;;  %v9224_v47 = vcombine.high %v4626_v39, %v4642_v41  ;;  %v4593_v48 = vld [vmem:[#allocation12 + $0xa10] sm:$0xff] }
 0x4d4   :  { %7603 = vmatprep.subr.bf16.mxu0 %v8934_v19  ;;  %7644 = vmatprep.subr.bf16.mxu1 %v8936_v50  ;;  %v4609_v19 = vld [vmem:[#allocation12 + $0xa90] sm:$0xff]  ;;  %v4594_v50 = vld [vmem:[#allocation12 + $0xa18] sm:$0xff] }
 0x4d5   :  { %v9190_v54 = vcombine.high %v4593_v48, %v4609_v19  ;;  %v9189_v60 = vcombine.low %v4593_v48, %v4609_v19  ;;  %v9191_v61 = vcombine.low %v4594_v50, %v4610_v51  ;;  %v4388_v48 = vld [vmem:[#allocation12 + $0x3a8] sm:$0xff] }
 0x4d7   :  { %7604 = vmatpush1.bf16.msra.mxu0 %v8933_v55  ;;  %7645 = vmatpush1.bf16.msra.mxu1 %v8935_v26  ;;  %v9192_v55 = vcombine.high %v4594_v50, %v4610_v51  ;;  %v4561_v26 = vld [vmem:[#allocation12 + $0x910] sm:$0xff] }
 0x4d8   :  { %7605 = vmatprep.subr.bf16.mxu0 %v8902_v56  ;;  %7646 = vmatprep.subr.bf16.mxu1 %v8904_v57  ;;  %v4577_v56 = vld [vmem:[#allocation12 + $0x990] sm:$0xff]  ;;  %v4562_v57 = vld [vmem:[#allocation12 + $0x918] sm:$0xff] }
 0x4d9   :  { %v9158_v62 = vcombine.high %v4561_v26, %v4577_v56  ;;  %v9157_v2 = vcombine.low %v4561_v26, %v4577_v56  ;;  %v9159_v3 = vcombine.low %v4562_v57, %v4578_v59  ;;  %v4356_v26 = vld [vmem:[#allocation12 + $0x2a8] sm:$0xff] }
 0x4db   :  { %7606 = vmatpush1.bf16.msra.mxu0 %v8901_v36  ;;  %7647 = vmatpush1.bf16.msra.mxu1 %v8903_v40  ;;  %v9160_v36 = vcombine.high %v4562_v57, %v4578_v59  ;;  %v4529_v40 = vld [vmem:[#allocation12 + $0x810] sm:$0xff] }
 0x4dc   :  { %7607 = vmatprep.subr.bf16.mxu0 %v8870_v43  ;;  %7648 = vmatprep.subr.bf16.mxu1 %v8872_v0  ;;  %v4545_v43 = vld [vmem:[#allocation12 + $0x890] sm:$0xff]  ;;  %v4530_v0 = vld [vmem:[#allocation12 + $0x818] sm:$0xff] }
 0x4dd   :  { %v9126_v4 = vcombine.high %v4529_v40, %v4545_v43  ;;  %v9125_v13 = vcombine.low %v4529_v40, %v4545_v43  ;;  %v9127_v14 = vcombine.low %v4530_v0, %v4546_v1  ;;  %v4324_v40 = vld [vmem:[#allocation12 + $0x1a8] sm:$0xff] }
 0x4df   :  { %7608 = vmatpush1.bf16.msra.mxu0 %v8869_v5  ;;  %7649 = vmatpush1.bf16.msra.mxu1 %v8871_v7  ;;  %v9128_v5 = vcombine.high %v4530_v0, %v4546_v1  ;;  %v4499_v7 = vld [vmem:[#allocation12 + $0x720] sm:$0xff] }
 0x4e0   :  { %7609 = vmatprep.subr.bf16.mxu0 %v9350_v8  ;;  %7650 = vmatprep.subr.bf16.mxu1 %v9352_v9  ;;  %v4515_v8 = vld [vmem:[#allocation12 + $0x7a0] sm:$0xff]  ;;  %v4500_v9 = vld [vmem:[#allocation12 + $0x728] sm:$0xff] }
 0x4e1   :  { %v9098_v15 = vcombine.high %v4499_v7, %v4515_v8  ;;  %v9097_v21 = vcombine.low %v4499_v7, %v4515_v8  ;;  %v9099_v22 = vcombine.low %v4500_v9, %v4516_v45  ;;  %v4292_v7 = vld [vmem:[#allocation12 + $0xa8] sm:$0xff] }
 0x4e3   :  { %7610 = vmatpush2.bf16.msra.mxu0 %v9349_v16  ;;  %7651 = vmatpush2.bf16.msra.mxu1 %v9351_v49  ;;  %v9100_v16 = vcombine.high %v4500_v9, %v4516_v45  ;;  %v4467_v49 = vld [vmem:[#allocation12 + $0x620] sm:$0xff] }
 0x4e4   :  { %7611 = vmatprep.subr.bf16.mxu0 %v9318_v17  ;;  %7652 = vmatprep.subr.bf16.mxu1 %v9320_v18  ;;  %v4483_v17 = vld [vmem:[#allocation12 + $0x6a0] sm:$0xff]  ;;  %v4468_v18 = vld [vmem:[#allocation12 + $0x628] sm:$0xff] }
 0x4e5   :  { %v9066_v23 = vcombine.high %v4467_v49, %v4483_v17  ;;  %v9065_v29 = vcombine.low %v4467_v49, %v4483_v17  ;;  %v9067_v30 = vcombine.low %v4468_v18, %v4484_v20  ;;  %v4772_v49 = vld [vmem:[#allocation12 + $0xfa8] sm:$0xff] }
 0x4e7   :  { %7612 = vmatpush2.bf16.msra.mxu0 %v9317_v24  ;;  %7653 = vmatpush2.bf16.msra.mxu1 %v9319_v58  ;;  %v9068_v24 = vcombine.high %v4468_v18, %v4484_v20  ;;  %v4435_v58 = vld [vmem:[#allocation12 + $0x520] sm:$0xff] }
 0x4e8   :  { %7613 = vmatprep.subr.bf16.mxu0 %v9286_v27  ;;  %7654 = vmatprep.subr.bf16.mxu1 %v9288_v28  ;;  %v4451_v27 = vld [vmem:[#allocation12 + $0x5a0] sm:$0xff]  ;;  %v4436_v28 = vld [vmem:[#allocation12 + $0x528] sm:$0xff] }
 0x4e9   :  { %v9034_v10 = vcombine.high %v4435_v58, %v4451_v27  ;;  %v9033_v38 = vcombine.low %v4435_v58, %v4451_v27  ;;  %v9035_v39 = vcombine.low %v4436_v28, %v4452_v6  ;;  %v4740_v58 = vld [vmem:[#allocation12 + $0xea8] sm:$0xff] }
 0x4eb   :  { %7614 = vmatpush2.bf16.msra.mxu0 %v9285_v63  ;;  %7655 = vmatpush2.bf16.msra.mxu1 %v9287_v31  ;;  %v9036_v63 = vcombine.high %v4436_v28, %v4452_v6  ;;  %v4403_v31 = vld [vmem:[#allocation12 + $0x420] sm:$0xff] }
 0x4ec   :  { %7615 = vmatprep.subr.bf16.mxu0 %v9254_v33  ;;  %7656 = vmatprep.subr.bf16.mxu1 %v9256_v34  ;;  %v4419_v33 = vld [vmem:[#allocation12 + $0x4a0] sm:$0xff]  ;;  %v4404_v34 = vld [vmem:[#allocation12 + $0x428] sm:$0xff] }
 0x4ed   :  { %v9002_v41 = vcombine.high %v4403_v31, %v4419_v33  ;;  %v9001_v19 = vcombine.low %v4403_v31, %v4419_v33  ;;  %v9003_v50 = vcombine.low %v4404_v34, %v4420_v35  ;;  %v4708_v31 = vld [vmem:[#allocation12 + $0xda8] sm:$0xff] }
 0x4ef   :  { %7616 = vmatpush2.bf16.msra.mxu0 %v9253_v42  ;;  %7657 = vmatpush2.bf16.msra.mxu1 %v9255_v44  ;;  %v9004_v42 = vcombine.high %v4404_v34, %v4420_v35  ;;  %v4371_v44 = vld [vmem:[#allocation12 + $0x320] sm:$0xff] }
 0x4f0   :  { %7617 = vmatprep.subr.bf16.mxu0 %v9222_v46  ;;  %7658 = vmatprep.subr.bf16.mxu1 %v9224_v47  ;;  %v4387_v46 = vld [vmem:[#allocation12 + $0x3a0] sm:$0xff]  ;;  %v4372_v47 = vld [vmem:[#allocation12 + $0x328] sm:$0xff] }
 0x4f1   :  { %v8970_v51 = vcombine.high %v4371_v44, %v4387_v46  ;;  %v8969_v56 = vcombine.low %v4371_v44, %v4387_v46  ;;  %v8971_v57 = vcombine.low %v4372_v47, %v4388_v48  ;;  %v4676_v44 = vld [vmem:[#allocation12 + $0xca8] sm:$0xff] }
 0x4f3   :  { %7618 = vmatpush2.bf16.msra.mxu0 %v9221_v52  ;;  %7659 = vmatpush2.bf16.msra.mxu1 %v9223_v53  ;;  %v8972_v52 = vcombine.high %v4372_v47, %v4388_v48  ;;  %v4339_v53 = vld [vmem:[#allocation12 + $0x220] sm:$0xff] }
 0x4f4   :  { %7619 = vmatprep.subr.bf16.mxu0 %v9190_v54  ;;  %7660 = vmatprep.subr.bf16.mxu1 %v9192_v55  ;;  %v4355_v54 = vld [vmem:[#allocation12 + $0x2a0] sm:$0xff]  ;;  %v4340_v55 = vld [vmem:[#allocation12 + $0x228] sm:$0xff] }
 0x4f5   :  { %v8938_v59 = vcombine.high %v4339_v53, %v4355_v54  ;;  %v8937_v43 = vcombine.low %v4339_v53, %v4355_v54  ;;  %v8939_v0 = vcombine.low %v4340_v55, %v4356_v26  ;;  %v4644_v53 = vld [vmem:[#allocation12 + $0xba8] sm:$0xff] }
 0x4f7   :  { %7620 = vmatpush2.bf16.msra.mxu0 %v9189_v60  ;;  %7661 = vmatpush2.bf16.msra.mxu1 %v9191_v61  ;;  %v8940_v60 = vcombine.high %v4340_v55, %v4356_v26  ;;  %v4307_v61 = vld [vmem:[#allocation12 + $0x120] sm:$0xff] }
 0x4f8   :  { %7621 = vmatprep.subr.bf16.mxu0 %v9158_v62  ;;  %7662 = vmatprep.subr.bf16.mxu1 %v9160_v36  ;;  %v4323_v62 = vld [vmem:[#allocation12 + $0x1a0] sm:$0xff]  ;;  %v4308_v36 = vld [vmem:[#allocation12 + $0x128] sm:$0xff] }
 0x4f9   :  { %v8906_v1 = vcombine.high %v4307_v61, %v4323_v62  ;;  %v8905_v8 = vcombine.low %v4307_v61, %v4323_v62  ;;  %v8907_v9 = vcombine.low %v4308_v36, %v4324_v40  ;;  %v4612_v61 = vld [vmem:[#allocation12 + $0xaa8] sm:$0xff] }
 0x4fb   :  { %7622 = vmatpush2.bf16.msra.mxu0 %v9157_v2  ;;  %7663 = vmatpush2.bf16.msra.mxu1 %v9159_v3  ;;  %v8908_v2 = vcombine.high %v4308_v36, %v4324_v40  ;;  %v4275_v3 = vld [vmem:[#allocation12 + $0x20] sm:$0xff] }
 0x4fc   :  { %7623 = vmatprep.subr.bf16.mxu0 %v9126_v4  ;;  %7664 = vmatprep.subr.bf16.mxu1 %v9128_v5  ;;  %v4291_v4 = vld [vmem:[#allocation12 + $0xa0] sm:$0xff]  ;;  %v4276_v5 = vld [vmem:[#allocation12 + $0x28] sm:$0xff] }
 0x4fd   :  { %v8874_v45 = vcombine.high %v4275_v3, %v4291_v4  ;;  %v8873_v17 = vcombine.low %v4275_v3, %v4291_v4  ;;  %v8875_v18 = vcombine.low %v4276_v5, %v4292_v7  ;;  %v4580_v3 = vld [vmem:[#allocation12 + $0x9a8] sm:$0xff] }
 0x4ff   :  { %7624 = vmatpush2.bf16.msra.mxu0 %v9125_v13  ;;  %7665 = vmatpush2.bf16.msra.mxu1 %v9127_v14  ;;  %v8876_v13 = vcombine.high %v4276_v5, %v4292_v7  ;;  %v4755_v14 = vld [vmem:[#allocation12 + $0xf20] sm:$0xff] }
 0x500   :  { %7675 = vmatprep.subr.bf16.mxu0 %v9098_v15  ;;  %7716 = vmatprep.subr.bf16.mxu1 %v9100_v16  ;;  %v4771_v15 = vld [vmem:[#allocation12 + $0xfa0] sm:$0xff]  ;;  %v4756_v16 = vld [vmem:[#allocation12 + $0xf28] sm:$0xff] }
 0x501   :  { %v9354_v20 = vcombine.high %v4755_v14, %v4771_v15  ;;  %v9353_v27 = vcombine.low %v4755_v14, %v4771_v15  ;;  %v9355_v28 = vcombine.low %v4756_v16, %v4772_v49  ;;  %v4548_v14 = vld [vmem:[#allocation12 + $0x8a8] sm:$0xff] }
 0x502   :  { %7626 = vmatmul.mubr.bf16.vlgmr.msra.gmra.mxu0 %v10663_v12  ;;  %7667 = vmatmul.mubr.bf16.vlgmr.msra.gmra.mxu1 %v10663_v12 }
 0x503   :  { %7676 = vmatpush1.bf16.msra.mxu0 %v9097_v21  ;;  %7707 = vmatprep.mubr.bf16.mxu0 %v10661_v11  ;;  %v9356_v21 = vcombine.high %v4756_v16, %v4772_v49 }
 0x504   :  { %7717 = vmatpush1.bf16.msra.mxu1 %v9099_v22  ;;  %7748 = vmatprep.mubr.bf16.mxu1 %v10661_v11  ;;  %v4723_v22 = vld [vmem:[#allocation12 + $0xe20] sm:$0xff] }
 0x505   :  { %7677 = vmatprep.subr.bf16.mxu0 %v9066_v23  ;;  %7718 = vmatprep.subr.bf16.mxu1 %v9068_v24  ;;  %v4739_v23 = vld [vmem:[#allocation12 + $0xea0] sm:$0xff]  ;;  %v4724_v24 = vld [vmem:[#allocation12 + $0xe28] sm:$0xff] }
 0x506   :  { %v9322_v6 = vcombine.high %v4723_v22, %v4739_v23  ;;  %v9321_v33 = vcombine.low %v4723_v22, %v4739_v23  ;;  %v9323_v34 = vcombine.low %v4724_v24, %v4740_v58  ;;  %v4518_v22 = vld [vmem:[#allocation12 + $0x7b8] sm:$0xff] }
 0x507   :  { %7678 = vmatpush1.bf16.msra.mxu0 %v9065_v29  ;;  %v9324_v29 = vcombine.high %v4724_v24, %v4740_v58 }
 0x508   :  { %7719 = vmatpush1.bf16.msra.mxu1 %v9067_v30  ;;  %7679 = vmatprep.subr.bf16.mxu0 %v9034_v10  ;;  %v4691_v30 = vld [vmem:[#allocation12 + $0xd20] sm:$0xff] }
 0x509   :  { %7720 = vmatprep.subr.bf16.mxu1 %v9036_v63  ;;  %v4707_v10 = vld [vmem:[#allocation12 + $0xda0] sm:$0xff]  ;;  %v4692_v63 = vld [vmem:[#allocation12 + $0xd28] sm:$0xff] }
 0x50a   :  { %v9290_v35 = vcombine.high %v4691_v30, %v4707_v10  ;;  %v9289_v46 = vcombine.low %v4691_v30, %v4707_v10  ;;  %v9291_v47 = vcombine.low %v4692_v63, %v4708_v31  ;;  %v4470_v30 = vld [vmem:[#allocation12 + $0x638] sm:$0xff] }
 0x50b   :  { %7680 = vmatpush1.bf16.msra.mxu0 %v9033_v38  ;;  %v9292_v38 = vcombine.high %v4692_v63, %v4708_v31  ;;  %v4486_v10 = vld [vmem:[#allocation12 + $0x6b8] sm:$0xff] }
 0x50c   :  { %7721 = vmatpush1.bf16.msra.mxu1 %v9035_v39  ;;  %7681 = vmatprep.subr.bf16.mxu0 %v9002_v41  ;;  %v4659_v39 = vld [vmem:[#allocation12 + $0xc20] sm:$0xff] }
 0x50d   :  { %7722 = vmatprep.subr.bf16.mxu1 %v9004_v42  ;;  %v4675_v41 = vld [vmem:[#allocation12 + $0xca0] sm:$0xff]  ;;  %v4660_v42 = vld [vmem:[#allocation12 + $0xc28] sm:$0xff] }
 0x50e   :  { %v9258_v48 = vcombine.high %v4659_v39, %v4675_v41  ;;  %v9257_v54 = vcombine.low %v4659_v39, %v4675_v41  ;;  %v9259_v55 = vcombine.low %v4660_v42, %v4676_v44  ;;  %v4454_v39 = vld [vmem:[#allocation12 + $0x5b8] sm:$0xff] }
 0x50f   :  { %7682 = vmatpush1.bf16.msra.mxu0 %v9001_v19  ;;  %v9260_v19 = vcombine.high %v4660_v42, %v4676_v44  ;;  %v9071_v42 = vcombine.low %v4470_v30, %v4486_v10 }
 0x510   :  { %7723 = vmatpush1.bf16.msra.mxu1 %v9003_v50  ;;  %7683 = vmatprep.subr.bf16.mxu0 %v8970_v51  ;;  %v4627_v50 = vld [vmem:[#allocation12 + $0xb20] sm:$0xff] }
 0x511   :  { %7724 = vmatprep.subr.bf16.mxu1 %v8972_v52  ;;  %v4643_v51 = vld [vmem:[#allocation12 + $0xba0] sm:$0xff]  ;;  %v4628_v52 = vld [vmem:[#allocation12 + $0xb28] sm:$0xff] }
 0x512   :  { %v9226_v26 = vcombine.high %v4627_v50, %v4643_v51  ;;  %v9225_v62 = vcombine.low %v4627_v50, %v4643_v51  ;;  %v9227_v36 = vcombine.low %v4628_v52, %v4644_v53  ;;  %v4422_v50 = vld [vmem:[#allocation12 + $0x4b8] sm:$0xff] }
 0x513   :  { %7684 = vmatpush1.bf16.msra.mxu0 %v8969_v56  ;;  %v9228_v56 = vcombine.high %v4628_v52, %v4644_v53 }
 0x514   :  { %7725 = vmatpush1.bf16.msra.mxu1 %v8971_v57  ;;  %7685 = vmatprep.subr.bf16.mxu0 %v8938_v59  ;;  %v4595_v57 = vld [vmem:[#allocation12 + $0xa20] sm:$0xff] }
 0x515   :  { %7726 = vmatprep.subr.bf16.mxu1 %v8940_v60  ;;  %v4611_v59 = vld [vmem:[#allocation12 + $0xaa0] sm:$0xff]  ;;  %v4596_v60 = vld [vmem:[#allocation12 + $0xa28] sm:$0xff] }
 0x516   :  { %v9194_v40 = vcombine.high %v4595_v57, %v4611_v59  ;;  %v9193_v4 = vcombine.low %v4595_v57, %v4611_v59  ;;  %v9195_v5 = vcombine.low %v4596_v60, %v4612_v61  ;;  %v4390_v57 = vld [vmem:[#allocation12 + $0x3b8] sm:$0xff] }
 0x517   :  { %7686 = vmatpush1.bf16.msra.mxu0 %v8937_v43  ;;  %v9196_v43 = vcombine.high %v4596_v60, %v4612_v61 }
 0x518   :  { %7727 = vmatpush1.bf16.msra.mxu1 %v8939_v0  ;;  %7687 = vmatprep.subr.bf16.mxu0 %v8906_v1  ;;  %v4563_v0 = vld [vmem:[#allocation12 + $0x920] sm:$0xff] }
 0x519   :  { %7728 = vmatprep.subr.bf16.mxu1 %v8908_v2  ;;  %v4579_v1 = vld [vmem:[#allocation12 + $0x9a0] sm:$0xff]  ;;  %v4564_v2 = vld [vmem:[#allocation12 + $0x928] sm:$0xff] }
 0x51a   :  { %v9162_v7 = vcombine.high %v4563_v0, %v4579_v1  ;;  %v9161_v15 = vcombine.low %v4563_v0, %v4579_v1  ;;  %v9163_v16 = vcombine.low %v4564_v2, %v4580_v3  ;;  %v4358_v0 = vld [vmem:[#allocation12 + $0x2b8] sm:$0xff] }
 0x51b   :  { %7688 = vmatpush1.bf16.msra.mxu0 %v8905_v8  ;;  %v9164_v8 = vcombine.high %v4564_v2, %v4580_v3 }
 0x51c   :  { %7729 = vmatpush1.bf16.msra.mxu1 %v8907_v9  ;;  %7689 = vmatprep.subr.bf16.mxu0 %v8874_v45  ;;  %v4531_v9 = vld [vmem:[#allocation12 + $0x820] sm:$0xff] }
 0x51d   :  { %7730 = vmatprep.subr.bf16.mxu1 %v8876_v13  ;;  %v4547_v45 = vld [vmem:[#allocation12 + $0x8a0] sm:$0xff]  ;;  %v4532_v13 = vld [vmem:[#allocation12 + $0x828] sm:$0xff] }
 0x51e   :  { %v9130_v49 = vcombine.high %v4531_v9, %v4547_v45  ;;  %v9129_v23 = vcombine.low %v4531_v9, %v4547_v45  ;;  %v9131_v24 = vcombine.low %v4532_v13, %v4548_v14  ;;  %v4326_v9 = vld [vmem:[#allocation12 + $0x1b8] sm:$0xff] }
 0x51f   :  { %7690 = vmatpush1.bf16.msra.mxu0 %v8873_v17  ;;  %v9132_v17 = vcombine.high %v4532_v13, %v4548_v14 }
 0x520   :  { %7731 = vmatpush1.bf16.msra.mxu1 %v8875_v18  ;;  %7691 = vmatprep.subr.bf16.mxu0 %v9354_v20  ;;  %v4501_v18 = vld [vmem:[#allocation12 + $0x730] sm:$0xff] }
 0x521   :  { %7732 = vmatprep.subr.bf16.mxu1 %v9356_v21  ;;  %v4517_v20 = vld [vmem:[#allocation12 + $0x7b0] sm:$0xff]  ;;  %v4502_v21 = vld [vmem:[#allocation12 + $0x738] sm:$0xff] }
 0x522   :  { %v9102_v58 = vcombine.high %v4501_v18, %v4517_v20  ;;  %v9103_v63 = vcombine.low %v4502_v21, %v4518_v22 }
 0x523   :  { %7692 = vmatpush2.bf16.msra.mxu0 %v9353_v27  ;;  %v9104_v27 = vcombine.high %v4502_v21, %v4518_v22 }
 0x524   :  { %7733 = vmatpush2.bf16.msra.mxu1 %v9355_v28  ;;  %7693 = vmatprep.subr.bf16.mxu0 %v9322_v6  ;;  %v4469_v28 = vld [vmem:[#allocation12 + $0x630] sm:$0xff] }
 0x525   :  { %7734 = vmatprep.subr.bf16.mxu1 %v9324_v29  ;;  %v4485_v6 = vld [vmem:[#allocation12 + $0x6b0] sm:$0xff]  ;;  %v9101_v29 = vcombine.low %v4501_v18, %v4517_v20  ;;  %v4294_v18 = vld [vmem:[#allocation12 + $0xb8] sm:$0xff] }
 0x526   :  { %v9070_v31 = vcombine.high %v4469_v28, %v4485_v6  ;;  %v9069_v41 = vcombine.low %v4469_v28, %v4485_v6  ;;  %v4774_v28 = vld [vmem:[#allocation12 + $0xfb8] sm:$0xff] }
 0x527   :  { %7694 = vmatpush2.bf16.msra.mxu0 %v9321_v33  ;;  %v4437_v33 = vld [vmem:[#allocation12 + $0x530] sm:$0xff] }
 0x528   :  { %7735 = vmatpush2.bf16.msra.mxu1 %v9323_v34  ;;  %7695 = vmatprep.subr.bf16.mxu0 %v9290_v35  ;;  %v4453_v34 = vld [vmem:[#allocation12 + $0x5b0] sm:$0xff]  ;;  %v9072_v35 = vcombine.high %v4470_v30, %v4486_v10 }
 0x529   :  { %7736 = vmatprep.subr.bf16.mxu1 %v9292_v38  ;;  %v4438_v38 = vld [vmem:[#allocation12 + $0x538] sm:$0xff]  ;;  %v9038_v44 = vcombine.high %v4437_v33, %v4453_v34  ;;  %v9037_v51 = vcombine.low %v4437_v33, %v4453_v34 }
 0x52a   :  { %v9039_v52 = vcombine.low %v4438_v38, %v4454_v39  ;;  %v4726_v33 = vld [vmem:[#allocation12 + $0xe38] sm:$0xff] }
 0x52b   :  { %7696 = vmatpush2.bf16.msra.mxu0 %v9289_v46  ;;  %v9040_v46 = vcombine.high %v4438_v38, %v4454_v39  ;;  %v4742_v34 = vld [vmem:[#allocation12 + $0xeb8] sm:$0xff] }
 0x52c   :  { %7737 = vmatpush2.bf16.msra.mxu1 %v9291_v47  ;;  %7697 = vmatprep.subr.bf16.mxu0 %v9258_v48  ;;  %v4405_v47 = vld [vmem:[#allocation12 + $0x430] sm:$0xff] }
 0x52d   :  { %7738 = vmatprep.subr.bf16.mxu1 %v9260_v19  ;;  %v4421_v48 = vld [vmem:[#allocation12 + $0x4b0] sm:$0xff]  ;;  %v4406_v19 = vld [vmem:[#allocation12 + $0x438] sm:$0xff] }
 0x52e   :  { %v9006_v53 = vcombine.high %v4405_v47, %v4421_v48  ;;  %v9005_v59 = vcombine.low %v4405_v47, %v4421_v48  ;;  %v9007_v60 = vcombine.low %v4406_v19, %v4422_v50  ;;  %v4710_v47 = vld [vmem:[#allocation12 + $0xdb8] sm:$0xff] }
 0x52f   :  { %7698 = vmatpush2.bf16.msra.mxu0 %v9257_v54  ;;  %v9008_v54 = vcombine.high %v4406_v19, %v4422_v50  ;;  %v9327_v19 = vcombine.low %v4726_v33, %v4742_v34 }
 0x530   :  { %7739 = vmatpush2.bf16.msra.mxu1 %v9259_v55  ;;  %7699 = vmatprep.subr.bf16.mxu0 %v9226_v26  ;;  %v4373_v55 = vld [vmem:[#allocation12 + $0x330] sm:$0xff] }
 0x531   :  { %7740 = vmatprep.subr.bf16.mxu1 %v9228_v56  ;;  %v4389_v26 = vld [vmem:[#allocation12 + $0x3b0] sm:$0xff]  ;;  %v4374_v56 = vld [vmem:[#allocation12 + $0x338] sm:$0xff] }
 0x532   :  { %v8974_v61 = vcombine.high %v4373_v55, %v4389_v26  ;;  %v8973_v1 = vcombine.low %v4373_v55, %v4389_v26  ;;  %v8975_v2 = vcombine.low %v4374_v56, %v4390_v57  ;;  %v4678_v55 = vld [vmem:[#allocation12 + $0xcb8] sm:$0xff] }
 0x533   :  { %7700 = vmatpush2.bf16.msra.mxu0 %v9225_v62  ;;  %v8976_v62 = vcombine.high %v4374_v56, %v4390_v57 }
 0x534   :  { %7741 = vmatpush2.bf16.msra.mxu1 %v9227_v36  ;;  %7701 = vmatprep.subr.bf16.mxu0 %v9194_v40  ;;  %v4341_v36 = vld [vmem:[#allocation12 + $0x230] sm:$0xff] }
 0x535   :  { %7742 = vmatprep.subr.bf16.mxu1 %v9196_v43  ;;  %v4357_v40 = vld [vmem:[#allocation12 + $0x2b0] sm:$0xff]  ;;  %v4342_v43 = vld [vmem:[#allocation12 + $0x238] sm:$0xff] }
 0x536   :  { %v8942_v3 = vcombine.high %v4341_v36, %v4357_v40  ;;  %v8941_v45 = vcombine.low %v4341_v36, %v4357_v40  ;;  %v8943_v13 = vcombine.low %v4342_v43, %v4358_v0  ;;  %v4646_v36 = vld [vmem:[#allocation12 + $0xbb8] sm:$0xff] }
 0x537   :  { %7702 = vmatpush2.bf16.msra.mxu0 %v9193_v4  ;;  %v8944_v4 = vcombine.high %v4342_v43, %v4358_v0 }
 0x538   :  { %7743 = vmatpush2.bf16.msra.mxu1 %v9195_v5  ;;  %7703 = vmatprep.subr.bf16.mxu0 %v9162_v7  ;;  %v4309_v5 = vld [vmem:[#allocation12 + $0x130] sm:$0xff] }
 0x539   :  { %7744 = vmatprep.subr.bf16.mxu1 %v9164_v8  ;;  %v4325_v7 = vld [vmem:[#allocation12 + $0x1b0] sm:$0xff]  ;;  %v4310_v8 = vld [vmem:[#allocation12 + $0x138] sm:$0xff] }
 0x53a   :  { %v8910_v14 = vcombine.high %v4309_v5, %v4325_v7  ;;  %v8909_v20 = vcombine.low %v4309_v5, %v4325_v7  ;;  %v8911_v21 = vcombine.low %v4310_v8, %v4326_v9  ;;  %v4614_v5 = vld [vmem:[#allocation12 + $0xab8] sm:$0xff] }
 0x53b   :  { %7704 = vmatpush2.bf16.msra.mxu0 %v9161_v15  ;;  %v8912_v15 = vcombine.high %v4310_v8, %v4326_v9 }
 0x53c   :  { %7745 = vmatpush2.bf16.msra.mxu1 %v9163_v16  ;;  %7705 = vmatprep.subr.bf16.mxu0 %v9130_v49  ;;  %v4277_v16 = vld [vmem:[#allocation12 + $0x30] sm:$0xff] }
 0x53d   :  { %7746 = vmatprep.subr.bf16.mxu1 %v9132_v17  ;;  %v4293_v49 = vld [vmem:[#allocation12 + $0xb0] sm:$0xff]  ;;  %v4278_v17 = vld [vmem:[#allocation12 + $0x38] sm:$0xff] }
 0x53e   :  { %v8878_v22 = vcombine.high %v4277_v16, %v4293_v49  ;;  %v8877_v6 = vcombine.low %v4277_v16, %v4293_v49  ;;  %v4582_v16 = vld [vmem:[#allocation12 + $0x9b8] sm:$0xff] }
 0x53f   :  { %7706 = vmatpush2.bf16.msra.mxu0 %v9129_v23  ;;  %v8880_v23 = vcombine.high %v4278_v17, %v4294_v18 }
 0x540   :  { %7747 = vmatpush2.bf16.msra.mxu1 %v9131_v24  ;;  %7757 = vmatprep.subr.bf16.mxu0 %v9102_v58  ;;  %v4757_v24 = vld [vmem:[#allocation12 + $0xf30] sm:$0xff] }
 0x541   :  { %7798 = vmatprep.subr.bf16.mxu1 %v9104_v27  ;;  %v4773_v58 = vld [vmem:[#allocation12 + $0xfb0] sm:$0xff]  ;;  %v4758_v27 = vld [vmem:[#allocation12 + $0xf38] sm:$0xff] }
 0x542   :  { %7708 = vmatmul.mubr.bf16.vlgmr.msra.gmra.mxu0 %v10663_v12  ;;  %v9358_v30 = vcombine.high %v4757_v24, %v4773_v58  ;;  %v9360_v10 = vcombine.high %v4758_v27, %v4774_v28  ;;  %v9359_v38 = vcombine.low %v4758_v27, %v4774_v28 }
 0x543   :  { %7749 = vmatmul.mubr.bf16.vlgmr.msra.gmra.mxu1 %v10663_v12  ;;  %7758 = vmatpush1.bf16.msra.mxu0 %v9101_v29  ;;  %v8879_v29 = vcombine.low %v4278_v17, %v4294_v18 }
 0x544   :  { %7789 = vmatprep.mubr.bf16.mxu0 %v10661_v11  ;;  %7799 = vmatpush1.bf16.msra.mxu1 %v9103_v63  ;;  %v4725_v63 = vld [vmem:[#allocation12 + $0xe30] sm:$0xff] }
 0x545   :  { %7830 = vmatprep.mubr.bf16.mxu1 %v10661_v11  ;;  %7759 = vmatprep.subr.bf16.mxu0 %v9070_v31  ;;  %v4741_v31 = vld [vmem:[#allocation12 + $0xeb0] sm:$0xff] }
 0x546   :  { %7800 = vmatprep.subr.bf16.mxu1 %v9072_v35  ;;  %v9357_v35 = vcombine.low %v4757_v24, %v4773_v58  ;;  %v9326_v39 = vcombine.high %v4725_v63, %v4741_v31  ;;  %v9325_v48 = vcombine.low %v4725_v63, %v4741_v31  ;;  %v4550_v24 = vld [vmem:[#allocation12 + $0x8b8] sm:$0xff]  ;;  %v4520_v63 = vld [vmem:[#allocation12 + $0x7c8] sm:$0xff] }
 0x547   :  { %7760 = vmatpush1.bf16.msra.mxu0 %v9069_v41  ;;  %v9328_v41 = vcombine.high %v4726_v33, %v4742_v34 }
 0x548   :  { %7801 = vmatpush1.bf16.msra.mxu1 %v9071_v42  ;;  %7761 = vmatprep.subr.bf16.mxu0 %v9038_v44  ;;  %v4693_v42 = vld [vmem:[#allocation12 + $0xd30] sm:$0xff] }
 0x549   :  { %7802 = vmatprep.subr.bf16.mxu1 %v9040_v46  ;;  %v4709_v44 = vld [vmem:[#allocation12 + $0xdb0] sm:$0xff]  ;;  %v4694_v46 = vld [vmem:[#allocation12 + $0xd38] sm:$0xff] }
 0x54a   :  { %v9294_v50 = vcombine.high %v4693_v42, %v4709_v44  ;;  %v9293_v26 = vcombine.low %v4693_v42, %v4709_v44  ;;  %v9295_v56 = vcombine.low %v4694_v46, %v4710_v47  ;;  %v4471_v42 = vld [vmem:[#allocation12 + $0x640] sm:$0xff] }
 0x54b   :  { %7762 = vmatpush1.bf16.msra.mxu0 %v9037_v51  ;;  %v9296_v51 = vcombine.high %v4694_v46, %v4710_v47  ;;  %v4487_v44 = vld [vmem:[#allocation12 + $0x6c0] sm:$0xff]  ;;  %v4472_v47 = vld [vmem:[#allocation12 + $0x648] sm:$0xff] }
 0x54c   :  { %7803 = vmatpush1.bf16.msra.mxu1 %v9039_v52  ;;  %7763 = vmatprep.subr.bf16.mxu0 %v9006_v53  ;;  %v4661_v52 = vld [vmem:[#allocation12 + $0xc30] sm:$0xff] }
 0x54d   :  { %7804 = vmatprep.subr.bf16.mxu1 %v9008_v54  ;;  %v4677_v53 = vld [vmem:[#allocation12 + $0xcb0] sm:$0xff]  ;;  %v4662_v54 = vld [vmem:[#allocation12 + $0xc38] sm:$0xff] }
 0x54e   :  { %v9262_v57 = vcombine.high %v4661_v52, %v4677_v53  ;;  %v9261_v40 = vcombine.low %v4661_v52, %v4677_v53  ;;  %v9263_v43 = vcombine.low %v4662_v54, %v4678_v55 }
 0x54f   :  { %7764 = vmatpush1.bf16.msra.mxu0 %v9005_v59  ;;  %v9264_v59 = vcombine.high %v4662_v54, %v4678_v55  ;;  %v9074_v55 = vcombine.high %v4471_v42, %v4487_v44 }
 0x550   :  { %7805 = vmatpush1.bf16.msra.mxu1 %v9007_v60  ;;  %7765 = vmatprep.subr.bf16.mxu0 %v8974_v61  ;;  %v4629_v60 = vld [vmem:[#allocation12 + $0xb30] sm:$0xff] }
 0x551   :  { %7806 = vmatprep.subr.bf16.mxu1 %v8976_v62  ;;  %v4645_v61 = vld [vmem:[#allocation12 + $0xbb0] sm:$0xff]  ;;  %v4630_v62 = vld [vmem:[#allocation12 + $0xb38] sm:$0xff] }
 0x552   :  { %v9230_v0 = vcombine.high %v4629_v60, %v4645_v61  ;;  %v9229_v7 = vcombine.low %v4629_v60, %v4645_v61  ;;  %v9231_v8 = vcombine.low %v4630_v62, %v4646_v36 }
 0x553   :  { %7766 = vmatpush1.bf16.msra.mxu0 %v8973_v1  ;;  %v9232_v1 = vcombine.high %v4630_v62, %v4646_v36  ;;  %v9073_v62 = vcombine.low %v4471_v42, %v4487_v44 }
 0x554   :  { %7807 = vmatpush1.bf16.msra.mxu1 %v8975_v2  ;;  %7767 = vmatprep.subr.bf16.mxu0 %v8942_v3  ;;  %v4597_v2 = vld [vmem:[#allocation12 + $0xa30] sm:$0xff] }
 0x555   :  { %7808 = vmatprep.subr.bf16.mxu1 %v8944_v4  ;;  %v4613_v3 = vld [vmem:[#allocation12 + $0xab0] sm:$0xff]  ;;  %v4598_v4 = vld [vmem:[#allocation12 + $0xa38] sm:$0xff] }
 0x556   :  { %v9198_v9 = vcombine.high %v4597_v2, %v4613_v3  ;;  %v9197_v49 = vcombine.low %v4597_v2, %v4613_v3  ;;  %v9199_v17 = vcombine.low %v4598_v4, %v4614_v5 }
 0x557   :  { %7768 = vmatpush1.bf16.msra.mxu0 %v8941_v45  ;;  %v9200_v45 = vcombine.high %v4598_v4, %v4614_v5 }
 0x558   :  { %7809 = vmatpush1.bf16.msra.mxu1 %v8943_v13  ;;  %7769 = vmatprep.subr.bf16.mxu0 %v8910_v14  ;;  %v4565_v13 = vld [vmem:[#allocation12 + $0x930] sm:$0xff] }
 0x559   :  { %7810 = vmatprep.subr.bf16.mxu1 %v8912_v15  ;;  %v4581_v14 = vld [vmem:[#allocation12 + $0x9b0] sm:$0xff]  ;;  %v4566_v15 = vld [vmem:[#allocation12 + $0x938] sm:$0xff] }
 0x55a   :  { %v9166_v18 = vcombine.high %v4565_v13, %v4581_v14  ;;  %v9165_v58 = vcombine.low %v4565_v13, %v4581_v14  ;;  %v9167_v27 = vcombine.low %v4566_v15, %v4582_v16  ;;  %v4408_v13 = vld [vmem:[#allocation12 + $0x448] sm:$0xff] }
 0x55b   :  { %7770 = vmatpush1.bf16.msra.mxu0 %v8909_v20  ;;  %v9168_v20 = vcombine.high %v4566_v15, %v4582_v16  ;;  %v4424_v14 = vld [vmem:[#allocation12 + $0x4c8] sm:$0xff] }
 0x55c   :  { %7811 = vmatpush1.bf16.msra.mxu1 %v8911_v21  ;;  %7771 = vmatprep.subr.bf16.mxu0 %v8878_v22  ;;  %v4533_v21 = vld [vmem:[#allocation12 + $0x830] sm:$0xff] }
 0x55d   :  { %7812 = vmatprep.subr.bf16.mxu1 %v8880_v23  ;;  %v4549_v22 = vld [vmem:[#allocation12 + $0x8b0] sm:$0xff]  ;;  %v4534_v23 = vld [vmem:[#allocation12 + $0x838] sm:$0xff] }
 0x55e   :  { %v9134_v28 = vcombine.high %v4533_v21, %v4549_v22  ;;  %v9133_v31 = vcombine.low %v4533_v21, %v4549_v22  ;;  %v9135_v33 = vcombine.low %v4534_v23, %v4550_v24  ;;  %v9012_v22 = vcombine.high %v4408_v13, %v4424_v14 }
 0x55f   :  { %7772 = vmatpush1.bf16.msra.mxu0 %v8877_v6  ;;  %v9136_v6 = vcombine.high %v4534_v23, %v4550_v24  ;;  %v4375_v23 = vld [vmem:[#allocation12 + $0x340] sm:$0xff] }
 0x560   :  { %7813 = vmatpush1.bf16.msra.mxu1 %v8879_v29  ;;  %7773 = vmatprep.subr.bf16.mxu0 %v9358_v30  ;;  %v4503_v29 = vld [vmem:[#allocation12 + $0x740] sm:$0xff] }
 0x561   :  { %7814 = vmatprep.subr.bf16.mxu1 %v9360_v10  ;;  %v4519_v30 = vld [vmem:[#allocation12 + $0x7c0] sm:$0xff]  ;;  %v4504_v10 = vld [vmem:[#allocation12 + $0x748] sm:$0xff] }
 0x562   :  { %v9106_v34 = vcombine.high %v4503_v29, %v4519_v30  ;;  %v9105_v46 = vcombine.low %v4503_v29, %v4519_v30  ;;  %v4391_v24 = vld [vmem:[#allocation12 + $0x3c0] sm:$0xff] }
 0x563   :  { %7774 = vmatpush2.bf16.msra.mxu0 %v9357_v35  ;;  %v9108_v35 = vcombine.high %v4504_v10, %v4520_v63  ;;  %v8978_v29 = vcombine.high %v4375_v23, %v4391_v24 }
 0x564   :  { %7815 = vmatpush2.bf16.msra.mxu1 %v9359_v38  ;;  %7775 = vmatprep.subr.bf16.mxu0 %v9326_v39  ;;  %v10679_v38 = vld [vmem:[#allocation13] sm:$0xff]  ;;  %v10682_v39 = vsub.s32 2, %v10560_v25 }
 0x565   :  { %7816 = vmatprep.subr.bf16.mxu1 %v9328_v41  ;;  %v10685_v41 = vsub.s32 3, %v10560_v25  ;;  %v4798_v53 = vrot.slane %v10679_v38, %v10572_v37 }
 0x566   :  { %v4802_v52 = vrot.slane %v10679_v38, %v10682_v39 }
 0x567   :  { %7776 = vmatpush2.bf16.msra.mxu0 %v9325_v48  ;;  %v4488_v48 = vld [vmem:[#allocation12 + $0x6c8] sm:$0xff]  ;;  %v4806_v54 = vrot.slane %v10679_v38, %v10685_v41 }
 0x568   :  { %7817 = vmatpush2.bf16.msra.mxu1 %v9327_v19  ;;  %7777 = vmatprep.subr.bf16.mxu0 %v9294_v50  ;;  %v9107_v19 = vcombine.low %v4504_v10, %v4520_v63  ;;  %v4794_v50 = vrot.slane %v10679_v38, %v10566_v32  ;;  %v9076_v61 = vcombine.high %v4472_v47, %v4488_v48  ;;  %v4343_v10 = vld [vmem:[#allocation12 + $0x240] sm:$0xff] }
 0x569   :  { %7818 = vmatprep.subr.bf16.mxu1 %v9296_v51  ;;  %v4439_v51 = vld [vmem:[#allocation12 + $0x540] sm:$0xff]  ;;  %v9075_v36 = vcombine.low %v4472_v47, %v4488_v48  ;;  %v4312_v48 = vld [vmem:[#allocation12 + $0x148] sm:$0xff] }
 0x56a   :  { %v4359_v63 = vld [vmem:[#allocation12 + $0x2c0] sm:$0xff] }
 0x56b   :  { %7778 = vmatpush2.bf16.msra.mxu0 %v9293_v26  ;;  %v4455_v26 = vld [vmem:[#allocation12 + $0x5c0] sm:$0xff]  ;;  %v8946_v42 = vcombine.high %v4343_v10, %v4359_v63 }
 0x56c   :  { %7819 = vmatpush2.bf16.msra.mxu1 %v9295_v56  ;;  %7779 = vmatprep.subr.bf16.mxu0 %v9262_v57  ;;  %v4440_v56 = vld [vmem:[#allocation12 + $0x548] sm:$0xff]  ;;  %v4327_v47 = vld [vmem:[#allocation12 + $0x1c0] sm:$0xff] }
 0x56d   :  { %7820 = vmatprep.subr.bf16.mxu1 %v9264_v59  ;;  %v4456_v57 = vld [vmem:[#allocation12 + $0x5c8] sm:$0xff] }
 0x56e   :  { %v9044_v2 = vcombine.high %v4440_v56, %v4456_v57 }
 0x56f   :  { %7780 = vmatpush2.bf16.msra.mxu0 %v9261_v40 }
 0x570   :  { %7821 = vmatpush2.bf16.msra.mxu1 %v9263_v43  ;;  %7781 = vmatprep.subr.bf16.mxu0 %v9230_v0 }
 0x571   :  { %7822 = vmatprep.subr.bf16.mxu1 %v9232_v1  ;;  %v9042_v1 = vcombine.high %v4439_v51, %v4455_v26 }
 0x573   :  { %7782 = vmatpush2.bf16.msra.mxu0 %v9229_v7  ;;  %v4407_v7 = vld [vmem:[#allocation12 + $0x440] sm:$0xff] }
 0x574   :  { %7823 = vmatpush2.bf16.msra.mxu1 %v9231_v8  ;;  %7783 = vmatprep.subr.bf16.mxu0 %v9198_v9  ;;  %v4423_v8 = vld [vmem:[#allocation12 + $0x4c0] sm:$0xff] }
 0x575   :  { %7824 = vmatprep.subr.bf16.mxu1 %v9200_v45  ;;  %v9010_v21 = vcombine.high %v4407_v7, %v4423_v8 }
 0x577   :  { %7784 = vmatpush2.bf16.msra.mxu0 %v9197_v49  ;;  %v9041_v49 = vcombine.low %v4439_v51, %v4455_v26  ;;  %v4280_v26 = vld [vmem:[#allocation12 + $0x48] sm:$0xff] }
 0x578   :  { %7825 = vmatpush2.bf16.msra.mxu1 %v9199_v17  ;;  %7785 = vmatprep.subr.bf16.mxu0 %v9166_v18 }
 0x579   :  { %7826 = vmatprep.subr.bf16.mxu1 %v9168_v20  ;;  %v9043_v20 = vcombine.low %v4440_v56, %v4456_v57  ;;  %v4296_v56 = vld [vmem:[#allocation12 + $0xc8] sm:$0xff] }
 0x57b   :  { %7786 = vmatpush2.bf16.msra.mxu0 %v9165_v58  ;;  %v4376_v58 = vld [vmem:[#allocation12 + $0x348] sm:$0xff] }
 0x57c   :  { %7827 = vmatpush2.bf16.msra.mxu1 %v9167_v27  ;;  %7787 = vmatprep.subr.bf16.mxu0 %v9134_v28  ;;  %v4392_v27 = vld [vmem:[#allocation12 + $0x3c8] sm:$0xff]  ;;  %v9009_v28 = vcombine.low %v4407_v7, %v4423_v8 }
 0x57d   :  { %7828 = vmatprep.subr.bf16.mxu1 %v9136_v6  ;;  %v9011_v6 = vcombine.low %v4408_v13, %v4424_v14  ;;  %v8980_v30 = vcombine.high %v4376_v58, %v4392_v27  ;;  %v4728_v7 = vld [vmem:[#allocation12 + $0xe48] sm:$0xff] }
 0x57e   :  { %v4744_v8 = vld [vmem:[#allocation12 + $0xec8] sm:$0xff] }
 0x57f   :  { %7788 = vmatpush2.bf16.msra.mxu0 %v9133_v31  ;;  %v4344_v31 = vld [vmem:[#allocation12 + $0x248] sm:$0xff]  ;;  %v9332_v14 = vcombine.high %v4728_v7, %v4744_v8 }
 0x580   :  { %7829 = vmatpush2.bf16.msra.mxu1 %v9135_v33  ;;  %7839 = vmatprep.subr.bf16.mxu0 %v9106_v34  ;;  %v4360_v33 = vld [vmem:[#allocation12 + $0x2c8] sm:$0xff]  ;;  %v8977_v34 = vcombine.low %v4375_v23, %v4391_v24  ;;  %v4663_v23 = vld [vmem:[#allocation12 + $0xc40] sm:$0xff] }
 0x581   :  { %7880 = vmatprep.subr.bf16.mxu1 %v9108_v35  ;;  %v8979_v35 = vcombine.low %v4376_v58, %v4392_v27  ;;  %v8948_v44 = vcombine.high %v4344_v31, %v4360_v33  ;;  %v8947_v51 = vcombine.low %v4344_v31, %v4360_v33  ;;  %v4679_v24 = vld [vmem:[#allocation12 + $0xcc0] sm:$0xff]  ;;  %v4664_v58 = vld [vmem:[#allocation12 + $0xc48] sm:$0xff] }
 0x582   :  { %7790 = vmatmul.mubr.bf16.vlgmr.msra.gmra.mxu0 %v10663_v12  ;;  %v7545_v59 = vpop.f32.mrf.mxu0  ;;  %v7586_v60 = vpop.f32.mrf.mxu1  ;;  %v4680_v27 = vld [vmem:[#allocation12 + $0xcc8] sm:$0xff] }
 0x583   :  { %7831 = vmatmul.mubr.bf16.vlgmr.msra.gmra.mxu1 %v10663_v12  ;;  %7840 = vmatpush1.bf16.msra.mxu0 %v9105_v46  ;;  %v7546_v40 = vadd.f32 %v7545_v59, %v4794_v50  ;;  %v7587_v3 = vadd.f32 %v7586_v60, %v4802_v52  ;;  %v4311_v46 = vld [vmem:[#allocation12 + $0x140] sm:$0xff]  ;;  %v8945_v50 = vcombine.low %v4343_v10, %v4359_v63  ;;  %v4632_v31 = vld [vmem:[#allocation12 + $0xb48] sm:$0xff] }
 0x584   :  { %7871 = vmatprep.mubr.bf16.mxu0 %v10661_v11  ;;  %7881 = vmatpush1.bf16.msra.mxu1 %v9107_v19  ;;  %v7547_v43 = vpop.f32.mrf.mxu0  ;;  %v7588_v0 = vpop.f32.mrf.mxu1  ;;  %v4328_v19 = vld [vmem:[#allocation12 + $0x1c8] sm:$0xff]  ;;  %v8914_v52 = vcombine.high %v4311_v46, %v4327_v47  ;;  %v8913_v57 = vcombine.low %v4311_v46, %v4327_v47  ;;  %v4631_v10 = vld [vmem:[#allocation12 + $0xb40] sm:$0xff] }
 0x585   :  { %7912 = vmatprep.mubr.bf16.mxu1 %v10661_v11  ;;  %v7548_v4 = vadd.f32 %v7547_v43, %v4798_v53  ;;  %v7589_v5 = vadd.f32 %v7588_v0, %v4806_v54  ;;  %7841 = vmatprep.subr.bf16.mxu0 %v9074_v55  ;;  %v8916_v53 = vcombine.high %v4312_v48, %v4328_v19  ;;  %v4279_v54 = vld [vmem:[#allocation12 + $0x40] sm:$0xff]  ;;  %v4776_v43 = vld [vmem:[#allocation12 + $0xfc8] sm:$0xff] }
 0x586   :  { %7882 = vmatprep.subr.bf16.mxu1 %v9076_v61  ;;  %v7549_v9 = vpop.f32.mrf.mxu0  ;;  %v7590_v45 = vpop.f32.mrf.mxu1  ;;  %v4295_v55 = vld [vmem:[#allocation12 + $0xc0] sm:$0xff]  ;;  %v8915_v59 = vcombine.low %v4312_v48, %v4328_v19  ;;  %v8884_v61 = vcombine.high %v4280_v26, %v4296_v56  ;;  %v4648_v33 = vld [vmem:[#allocation12 + $0xbc8] sm:$0xff] }
 0x587   :  { %v9393_v15 = vpack.c.bf16 %v7548_v4, %v7546_v40  ;;  %v9394_v16 = vpack.c.bf16 %v7589_v5, %v7587_v3  ;;  %7842 = vmatpush1.bf16.msra.mxu0 %v9073_v62  ;;  %v8882_v60 = vcombine.high %v4279_v54, %v4295_v55  ;;  %v4759_v62 = vld [vmem:[#allocation12 + $0xf40] sm:$0xff]  ;;  %v4760_v40 = vld [vmem:[#allocation12 + $0xf48] sm:$0xff]  ;;  %v8881_v0 = vcombine.low %v4279_v54, %v4295_v55 }
 0x588   :  { %7883 = vmatpush1.bf16.msra.mxu1 %v9075_v36  ;;  %v7550_v17 = vpop.f32.mrf.mxu0  ;;  %v7591_v18 = vpop.f32.mrf.mxu1  ;;  %7843 = vmatprep.subr.bf16.mxu0 %v9042_v1  ;;  %v4775_v36 = vld [vmem:[#allocation12 + $0xfc0] sm:$0xff]  ;;  %v8883_v1 = vcombine.low %v4280_v26, %v4296_v56  ;;  %v9364_v3 = vcombine.high %v4760_v40, %v4776_v43  ;;  %v9363_v45 = vcombine.low %v4760_v40, %v4776_v43  ;;  %v4600_v48 = vld [vmem:[#allocation12 + $0xa48] sm:$0xff] }
 0x589   :  { %8295 = vst [vmem:[%s10824_s9] sm:$0xff] %v9393_v15  ;;  %8296 = vst [vmem:[%s10824_s9 + $0x8] sm:$0xff] %v9394_v16  ;;  %7884 = vmatprep.subr.bf16.mxu1 %v9044_v2  ;;  %v9362_v2 = vcombine.high %v4759_v62, %v4775_v36  ;;  %v4727_v4 = vld [vmem:[#allocation12 + $0xe40] sm:$0xff]  ;;  %v9361_v9 = vcombine.low %v4759_v62, %v4775_v36  ;;  %v4712_v17 = vld [vmem:[#allocation12 + $0xdc8] sm:$0xff] }
 0x58a   :  { %v4743_v5 = vld [vmem:[#allocation12 + $0xec0] sm:$0xff]  ;;  %v4616_v19 = vld [vmem:[#allocation12 + $0xac8] sm:$0xff] }
 0x58b   :  { %7844 = vmatpush1.bf16.msra.mxu0 %v9041_v49  ;;  %v9330_v13 = vcombine.high %v4727_v4, %v4743_v5  ;;  %v4695_v15 = vld [vmem:[#allocation12 + $0xd40] sm:$0xff]  ;;  %v4696_v49 = vld [vmem:[#allocation12 + $0xd48] sm:$0xff]  ;;  %v9329_v18 = vcombine.low %v4727_v4, %v4743_v5  ;;  %v4505_v4 = vld [vmem:[#allocation12 + $0x750] sm:$0xff] }
 0x58c   :  { %7885 = vmatpush1.bf16.msra.mxu1 %v9043_v20  ;;  %7845 = vmatprep.subr.bf16.mxu0 %v9010_v21  ;;  %v4711_v16 = vld [vmem:[#allocation12 + $0xdc0] sm:$0xff]  ;;  %v9331_v20 = vcombine.low %v4728_v7, %v4744_v8  ;;  %v4568_v26 = vld [vmem:[#allocation12 + $0x948] sm:$0xff]  ;;  %v4521_v5 = vld [vmem:[#allocation12 + $0x7d0] sm:$0xff] }
 0x58d   :  { %7886 = vmatprep.subr.bf16.mxu1 %v9012_v22  ;;  %v9298_v21 = vcombine.high %v4695_v15, %v4711_v16  ;;  %v9300_v22 = vcombine.high %v4696_v49, %v4712_v17  ;;  %v4647_v63 = vld [vmem:[#allocation12 + $0xbc0] sm:$0xff]  ;;  %v4584_v56 = vld [vmem:[#allocation12 + $0x9c8] sm:$0xff]  ;;  %v4506_v7 = vld [vmem:[#allocation12 + $0x758] sm:$0xff] }
 0x58e   :  { %v4599_v46 = vld [vmem:[#allocation12 + $0xa40] sm:$0xff]  ;;  %v4536_v40 = vld [vmem:[#allocation12 + $0x848] sm:$0xff]  ;;  %v4522_v8 = vld [vmem:[#allocation12 + $0x7d8] sm:$0xff] }
 0x58f   :  { %7846 = vmatpush1.bf16.msra.mxu0 %v9009_v28  ;;  %v9297_v28 = vcombine.low %v4695_v15, %v4711_v16  ;;  %v4615_v47 = vld [vmem:[#allocation12 + $0xac0] sm:$0xff]  ;;  %v4552_v43 = vld [vmem:[#allocation12 + $0x8c8] sm:$0xff]  ;;  %v10709_v15 = vsub.s32 6, %v10560_v25  ;;  %v9112_v16 = vcombine.high %v4506_v7, %v4522_v8 }
 0x590   :  { %7887 = vmatpush1.bf16.msra.mxu1 %v9011_v6  ;;  %7847 = vmatprep.subr.bf16.mxu0 %v8978_v29  ;;  %v9299_v6 = vcombine.low %v4696_v49, %v4712_v17  ;;  %v9266_v29 = vcombine.high %v4663_v23, %v4679_v24  ;;  %v4567_v54 = vld [vmem:[#allocation12 + $0x940] sm:$0xff]  ;;  %v10712_v49 = vsub.s32 5, %v10560_v25  ;;  %v10715_v17 = vsub.s32 7, %v10560_v25 }
 0x591   :  { %7888 = vmatprep.subr.bf16.mxu1 %v8980_v30  ;;  %v9268_v30 = vcombine.high %v4664_v58, %v4680_v27  ;;  %v4583_v55 = vld [vmem:[#allocation12 + $0x9c0] sm:$0xff] }
 0x592   :  { %v4535_v62 = vld [vmem:[#allocation12 + $0x840] sm:$0xff] }
 0x593   :  { %7848 = vmatpush1.bf16.msra.mxu0 %v8977_v34  ;;  %v9265_v34 = vcombine.low %v4663_v23, %v4679_v24  ;;  %v4551_v36 = vld [vmem:[#allocation12 + $0x8c0] sm:$0xff]  ;;  %v4490_v23 = vld [vmem:[#allocation12 + $0x6d8] sm:$0xff] }
 0x594   :  { %7889 = vmatpush1.bf16.msra.mxu1 %v8979_v35  ;;  %7849 = vmatprep.subr.bf16.mxu0 %v8946_v42  ;;  %v9267_v35 = vcombine.low %v4664_v58, %v4680_v27  ;;  %v9234_v42 = vcombine.high %v4631_v10, %v4647_v63  ;;  %v9111_v58 = vcombine.low %v4506_v7, %v4522_v8  ;;  %v4441_v27 = vld [vmem:[#allocation12 + $0x550] sm:$0xff] }
 0x595   :  { %7890 = vmatprep.subr.bf16.mxu1 %v8948_v44  ;;  %v9236_v44 = vcombine.high %v4632_v31, %v4648_v33 }
 0x597   :  { %7850 = vmatpush1.bf16.msra.mxu0 %v8945_v50  ;;  %v9233_v50 = vcombine.low %v4631_v10, %v4647_v63  ;;  %v4442_v10 = vld [vmem:[#allocation12 + $0x558] sm:$0xff] }
 0x598   :  { %7891 = vmatpush1.bf16.msra.mxu1 %v8947_v51  ;;  %7851 = vmatprep.subr.bf16.mxu0 %v8914_v52  ;;  %v9235_v51 = vcombine.low %v4632_v31, %v4648_v33  ;;  %v9202_v52 = vcombine.high %v4599_v46, %v4615_v47  ;;  %v4458_v63 = vld [vmem:[#allocation12 + $0x5d8] sm:$0xff] }
 0x599   :  { %7892 = vmatprep.subr.bf16.mxu1 %v8916_v53  ;;  %v9204_v53 = vcombine.high %v4600_v48, %v4616_v19 }
 0x59b   :  { %7852 = vmatpush1.bf16.msra.mxu0 %v8913_v57  ;;  %v9201_v57 = vcombine.low %v4599_v46, %v4615_v47 }
 0x59c   :  { %7893 = vmatpush1.bf16.msra.mxu1 %v8915_v59  ;;  %7853 = vmatprep.subr.bf16.mxu0 %v8882_v60  ;;  %v9203_v59 = vcombine.low %v4600_v48, %v4616_v19  ;;  %v9170_v60 = vcombine.high %v4567_v54, %v4583_v55  ;;  %v9048_v48 = vcombine.high %v4442_v10, %v4458_v63 }
 0x59d   :  { %7894 = vmatprep.subr.bf16.mxu1 %v8884_v61  ;;  %v9172_v61 = vcombine.high %v4568_v26, %v4584_v56 }
 0x59f   :  { %7854 = vmatpush1.bf16.msra.mxu0 %v8881_v0  ;;  %v9169_v0 = vcombine.low %v4567_v54, %v4583_v55 }
 0x5a0   :  { %7895 = vmatpush1.bf16.msra.mxu1 %v8883_v1  ;;  %7855 = vmatprep.subr.bf16.mxu0 %v9362_v2  ;;  %v9171_v1 = vcombine.low %v4568_v26, %v4584_v56  ;;  %v9138_v2 = vcombine.high %v4535_v62, %v4551_v36  ;;  %v4410_v26 = vld [vmem:[#allocation12 + $0x458] sm:$0xff] }
 0x5a1   :  { %7896 = vmatprep.subr.bf16.mxu1 %v9364_v3  ;;  %v9140_v3 = vcombine.high %v4536_v40, %v4552_v43  ;;  %v4426_v56 = vld [vmem:[#allocation12 + $0x4d8] sm:$0xff] }
 0x5a3   :  { %7856 = vmatpush2.bf16.msra.mxu0 %v9361_v9  ;;  %v9137_v9 = vcombine.low %v4535_v62, %v4551_v36  ;;  %v9047_v36 = vcombine.low %v4442_v10, %v4458_v63  ;;  %v4297_v10 = vld [vmem:[#allocation12 + $0xd0] sm:$0xff]  ;;  %v4282_v63 = vld [vmem:[#allocation12 + $0x58] sm:$0xff] }
 0x5a4   :  { %7897 = vmatpush2.bf16.msra.mxu1 %v9363_v45  ;;  %7857 = vmatprep.subr.bf16.mxu0 %v9330_v13  ;;  %v9139_v45 = vcombine.low %v4536_v40, %v4552_v43  ;;  %v10706_v13 = vsub.s32 4, %v10560_v25  ;;  %v4814_v25 = vrot.slane %v10679_v38, %v10712_v49  ;;  %v9016_v43 = vcombine.high %v4410_v26, %v4426_v56 }
 0x5a5   :  { %7898 = vmatprep.subr.bf16.mxu1 %v9332_v14  ;;  %v9110_v14 = vcombine.high %v4505_v4, %v4521_v5 }
 0x5a6   :  { %v4810_v24 = vrot.slane %v10679_v38, %v10706_v13 }
 0x5a7   :  { %7858 = vmatpush2.bf16.msra.mxu0 %v9329_v18  ;;  %v4473_v18 = vld [vmem:[#allocation12 + $0x650] sm:$0xff] }
 0x5a8   :  { %7899 = vmatpush2.bf16.msra.mxu1 %v9331_v20  ;;  %7859 = vmatprep.subr.bf16.mxu0 %v9298_v21  ;;  %v4489_v20 = vld [vmem:[#allocation12 + $0x6d0] sm:$0xff]  ;;  %v9109_v21 = vcombine.low %v4505_v4, %v4521_v5  ;;  %v9015_v5 = vcombine.low %v4410_v26, %v4426_v56 }
 0x5a9   :  { %7900 = vmatprep.subr.bf16.mxu1 %v9300_v22  ;;  %v4474_v22 = vld [vmem:[#allocation12 + $0x658] sm:$0xff] }
 0x5ab   :  { %7860 = vmatpush2.bf16.msra.mxu0 %v9297_v28  ;;  %v4818_v28 = vrot.slane %v10679_v38, %v10709_v15 }
 0x5ac   :  { %7901 = vmatpush2.bf16.msra.mxu1 %v9299_v6  ;;  %7861 = vmatprep.subr.bf16.mxu0 %v9266_v29  ;;  %v4822_v6 = vrot.slane %v10679_v38, %v10715_v17  ;;  %v9078_v29 = vcombine.high %v4473_v18, %v4489_v20 }
 0x5ad   :  { %7902 = vmatprep.subr.bf16.mxu1 %v9268_v30  ;;  %v4457_v30 = vld [vmem:[#allocation12 + $0x5d0] sm:$0xff] }
 0x5ae   :  { %v9046_v47 = vcombine.high %v4441_v27, %v4457_v30 }
 0x5af   :  { %7862 = vmatpush2.bf16.msra.mxu0 %v9265_v34  ;;  %v9080_v34 = vcombine.high %v4474_v22, %v4490_v23 }
 0x5b0   :  { %7903 = vmatpush2.bf16.msra.mxu1 %v9267_v35  ;;  %7863 = vmatprep.subr.bf16.mxu0 %v9234_v42  ;;  %v9077_v35 = vcombine.low %v4473_v18, %v4489_v20  ;;  %v9079_v42 = vcombine.low %v4474_v22, %v4490_v23  ;;  %v4313_v23 = vld [vmem:[#allocation12 + $0x150] sm:$0xff] }
 0x5b1   :  { %7904 = vmatprep.subr.bf16.mxu1 %v9236_v44 }
 0x5b3   :  { %7864 = vmatpush2.bf16.msra.mxu0 %v9233_v50 }
 0x5b4   :  { %7905 = vmatpush2.bf16.msra.mxu1 %v9235_v51  ;;  %7865 = vmatprep.subr.bf16.mxu0 %v9202_v52  ;;  %v4409_v52 = vld [vmem:[#allocation12 + $0x450] sm:$0xff] }
 0x5b5   :  { %7906 = vmatprep.subr.bf16.mxu1 %v9204_v53  ;;  %v4425_v53 = vld [vmem:[#allocation12 + $0x4d0] sm:$0xff] }
 0x5b6   :  { %v9014_v40 = vcombine.high %v4409_v52, %v4425_v53  ;;  %v9013_v4 = vcombine.low %v4409_v52, %v4425_v53  ;;  %v4729_v52 = vld [vmem:[#allocation12 + $0xe50] sm:$0xff] }
 0x5b7   :  { %7866 = vmatpush2.bf16.msra.mxu0 %v9201_v57  ;;  %v4745_v53 = vld [vmem:[#allocation12 + $0xed0] sm:$0xff] }
 0x5b8   :  { %7907 = vmatpush2.bf16.msra.mxu1 %v9203_v59  ;;  %7867 = vmatprep.subr.bf16.mxu0 %v9170_v60  ;;  %v9045_v60 = vcombine.low %v4441_v27, %v4457_v30  ;;  %v4330_v27 = vld [vmem:[#allocation12 + $0x1d8] sm:$0xff]  ;;  %v4281_v30 = vld [vmem:[#allocation12 + $0x50] sm:$0xff] }
 0x5b9   :  { %7908 = vmatprep.subr.bf16.mxu1 %v9172_v61 }
 0x5bb   :  { %7868 = vmatpush2.bf16.msra.mxu0 %v9169_v0  ;;  %v4377_v0 = vld [vmem:[#allocation12 + $0x350] sm:$0xff] }
 0x5bc   :  { %7909 = vmatpush2.bf16.msra.mxu1 %v9171_v1  ;;  %7869 = vmatprep.subr.bf16.mxu0 %v9138_v2  ;;  %v4393_v1 = vld [vmem:[#allocation12 + $0x3d0] sm:$0xff]  ;;  %v4378_v2 = vld [vmem:[#allocation12 + $0x358] sm:$0xff] }
 0x5bd   :  { %7910 = vmatprep.subr.bf16.mxu1 %v9140_v3  ;;  %v4394_v3 = vld [vmem:[#allocation12 + $0x3d8] sm:$0xff]  ;;  %v8982_v7 = vcombine.high %v4377_v0, %v4393_v1  ;;  %v8981_v18 = vcombine.low %v4377_v0, %v4393_v1 }
 0x5be   :  { %v8984_v8 = vcombine.high %v4378_v2, %v4394_v3  ;;  %v8983_v20 = vcombine.low %v4378_v2, %v4394_v3  ;;  %v4665_v2 = vld [vmem:[#allocation12 + $0xc50] sm:$0xff] }
 0x5bf   :  { %7870 = vmatpush2.bf16.msra.mxu0 %v9137_v9  ;;  %v4345_v9 = vld [vmem:[#allocation12 + $0x250] sm:$0xff] }
 0x5c0   :  { %7911 = vmatpush2.bf16.msra.mxu1 %v9139_v45  ;;  %7921 = vmatprep.subr.bf16.mxu0 %v9110_v14  ;;  %v4361_v45 = vld [vmem:[#allocation12 + $0x2d0] sm:$0xff]  ;;  %v4346_v14 = vld [vmem:[#allocation12 + $0x258] sm:$0xff] }
 0x5c1   :  { %7962 = vmatprep.subr.bf16.mxu1 %v9112_v16  ;;  %v4362_v16 = vld [vmem:[#allocation12 + $0x2d8] sm:$0xff]  ;;  %v4681_v3 = vld [vmem:[#allocation12 + $0xcd0] sm:$0xff] }
 0x5c2   :  { %v7627_v31 = vpop.f32.mrf.mxu0  ;;  %v7668_v33 = vpop.f32.mrf.mxu1  ;;  %7872 = vmatmul.mubr.bf16.vlgmr.msra.gmra.mxu0 %v10663_v12  ;;  %v8952_v22 = vcombine.high %v4346_v14, %v4362_v16 }
 0x5c3   :  { %7913 = vmatmul.mubr.bf16.vlgmr.msra.gmra.mxu1 %v10663_v12  ;;  %7922 = vmatpush1.bf16.msra.mxu0 %v9109_v21  ;;  %v7628_v44 = vadd.f32 %v7627_v31, %v4810_v24  ;;  %v7669_v19 = vadd.f32 %v7668_v33, %v4818_v28  ;;  %v8950_v21 = vcombine.high %v4345_v9, %v4361_v45  ;;  %v4329_v24 = vld [vmem:[#allocation12 + $0x1d0] sm:$0xff]  ;;  %v4298_v31 = vld [vmem:[#allocation12 + $0xd8] sm:$0xff] }
 0x5c4   :  { %7953 = vmatprep.mubr.bf16.mxu0 %v10661_v11  ;;  %7963 = vmatpush1.bf16.msra.mxu1 %v9111_v58  ;;  %v7629_v46 = vpop.f32.mrf.mxu0  ;;  %v7670_v38 = vpop.f32.mrf.mxu1  ;;  %v4314_v58 = vld [vmem:[#allocation12 + $0x158] sm:$0xff]  ;;  %v8949_v28 = vcombine.low %v4345_v9, %v4361_v45  ;;  %v8917_v33 = vcombine.low %v4313_v23, %v4329_v24  ;;  %v9270_v9 = vcombine.high %v4665_v2, %v4681_v3 }
 0x5c5   :  { %7994 = vmatprep.mubr.bf16.mxu1 %v10661_v11  ;;  %v7630_v50 = vadd.f32 %v7629_v46, %v4814_v25  ;;  %v7671_v51 = vadd.f32 %v7670_v38, %v4822_v6  ;;  %7923 = vmatprep.subr.bf16.mxu0 %v9078_v29  ;;  %v8951_v25 = vcombine.low %v4346_v14, %v4362_v16  ;;  %v4777_v46 = vld [vmem:[#allocation12 + $0xfd0] sm:$0xff]  ;;  %v4762_v38 = vld [vmem:[#allocation12 + $0xf58] sm:$0xff] }
 0x5c6   :  { %v7631_v54 = vpop.f32.mrf.mxu0  ;;  %v7672_v55 = vpop.f32.mrf.mxu1  ;;  %7964 = vmatprep.subr.bf16.mxu1 %v9080_v34  ;;  %v8918_v6 = vcombine.high %v4313_v23, %v4329_v24  ;;  %v8920_v29 = vcombine.high %v4314_v58, %v4330_v27  ;;  %v8919_v34 = vcombine.low %v4314_v58, %v4330_v27  ;;  %v4633_v14 = vld [vmem:[#allocation12 + $0xb50] sm:$0xff] }
 0x5c7   :  { %v9395_v57 = vpack.c.bf16 %v7630_v50, %v7628_v44  ;;  %v9396_v59 = vpack.c.bf16 %v7671_v51, %v7669_v19  ;;  %7924 = vmatpush1.bf16.msra.mxu0 %v9077_v35  ;;  %v8886_v35 = vcombine.high %v4281_v30, %v4297_v10  ;;  %v4761_v44 = vld [vmem:[#allocation12 + $0xf50] sm:$0xff]  ;;  %v8887_v19 = vcombine.low %v4282_v63, %v4298_v31  ;;  %v4730_v54 = vld [vmem:[#allocation12 + $0xe58] sm:$0xff] }
 0x5c8   :  { %7965 = vmatpush1.bf16.msra.mxu1 %v9079_v42  ;;  %v7632_v61 = vpop.f32.mrf.mxu0  ;;  %v7673_v62 = vpop.f32.mrf.mxu1  ;;  %7925 = vmatprep.subr.bf16.mxu0 %v9046_v47  ;;  %v8888_v42 = vcombine.high %v4282_v63, %v4298_v31  ;;  %v4778_v47 = vld [vmem:[#allocation12 + $0xfd8] sm:$0xff]  ;;  %v9366_v50 = vcombine.high %v4761_v44, %v4777_v46  ;;  %v9365_v26 = vcombine.low %v4761_v44, %v4777_v46  ;;  %v4649_v16 = vld [vmem:[#allocation12 + $0xbd0] sm:$0xff] }
 0x5c9   :  { %8297 = vst [vmem:[%s10824_s9 + $0x10] sm:$0xff] %v9395_v57  ;;  %8298 = vst [vmem:[%s10824_s9 + $0x18] sm:$0xff] %v9396_v59  ;;  %7966 = vmatprep.subr.bf16.mxu1 %v9048_v48  ;;  %v8885_v48 = vcombine.low %v4281_v30, %v4297_v10  ;;  %v9368_v51 = vcombine.high %v4762_v38, %v4778_v47  ;;  %v4746_v55 = vld [vmem:[#allocation12 + $0xed8] sm:$0xff]  ;;  %v9367_v56 = vcombine.low %v4762_v38, %v4778_v47  ;;  %v4713_v61 = vld [vmem:[#allocation12 + $0xdd0] sm:$0xff] }
 0x5ca   :  { %v9334_v57 = vcombine.high %v4729_v52, %v4745_v53  ;;  %v9336_v59 = vcombine.high %v4730_v54, %v4746_v55  ;;  %v4698_v62 = vld [vmem:[#allocation12 + $0xd58] sm:$0xff]  ;;  %v9238_v23 = vcombine.high %v4633_v14, %v4649_v16  ;;  %v4601_v58 = vld [vmem:[#allocation12 + $0xa50] sm:$0xff] }
 0x5cb   :  { %7926 = vmatpush1.bf16.msra.mxu0 %v9045_v60  ;;  %v4697_v60 = vld [vmem:[#allocation12 + $0xd50] sm:$0xff] }
 0x5cc   :  { %7967 = vmatpush1.bf16.msra.mxu1 %v9047_v36  ;;  %7927 = vmatprep.subr.bf16.mxu0 %v9014_v40  ;;  %v4714_v36 = vld [vmem:[#allocation12 + $0xdd8] sm:$0xff]  ;;  %v9333_v40 = vcombine.low %v4729_v52, %v4745_v53  ;;  %v9302_v0 = vcombine.high %v4697_v60, %v4713_v61  ;;  %v4617_v27 = vld [vmem:[#allocation12 + $0xad0] sm:$0xff] }
 0x5cd   :  { %7968 = vmatprep.subr.bf16.mxu1 %v9016_v43  ;;  %v9335_v43 = vcombine.low %v4730_v54, %v4746_v55  ;;  %v9304_v1 = vcombine.high %v4698_v62, %v4714_v36  ;;  %v9206_v30 = vcombine.high %v4601_v58, %v4617_v27  ;;  %v4569_v63 = vld [vmem:[#allocation12 + $0x950] sm:$0xff]  ;;  %v4507_v54 = vld [vmem:[#allocation12 + $0x760] sm:$0xff] }
 0x5ce   :  { %v4585_v31 = vld [vmem:[#allocation12 + $0x9d0] sm:$0xff]  ;;  %v4523_v55 = vld [vmem:[#allocation12 + $0x7e0] sm:$0xff] }
 0x5cf   :  { %7928 = vmatpush1.bf16.msra.mxu0 %v9013_v4  ;;  %v4666_v4 = vld [vmem:[#allocation12 + $0xc58] sm:$0xff]  ;;  %v9174_v44 = vcombine.high %v4569_v63, %v4585_v31  ;;  %v4537_v38 = vld [vmem:[#allocation12 + $0x850] sm:$0xff] }
 0x5d0   :  { %7969 = vmatpush1.bf16.msra.mxu1 %v9015_v5  ;;  %7929 = vmatprep.subr.bf16.mxu0 %v8982_v7  ;;  %v4682_v5 = vld [vmem:[#allocation12 + $0xcd8] sm:$0xff]  ;;  %v9301_v7 = vcombine.low %v4697_v60, %v4713_v61  ;;  %v4553_v47 = vld [vmem:[#allocation12 + $0x8d0] sm:$0xff]  ;;  %v9114_v60 = vcombine.high %v4507_v54, %v4523_v55 }
 0x5d1   :  { %7970 = vmatprep.subr.bf16.mxu1 %v8984_v8  ;;  %v9303_v8 = vcombine.low %v4698_v62, %v4714_v36  ;;  %v9272_v45 = vcombine.high %v4666_v4, %v4682_v5  ;;  %v9142_v52 = vcombine.high %v4537_v38, %v4553_v47  ;;  %v10735_v62 = vld [vmem:[#allocation13 + $0x8] sm:$0xff]  ;;  %v4475_v36 = vld [vmem:[#allocation12 + $0x660] sm:$0xff] }
 0x5d3   :  { %7930 = vmatpush1.bf16.msra.mxu0 %v8981_v18  ;;  %v4634_v18 = vld [vmem:[#allocation12 + $0xb58] sm:$0xff] }
 0x5d4   :  { %7971 = vmatpush1.bf16.msra.mxu1 %v8983_v20  ;;  %7931 = vmatprep.subr.bf16.mxu0 %v8950_v21  ;;  %v4650_v20 = vld [vmem:[#allocation12 + $0xbd8] sm:$0xff]  ;;  %v9269_v21 = vcombine.low %v4665_v2, %v4681_v3  ;;  %v4826_v3 = vrot.slane %v10735_v62, %v10566_v32 }
 0x5d5   :  { %7972 = vmatprep.subr.bf16.mxu1 %v8952_v22  ;;  %v9271_v22 = vcombine.low %v4666_v4, %v4682_v5  ;;  %v9240_v24 = vcombine.high %v4634_v18, %v4650_v20  ;;  %v4830_v4 = vrot.slane %v10735_v62, %v10572_v37 }
 0x5d7   :  { %7932 = vmatpush1.bf16.msra.mxu0 %v8949_v28  ;;  %v4602_v28 = vld [vmem:[#allocation12 + $0xa58] sm:$0xff] }
 0x5d8   :  { %7973 = vmatpush1.bf16.msra.mxu1 %v8951_v25  ;;  %7933 = vmatprep.subr.bf16.mxu0 %v8918_v6  ;;  %v4618_v25 = vld [vmem:[#allocation12 + $0xad8] sm:$0xff]  ;;  %v9237_v6 = vcombine.low %v4633_v14, %v4649_v16  ;;  %v4838_v14 = vrot.slane %v10735_v62, %v10685_v41 }
 0x5d9   :  { %7974 = vmatprep.subr.bf16.mxu1 %v8920_v29  ;;  %v9239_v29 = vcombine.low %v4634_v18, %v4650_v20  ;;  %v9208_v10 = vcombine.high %v4602_v28, %v4618_v25  ;;  %v4444_v18 = vld [vmem:[#allocation12 + $0x568] sm:$0xff] }
 0x5da   :  { %v4460_v20 = vld [vmem:[#allocation12 + $0x5e8] sm:$0xff] }
 0x5db   :  { %7934 = vmatpush1.bf16.msra.mxu0 %v8917_v33  ;;  %v4570_v33 = vld [vmem:[#allocation12 + $0x958] sm:$0xff] }
 0x5dc   :  { %7975 = vmatpush1.bf16.msra.mxu1 %v8919_v34  ;;  %7935 = vmatprep.subr.bf16.mxu0 %v8886_v35  ;;  %v4586_v34 = vld [vmem:[#allocation12 + $0x9d8] sm:$0xff]  ;;  %v9205_v35 = vcombine.low %v4601_v58, %v4617_v27 }
 0x5dd   :  { %7976 = vmatprep.subr.bf16.mxu1 %v8888_v42  ;;  %v9207_v42 = vcombine.low %v4602_v28, %v4618_v25  ;;  %v9176_v46 = vcombine.high %v4570_v33, %v4586_v34 }
 0x5df   :  { %7936 = vmatpush1.bf16.msra.mxu0 %v8885_v48  ;;  %v4538_v48 = vld [vmem:[#allocation12 + $0x858] sm:$0xff] }
 0x5e0   :  { %7977 = vmatpush1.bf16.msra.mxu1 %v8887_v19  ;;  %7937 = vmatprep.subr.bf16.mxu0 %v9366_v50  ;;  %v4554_v19 = vld [vmem:[#allocation12 + $0x8d8] sm:$0xff]  ;;  %v9173_v50 = vcombine.low %v4569_v63, %v4585_v31 }
 0x5e1   :  { %7978 = vmatprep.subr.bf16.mxu1 %v9368_v51  ;;  %v9175_v51 = vcombine.low %v4570_v33, %v4586_v34  ;;  %v9144_v53 = vcombine.high %v4538_v48, %v4554_v19  ;;  %v4412_v33 = vld [vmem:[#allocation12 + $0x468] sm:$0xff] }
 0x5e2   :  { %v4428_v34 = vld [vmem:[#allocation12 + $0x4e8] sm:$0xff] }
 0x5e3   :  { %7938 = vmatpush2.bf16.msra.mxu0 %v9365_v26  ;;  %v4508_v26 = vld [vmem:[#allocation12 + $0x768] sm:$0xff] }
 0x5e4   :  { %7979 = vmatpush2.bf16.msra.mxu1 %v9367_v56  ;;  %7939 = vmatprep.subr.bf16.mxu0 %v9334_v57  ;;  %v4524_v56 = vld [vmem:[#allocation12 + $0x7e8] sm:$0xff]  ;;  %v9141_v57 = vcombine.low %v4537_v38, %v4553_v47  ;;  %v9051_v47 = vcombine.low %v4444_v18, %v4460_v20 }
 0x5e5   :  { %7980 = vmatprep.subr.bf16.mxu1 %v9336_v59  ;;  %v9143_v59 = vcombine.low %v4538_v48, %v4554_v19  ;;  %v9116_v61 = vcombine.high %v4508_v26, %v4524_v56  ;;  %v9115_v2 = vcombine.low %v4508_v26, %v4524_v56  ;;  %v9019_v26 = vcombine.low %v4412_v33, %v4428_v34 }
 0x5e7   :  { %7940 = vmatpush2.bf16.msra.mxu0 %v9333_v40  ;;  %v4491_v40 = vld [vmem:[#allocation12 + $0x6e0] sm:$0xff] }
 0x5e8   :  { %7981 = vmatpush2.bf16.msra.mxu1 %v9335_v43  ;;  %7941 = vmatprep.subr.bf16.mxu0 %v9302_v0  ;;  %v9113_v43 = vcombine.low %v4507_v54, %v4523_v55  ;;  %v4476_v0 = vld [vmem:[#allocation12 + $0x668] sm:$0xff]  ;;  %v9082_v5 = vcombine.high %v4475_v36, %v4491_v40 }
 0x5e9   :  { %7982 = vmatprep.subr.bf16.mxu1 %v9304_v1  ;;  %v4492_v1 = vld [vmem:[#allocation12 + $0x6e8] sm:$0xff] }
 0x5ea   :  { %v9084_v16 = vcombine.high %v4476_v0, %v4492_v1  ;;  %v4396_v54 = vld [vmem:[#allocation12 + $0x3e8] sm:$0xff] }
 0x5eb   :  { %7942 = vmatpush2.bf16.msra.mxu0 %v9301_v7  ;;  %v4443_v7 = vld [vmem:[#allocation12 + $0x560] sm:$0xff] }
 0x5ec   :  { %7983 = vmatpush2.bf16.msra.mxu1 %v9303_v8  ;;  %7943 = vmatprep.subr.bf16.mxu0 %v9270_v9  ;;  %v4459_v8 = vld [vmem:[#allocation12 + $0x5e0] sm:$0xff] }
 0x5ed   :  { %7984 = vmatprep.subr.bf16.mxu1 %v9272_v45  ;;  %v4834_v45 = vrot.slane %v10735_v62, %v10682_v39  ;;  %v9050_v58 = vcombine.high %v4443_v7, %v4459_v8 }
 0x5ef   :  { %7944 = vmatpush2.bf16.msra.mxu0 %v9269_v21 }
 0x5f0   :  { %7985 = vmatpush2.bf16.msra.mxu1 %v9271_v22  ;;  %7945 = vmatprep.subr.bf16.mxu0 %v9238_v23  ;;  %v9081_v22 = vcombine.low %v4475_v36, %v4491_v40  ;;  %v4364_v36 = vld [vmem:[#allocation12 + $0x2e8] sm:$0xff] }
 0x5f1   :  { %7986 = vmatprep.subr.bf16.mxu1 %v9240_v24  ;;  %v9083_v24 = vcombine.low %v4476_v0, %v4492_v1 }
 0x5f3   :  { %7946 = vmatpush2.bf16.msra.mxu0 %v9237_v6  ;;  %v9052_v6 = vcombine.high %v4444_v18, %v4460_v20  ;;  %v4284_v18 = vld [vmem:[#allocation12 + $0x68] sm:$0xff] }
 0x5f4   :  { %7987 = vmatpush2.bf16.msra.mxu1 %v9239_v29  ;;  %7947 = vmatprep.subr.bf16.mxu0 %v9206_v30  ;;  %v4411_v29 = vld [vmem:[#allocation12 + $0x460] sm:$0xff]  ;;  %v4300_v20 = vld [vmem:[#allocation12 + $0xe8] sm:$0xff] }
 0x5f5   :  { %7988 = vmatprep.subr.bf16.mxu1 %v9208_v10  ;;  %v4427_v30 = vld [vmem:[#allocation12 + $0x4e0] sm:$0xff] }
 0x5f6   :  { %v9018_v48 = vcombine.high %v4411_v29, %v4427_v30  ;;  %v9017_v55 = vcombine.low %v4411_v29, %v4427_v30  ;;  %v8891_v29 = vcombine.low %v4284_v18, %v4300_v20 }
 0x5f7   :  { %7948 = vmatpush2.bf16.msra.mxu0 %v9205_v35 }
 0x5f8   :  { %7989 = vmatpush2.bf16.msra.mxu1 %v9207_v42  ;;  %7949 = vmatprep.subr.bf16.mxu0 %v9174_v44  ;;  %v9049_v44 = vcombine.low %v4443_v7, %v4459_v8 }
 0x5f9   :  { %7990 = vmatprep.subr.bf16.mxu1 %v9176_v46 }
 0x5fb   :  { %7950 = vmatpush2.bf16.msra.mxu0 %v9173_v50  ;;  %v9020_v50 = vcombine.high %v4412_v33, %v4428_v34  ;;  %v4732_v33 = vld [vmem:[#allocation12 + $0xe68] sm:$0xff] }
 0x5fc   :  { %7991 = vmatpush2.bf16.msra.mxu1 %v9175_v51  ;;  %7951 = vmatprep.subr.bf16.mxu0 %v9142_v52  ;;  %v4379_v51 = vld [vmem:[#allocation12 + $0x360] sm:$0xff]  ;;  %v4748_v34 = vld [vmem:[#allocation12 + $0xee8] sm:$0xff] }
 0x5fd   :  { %7992 = vmatprep.subr.bf16.mxu1 %v9144_v53  ;;  %v4395_v52 = vld [vmem:[#allocation12 + $0x3e0] sm:$0xff]  ;;  %v4380_v53 = vld [vmem:[#allocation12 + $0x368] sm:$0xff] }
 0x5fe   :  { %v8986_v56 = vcombine.high %v4379_v51, %v4395_v52  ;;  %v8985_v40 = vcombine.low %v4379_v51, %v4395_v52  ;;  %v9339_v51 = vcombine.low %v4732_v33, %v4748_v34 }
 0x5ff   :  { %7952 = vmatpush2.bf16.msra.mxu0 %v9141_v57  ;;  %v8988_v57 = vcombine.high %v4380_v53, %v4396_v54 }
 0x600   :  { %7993 = vmatpush2.bf16.msra.mxu1 %v9143_v59  ;;  %8003 = vmatprep.subr.bf16.mxu0 %v9114_v60  ;;  %v4347_v59 = vld [vmem:[#allocation12 + $0x260] sm:$0xff] }
 0x601   :  { %8044 = vmatprep.subr.bf16.mxu1 %v9116_v61  ;;  %v4363_v60 = vld [vmem:[#allocation12 + $0x2e0] sm:$0xff]  ;;  %v4348_v61 = vld [vmem:[#allocation12 + $0x268] sm:$0xff] }
 0x602   :  { %v7709_v9 = vpop.f32.mrf.mxu0  ;;  %7954 = vmatmul.mubr.bf16.vlgmr.msra.gmra.mxu0 %v10663_v12  ;;  %v8954_v0 = vcombine.high %v4347_v59, %v4363_v60  ;;  %v8956_v1 = vcombine.high %v4348_v61, %v4364_v36  ;;  %v8953_v7 = vcombine.low %v4347_v59, %v4363_v60  ;;  %v8955_v8 = vcombine.low %v4348_v61, %v4364_v36  ;;  %v4635_v36 = vld [vmem:[#allocation12 + $0xb60] sm:$0xff] }
 0x603   :  { %v7750_v21 = vpop.f32.mrf.mxu1  ;;  %7995 = vmatmul.mubr.bf16.vlgmr.msra.gmra.mxu1 %v10663_v12  ;;  %8004 = vmatpush1.bf16.msra.mxu0 %v9113_v43  ;;  %v7710_v27 = vadd.f32 %v7709_v9, %v4826_v3  ;;  %v8987_v43 = vcombine.low %v4380_v53, %v4396_v54  ;;  %v4331_v3 = vld [vmem:[#allocation12 + $0x1e0] sm:$0xff] }
 0x604   :  { %8035 = vmatprep.mubr.bf16.mxu0 %v10661_v11  ;;  %8045 = vmatpush1.bf16.msra.mxu1 %v9115_v2  ;;  %v7711_v23 = vpop.f32.mrf.mxu0  ;;  %v7751_v10 = vadd.f32 %v7750_v21, %v4834_v45  ;;  %v4315_v2 = vld [vmem:[#allocation12 + $0x160] sm:$0xff] }
 0x605   :  { %8076 = vmatprep.mubr.bf16.mxu1 %v10661_v11  ;;  %v7712_v28 = vadd.f32 %v7711_v23, %v4830_v4  ;;  %v7752_v25 = vpop.f32.mrf.mxu1  ;;  %8005 = vmatprep.subr.bf16.mxu0 %v9082_v5  ;;  %v4316_v4 = vld [vmem:[#allocation12 + $0x168] sm:$0xff]  ;;  %v8922_v9 = vcombine.high %v4315_v2, %v4331_v3  ;;  %v8921_v21 = vcombine.low %v4315_v2, %v4331_v3  ;;  %v4667_v54 = vld [vmem:[#allocation12 + $0xc60] sm:$0xff] }
 0x606   :  { %v7753_v63 = vadd.f32 %v7752_v25, %v4838_v14  ;;  %v7713_v31 = vpop.f32.mrf.mxu0  ;;  %8046 = vmatprep.subr.bf16.mxu1 %v9084_v16  ;;  %v4332_v5 = vld [vmem:[#allocation12 + $0x1e8] sm:$0xff]  ;;  %v4283_v14 = vld [vmem:[#allocation12 + $0x60] sm:$0xff] }
 0x607   :  { %v9397_v35 = vpack.c.bf16 %v7712_v28, %v7710_v27  ;;  %v7754_v42 = vpop.f32.mrf.mxu1  ;;  %8006 = vmatpush1.bf16.msra.mxu0 %v9081_v22  ;;  %v8924_v45 = vcombine.high %v4316_v4, %v4332_v5  ;;  %v4299_v16 = vld [vmem:[#allocation12 + $0xe0] sm:$0xff]  ;;  %v8923_v22 = vcombine.low %v4316_v4, %v4332_v5  ;;  %v4764_v28 = vld [vmem:[#allocation12 + $0xf68] sm:$0xff] }
 0x608   :  { %v9398_v46 = vpack.c.bf16 %v7753_v63, %v7751_v10  ;;  %8047 = vmatpush1.bf16.msra.mxu1 %v9083_v24  ;;  %v7714_v38 = vpop.f32.mrf.mxu0  ;;  %8007 = vmatprep.subr.bf16.mxu0 %v9050_v58  ;;  %v8890_v23 = vcombine.high %v4283_v14, %v4299_v16  ;;  %v8892_v24 = vcombine.high %v4284_v18, %v4300_v20  ;;  %v4763_v58 = vld [vmem:[#allocation12 + $0xf60] sm:$0xff]  ;;  %v4780_v25 = vld [vmem:[#allocation12 + $0xfe8] sm:$0xff] }
 0x609   :  { %8299 = vst [vmem:[%s10824_s9 + $0x20] sm:$0xff] %v9397_v35  ;;  %v7755_v19 = vpop.f32.mrf.mxu1  ;;  %8048 = vmatprep.subr.bf16.mxu1 %v9052_v6  ;;  %v4779_v27 = vld [vmem:[#allocation12 + $0xfe0] sm:$0xff]  ;;  %v8889_v6 = vcombine.low %v4283_v14, %v4299_v16  ;;  %v9372_v10 = vcombine.high %v4764_v28, %v4780_v25  ;;  %v9371_v42 = vcombine.low %v4764_v28, %v4780_v25 }
 0x60a   :  { %8300 = vst [vmem:[%s10824_s9 + $0x28] sm:$0xff] %v9398_v46  ;;  %v9370_v30 = vcombine.high %v4763_v58, %v4779_v27  ;;  %v4731_v63 = vld [vmem:[#allocation12 + $0xe60] sm:$0xff]  ;;  %v9369_v35 = vcombine.low %v4763_v58, %v4779_v27  ;;  %v9340_v46 = vcombine.high %v4732_v33, %v4748_v34  ;;  %v4716_v19 = vld [vmem:[#allocation12 + $0xde8] sm:$0xff]  ;;  %v4509_v34 = vld [vmem:[#allocation12 + $0x770] sm:$0xff] }
 0x60b   :  { %8008 = vmatpush1.bf16.msra.mxu0 %v9049_v44  ;;  %v4747_v31 = vld [vmem:[#allocation12 + $0xee0] sm:$0xff] }
 0x60c   :  { %8049 = vmatpush1.bf16.msra.mxu1 %v9051_v47  ;;  %8009 = vmatprep.subr.bf16.mxu0 %v9018_v48  ;;  %v9338_v44 = vcombine.high %v4731_v63, %v4747_v31  ;;  %v4699_v38 = vld [vmem:[#allocation12 + $0xd60] sm:$0xff]  ;;  %v4700_v48 = vld [vmem:[#allocation12 + $0xd68] sm:$0xff] }
 0x60d   :  { %8050 = vmatprep.subr.bf16.mxu1 %v9020_v50  ;;  %v4715_v47 = vld [vmem:[#allocation12 + $0xde0] sm:$0xff]  ;;  %v9337_v50 = vcombine.low %v4731_v63, %v4747_v31  ;;  %v9308_v53 = vcombine.high %v4700_v48, %v4716_v19  ;;  %v9307_v59 = vcombine.low %v4700_v48, %v4716_v19  ;;  %v4477_v19 = vld [vmem:[#allocation12 + $0x670] sm:$0xff] }
 0x60e   :  { %v9306_v52 = vcombine.high %v4699_v38, %v4715_v47  ;;  %v4603_v5 = vld [vmem:[#allocation12 + $0xa60] sm:$0xff] }
 0x60f   :  { %8010 = vmatpush1.bf16.msra.mxu0 %v9017_v55  ;;  %v4683_v55 = vld [vmem:[#allocation12 + $0xce0] sm:$0xff] }
 0x610   :  { %8051 = vmatpush1.bf16.msra.mxu1 %v9019_v26  ;;  %8011 = vmatprep.subr.bf16.mxu0 %v8986_v56  ;;  %v4668_v26 = vld [vmem:[#allocation12 + $0xc68] sm:$0xff]  ;;  %v9274_v60 = vcombine.high %v4667_v54, %v4683_v55  ;;  %v4571_v20 = vld [vmem:[#allocation12 + $0x960] sm:$0xff] }
 0x611   :  { %8052 = vmatprep.subr.bf16.mxu1 %v8988_v57  ;;  %v4684_v56 = vld [vmem:[#allocation12 + $0xce8] sm:$0xff]  ;;  %v9305_v57 = vcombine.low %v4699_v38, %v4715_v47  ;;  %v4539_v25 = vld [vmem:[#allocation12 + $0x860] sm:$0xff] }
 0x612   :  { %v9276_v61 = vcombine.high %v4668_v26, %v4684_v56  ;;  %v9275_v2 = vcombine.low %v4668_v26, %v4684_v56  ;;  %v4846_v26 = vrot.slane %v10735_v62, %v10712_v49 }
 0x613   :  { %8012 = vmatpush1.bf16.msra.mxu0 %v8985_v40  ;;  %v4651_v40 = vld [vmem:[#allocation12 + $0xbe0] sm:$0xff] }
 0x614   :  { %8053 = vmatpush1.bf16.msra.mxu1 %v8987_v43  ;;  %8013 = vmatprep.subr.bf16.mxu0 %v8954_v0  ;;  %v4636_v43 = vld [vmem:[#allocation12 + $0xb68] sm:$0xff]  ;;  %v9242_v3 = vcombine.high %v4635_v36, %v4651_v40 }
 0x615   :  { %8054 = vmatprep.subr.bf16.mxu1 %v8956_v1  ;;  %v4652_v0 = vld [vmem:[#allocation12 + $0xbe8] sm:$0xff]  ;;  %v9273_v1 = vcombine.low %v4667_v54, %v4683_v55  ;;  %v4842_v55 = vrot.slane %v10735_v62, %v10706_v13 }
 0x616   :  { %v9244_v4 = vcombine.high %v4636_v43, %v4652_v0  ;;  %v9243_v14 = vcombine.low %v4636_v43, %v4652_v0  ;;  %v4446_v43 = vld [vmem:[#allocation12 + $0x578] sm:$0xff] }
 0x617   :  { %8014 = vmatpush1.bf16.msra.mxu0 %v8953_v7  ;;  %v4619_v7 = vld [vmem:[#allocation12 + $0xae0] sm:$0xff]  ;;  %v4462_v0 = vld [vmem:[#allocation12 + $0x5f8] sm:$0xff] }
 0x618   :  { %8055 = vmatpush1.bf16.msra.mxu1 %v8955_v8  ;;  %8015 = vmatprep.subr.bf16.mxu0 %v8922_v9  ;;  %v4604_v8 = vld [vmem:[#allocation12 + $0xa68] sm:$0xff]  ;;  %v9210_v16 = vcombine.high %v4603_v5, %v4619_v7 }
 0x619   :  { %8056 = vmatprep.subr.bf16.mxu1 %v8924_v45  ;;  %v4620_v9 = vld [vmem:[#allocation12 + $0xae8] sm:$0xff]  ;;  %v9241_v45 = vcombine.low %v4635_v36, %v4651_v40  ;;  %v4854_v36 = vrot.slane %v10735_v62, %v10715_v17 }
 0x61a   :  { %v9212_v18 = vcombine.high %v4604_v8, %v4620_v9  ;;  %v9211_v58 = vcombine.low %v4604_v8, %v4620_v9 }
 0x61b   :  { %8016 = vmatpush1.bf16.msra.mxu0 %v8921_v21  ;;  %v4587_v21 = vld [vmem:[#allocation12 + $0x9e0] sm:$0xff] }
 0x61c   :  { %8057 = vmatpush1.bf16.msra.mxu1 %v8923_v22  ;;  %8017 = vmatprep.subr.bf16.mxu0 %v8890_v23  ;;  %v4572_v22 = vld [vmem:[#allocation12 + $0x968] sm:$0xff]  ;;  %v9178_v27 = vcombine.high %v4571_v20, %v4587_v21 }
 0x61d   :  { %8058 = vmatprep.subr.bf16.mxu1 %v8892_v24  ;;  %v4588_v23 = vld [vmem:[#allocation12 + $0x9e8] sm:$0xff]  ;;  %v9209_v24 = vcombine.low %v4603_v5, %v4619_v7 }
 0x61e   :  { %v9180_v28 = vcombine.high %v4572_v22, %v4588_v23  ;;  %v9179_v63 = vcombine.low %v4572_v22, %v4588_v23  ;;  %v4430_v22 = vld [vmem:[#allocation12 + $0x4f8] sm:$0xff] }
 0x61f   :  { %8018 = vmatpush1.bf16.msra.mxu0 %v8889_v6  ;;  %v4555_v6 = vld [vmem:[#allocation12 + $0x8e0] sm:$0xff] }
 0x620   :  { %8059 = vmatpush1.bf16.msra.mxu1 %v8891_v29  ;;  %8019 = vmatprep.subr.bf16.mxu0 %v9370_v30  ;;  %v4540_v29 = vld [vmem:[#allocation12 + $0x868] sm:$0xff]  ;;  %v9146_v31 = vcombine.high %v4539_v25, %v4555_v6 }
 0x621   :  { %8060 = vmatprep.subr.bf16.mxu1 %v9372_v10  ;;  %v4556_v30 = vld [vmem:[#allocation12 + $0x8e8] sm:$0xff]  ;;  %v9177_v10 = vcombine.low %v4571_v20, %v4587_v21  ;;  %v4414_v21 = vld [vmem:[#allocation12 + $0x478] sm:$0xff] }
 0x622   :  { %v9148_v33 = vcombine.high %v4540_v29, %v4556_v30  ;;  %v9147_v38 = vcombine.low %v4540_v29, %v4556_v30  ;;  %v9024_v29 = vcombine.high %v4414_v21, %v4430_v22  ;;  %v4381_v30 = vld [vmem:[#allocation12 + $0x370] sm:$0xff] }
 0x623   :  { %8020 = vmatpush2.bf16.msra.mxu0 %v9369_v35  ;;  %v4525_v35 = vld [vmem:[#allocation12 + $0x7f0] sm:$0xff] }
 0x624   :  { %8061 = vmatpush2.bf16.msra.mxu1 %v9371_v42  ;;  %8021 = vmatprep.subr.bf16.mxu0 %v9338_v44  ;;  %v4510_v42 = vld [vmem:[#allocation12 + $0x778] sm:$0xff]  ;;  %v9118_v47 = vcombine.high %v4509_v34, %v4525_v35 }
 0x625   :  { %8062 = vmatprep.subr.bf16.mxu1 %v9340_v46  ;;  %v4526_v44 = vld [vmem:[#allocation12 + $0x7f8] sm:$0xff]  ;;  %v9145_v46 = vcombine.low %v4539_v25, %v4555_v6 }
 0x626   :  { %v9120_v48 = vcombine.high %v4510_v42, %v4526_v44  ;;  %v9119_v54 = vcombine.low %v4510_v42, %v4526_v44  ;;  %v4349_v44 = vld [vmem:[#allocation12 + $0x270] sm:$0xff] }
 0x627   :  { %8022 = vmatpush2.bf16.msra.mxu0 %v9337_v50  ;;  %v4493_v50 = vld [vmem:[#allocation12 + $0x6f0] sm:$0xff] }
 0x628   :  { %8063 = vmatpush2.bf16.msra.mxu1 %v9339_v51  ;;  %8023 = vmatprep.subr.bf16.mxu0 %v9306_v52  ;;  %v9117_v51 = vcombine.low %v4509_v34, %v4525_v35  ;;  %v4478_v52 = vld [vmem:[#allocation12 + $0x678] sm:$0xff]  ;;  %v9086_v56 = vcombine.high %v4477_v19, %v4493_v50  ;;  %v9023_v34 = vcombine.low %v4414_v21, %v4430_v22 }
 0x629   :  { %8064 = vmatprep.subr.bf16.mxu1 %v9308_v53  ;;  %v4494_v53 = vld [vmem:[#allocation12 + $0x6f8] sm:$0xff] }
 0x62a   :  { %v9088_v40 = vcombine.high %v4478_v52, %v4494_v53 }
 0x62b   :  { %8024 = vmatpush2.bf16.msra.mxu0 %v9305_v57  ;;  %v4445_v57 = vld [vmem:[#allocation12 + $0x570] sm:$0xff] }
 0x62c   :  { %8065 = vmatpush2.bf16.msra.mxu1 %v9307_v59  ;;  %8025 = vmatprep.subr.bf16.mxu0 %v9274_v60  ;;  %v4461_v59 = vld [vmem:[#allocation12 + $0x5f0] sm:$0xff] }
 0x62d   :  { %8066 = vmatprep.subr.bf16.mxu1 %v9276_v61  ;;  %v4850_v61 = vrot.slane %v10735_v62, %v10709_v15  ;;  %v9054_v5 = vcombine.high %v4445_v57, %v4461_v59  ;;  %v9056_v62 = vcombine.high %v4446_v43, %v4462_v0 }
 0x62f   :  { %8026 = vmatpush2.bf16.msra.mxu0 %v9273_v1 }
 0x630   :  { %8067 = vmatpush2.bf16.msra.mxu1 %v9275_v2  ;;  %8027 = vmatprep.subr.bf16.mxu0 %v9242_v3  ;;  %v9085_v2 = vcombine.low %v4477_v19, %v4493_v50 }
 0x631   :  { %8068 = vmatprep.subr.bf16.mxu1 %v9244_v4  ;;  %v9087_v4 = vcombine.low %v4478_v52, %v4494_v53  ;;  %v4317_v52 = vld [vmem:[#allocation12 + $0x170] sm:$0xff] }
 0x632   :  { %v4333_v53 = vld [vmem:[#allocation12 + $0x1f0] sm:$0xff] }
 0x633   :  { %8028 = vmatpush2.bf16.msra.mxu0 %v9241_v45  ;;  %v4413_v45 = vld [vmem:[#allocation12 + $0x470] sm:$0xff] }
 0x634   :  { %8069 = vmatpush2.bf16.msra.mxu1 %v9243_v14  ;;  %8029 = vmatprep.subr.bf16.mxu0 %v9210_v16  ;;  %v4429_v14 = vld [vmem:[#allocation12 + $0x4f0] sm:$0xff] }
 0x635   :  { %8070 = vmatprep.subr.bf16.mxu1 %v9212_v18  ;;  %v9022_v25 = vcombine.high %v4413_v45, %v4429_v14 }
 0x637   :  { %8030 = vmatpush2.bf16.msra.mxu0 %v9209_v24 }
 0x638   :  { %8071 = vmatpush2.bf16.msra.mxu1 %v9211_v58  ;;  %8031 = vmatprep.subr.bf16.mxu0 %v9178_v27  ;;  %v9053_v58 = vcombine.low %v4445_v57, %v4461_v59  ;;  %v8926_v57 = vcombine.high %v4317_v52, %v4333_v53 }
 0x639   :  { %8072 = vmatprep.subr.bf16.mxu1 %v9180_v28 }
 0x63b   :  { %8032 = vmatpush2.bf16.msra.mxu0 %v9177_v10  ;;  %v4397_v10 = vld [vmem:[#allocation12 + $0x3f0] sm:$0xff] }
 0x63c   :  { %8073 = vmatpush2.bf16.msra.mxu1 %v9179_v63  ;;  %8033 = vmatprep.subr.bf16.mxu0 %v9146_v31  ;;  %v4382_v63 = vld [vmem:[#allocation12 + $0x378] sm:$0xff]  ;;  %v8990_v35 = vcombine.high %v4381_v30, %v4397_v10 }
 0x63d   :  { %8074 = vmatprep.subr.bf16.mxu1 %v9148_v33  ;;  %v4398_v31 = vld [vmem:[#allocation12 + $0x3f8] sm:$0xff]  ;;  %v9021_v33 = vcombine.low %v4413_v45, %v4429_v14  ;;  %v4733_v14 = vld [vmem:[#allocation12 + $0xe70] sm:$0xff] }
 0x63e   :  { %v8992_v42 = vcombine.high %v4382_v63, %v4398_v31  ;;  %v8991_v19 = vcombine.low %v4382_v63, %v4398_v31  ;;  %v4685_v63 = vld [vmem:[#allocation12 + $0xcf0] sm:$0xff]  ;;  %v4670_v31 = vld [vmem:[#allocation12 + $0xc78] sm:$0xff] }
 0x63f   :  { %8034 = vmatpush2.bf16.msra.mxu0 %v9145_v46  ;;  %v4365_v46 = vld [vmem:[#allocation12 + $0x2f0] sm:$0xff] }
 0x640   :  { %8075 = vmatpush2.bf16.msra.mxu1 %v9147_v38  ;;  %8085 = vmatprep.subr.bf16.mxu0 %v9118_v47  ;;  %v4350_v38 = vld [vmem:[#allocation12 + $0x278] sm:$0xff]  ;;  %v8958_v50 = vcombine.high %v4349_v44, %v4365_v46 }
 0x641   :  { %8126 = vmatprep.subr.bf16.mxu1 %v9120_v48  ;;  %v4366_v47 = vld [vmem:[#allocation12 + $0x2f8] sm:$0xff]  ;;  %v8989_v48 = vcombine.low %v4381_v30, %v4397_v10  ;;  %v4669_v10 = vld [vmem:[#allocation12 + $0xc70] sm:$0xff] }
 0x642   :  { %v7791_v60 = vpop.f32.mrf.mxu0  ;;  %8036 = vmatmul.mubr.bf16.vlgmr.msra.gmra.mxu0 %v10663_v12 }
 0x643   :  { %v7832_v1 = vpop.f32.mrf.mxu1  ;;  %8077 = vmatmul.mubr.bf16.vlgmr.msra.gmra.mxu1 %v10663_v12  ;;  %8086 = vmatpush1.bf16.msra.mxu0 %v9117_v51  ;;  %v7792_v7 = vadd.f32 %v7791_v60, %v4842_v55  ;;  %v8960_v51 = vcombine.high %v4350_v38, %v4366_v47  ;;  %v4334_v55 = vld [vmem:[#allocation12 + $0x1f8] sm:$0xff]  ;;  %v4285_v60 = vld [vmem:[#allocation12 + $0x70] sm:$0xff] }
 0x644   :  { %8117 = vmatprep.mubr.bf16.mxu0 %v10661_v11  ;;  %8127 = vmatpush1.bf16.msra.mxu1 %v9119_v54  ;;  %v7793_v3 = vpop.f32.mrf.mxu0  ;;  %v7833_v16 = vadd.f32 %v7832_v1, %v4850_v61  ;;  %v4318_v54 = vld [vmem:[#allocation12 + $0x178] sm:$0xff]  ;;  %v4301_v61 = vld [vmem:[#allocation12 + $0xf0] sm:$0xff] }
 0x645   :  { %8158 = vmatprep.mubr.bf16.mxu1 %v10661_v11  ;;  %v7794_v8 = vadd.f32 %v7793_v3, %v4846_v26  ;;  %v7834_v9 = vpop.f32.mrf.mxu1  ;;  %8087 = vmatprep.subr.bf16.mxu0 %v9086_v56  ;;  %v9055_v11 = vcombine.low %v4446_v43, %v4462_v0  ;;  %v8957_v26 = vcombine.low %v4349_v44, %v4365_v46  ;;  %v4765_v3 = vld [vmem:[#allocation12 + $0xf70] sm:$0xff] }
 0x646   :  { %v7835_v18 = vadd.f32 %v7834_v9, %v4854_v36  ;;  %v7795_v20 = vpop.f32.mrf.mxu0  ;;  %8128 = vmatprep.subr.bf16.mxu1 %v9088_v40  ;;  %v8959_v56 = vcombine.low %v4350_v38, %v4366_v47  ;;  %v8928_v59 = vcombine.high %v4318_v54, %v4334_v55  ;;  %v4286_v36 = vld [vmem:[#allocation12 + $0x78] sm:$0xff]  ;;  %v8925_v43 = vcombine.low %v4317_v52, %v4333_v53  ;;  %v4637_v46 = vld [vmem:[#allocation12 + $0xb70] sm:$0xff] }
 0x647   :  { %v9399_v23 = vpack.c.bf16 %v7794_v8, %v7792_v7  ;;  %v7836_v24 = vpop.f32.mrf.mxu1  ;;  %8088 = vmatpush1.bf16.msra.mxu0 %v9085_v2  ;;  %v4302_v40 = vld [vmem:[#allocation12 + $0xf8] sm:$0xff]  ;;  %v8927_v0 = vcombine.low %v4318_v54, %v4334_v55  ;;  %v8894_v1 = vcombine.high %v4285_v60, %v4301_v61  ;;  %v8893_v8 = vcombine.low %v4285_v60, %v4301_v61  ;;  %v4653_v38 = vld [vmem:[#allocation12 + $0xbf0] sm:$0xff] }
 0x648   :  { %v9400_v27 = vpack.c.bf16 %v7835_v18, %v7833_v16  ;;  %8129 = vmatpush1.bf16.msra.mxu1 %v9087_v4  ;;  %v7796_v28 = vpop.f32.mrf.mxu0  ;;  %8089 = vmatprep.subr.bf16.mxu0 %v9054_v5  ;;  %v8896_v2 = vcombine.high %v4286_v36, %v4302_v40  ;;  %v4781_v4 = vld [vmem:[#allocation12 + $0xff0] sm:$0xff]  ;;  %v4766_v5 = vld [vmem:[#allocation12 + $0xf78] sm:$0xff]  ;;  %v8895_v9 = vcombine.low %v4286_v36, %v4302_v40 }
 0x649   :  { %8301 = vst [vmem:[%s10824_s9 + $0x30] sm:$0xff] %v9399_v23  ;;  %v7837_v6 = vpop.f32.mrf.mxu1  ;;  %8130 = vmatprep.subr.bf16.mxu1 %v9056_v62  ;;  %v4782_v7 = vld [vmem:[#allocation12 + $0xff8] sm:$0xff]  ;;  %v9374_v62 = vcombine.high %v4765_v3, %v4781_v4  ;;  %v4749_v16 = vld [vmem:[#allocation12 + $0xef0] sm:$0xff]  ;;  %v9373_v21 = vcombine.low %v4765_v3, %v4781_v4 }
 0x64a   :  { %8302 = vst [vmem:[%s10824_s9 + $0x38] sm:$0xff] %v9400_v27  ;;  %v9376_v45 = vcombine.high %v4766_v5, %v4782_v7  ;;  %v4734_v18 = vld [vmem:[#allocation12 + $0xe78] sm:$0xff]  ;;  %v9375_v22 = vcombine.low %v4766_v5, %v4782_v7  ;;  %v9342_v23 = vcombine.high %v4733_v14, %v4749_v16  ;;  %v4717_v27 = vld [vmem:[#allocation12 + $0xdf0] sm:$0xff] }
 0x64b   :  { %8090 = vmatpush1.bf16.msra.mxu0 %v9053_v58  ;;  %v4750_v20 = vld [vmem:[#allocation12 + $0xef8] sm:$0xff]  ;;  %v4701_v58 = vld [vmem:[#allocation12 + $0xd70] sm:$0xff] }
 0x64c   :  { %8131 = vmatpush1.bf16.msra.mxu1 %v9055_v11  ;;  %8091 = vmatprep.subr.bf16.mxu0 %v9022_v25  ;;  %v9344_v24 = vcombine.high %v4734_v18, %v4750_v20  ;;  %v4702_v28 = vld [vmem:[#allocation12 + $0xd78] sm:$0xff]  ;;  %v9341_v25 = vcombine.low %v4733_v14, %v4749_v16  ;;  %v9343_v6 = vcombine.low %v4734_v18, %v4750_v20  ;;  %v4605_v53 = vld [vmem:[#allocation12 + $0xa70] sm:$0xff] }
 0x64d   :  { %8132 = vmatprep.subr.bf16.mxu1 %v9024_v29  ;;  %v4718_v11 = vld [vmem:[#allocation12 + $0xdf8] sm:$0xff]  ;;  %v9310_v29 = vcombine.high %v4701_v58, %v4717_v27  ;;  %v4621_v54 = vld [vmem:[#allocation12 + $0xaf0] sm:$0xff] }
 0x64e   :  { %v9312_v30 = vcombine.high %v4702_v28, %v4718_v11  ;;  %v4638_v47 = vld [vmem:[#allocation12 + $0xb78] sm:$0xff]  ;;  %v4573_v61 = vld [vmem:[#allocation12 + $0x970] sm:$0xff] }
 0x64f   :  { %8092 = vmatpush1.bf16.msra.mxu0 %v9021_v33  ;;  %v4686_v33 = vld [vmem:[#allocation12 + $0xcf8] sm:$0xff]  ;;  %v4589_v36 = vld [vmem:[#allocation12 + $0x9f0] sm:$0xff] }
 0x650   :  { %8133 = vmatpush1.bf16.msra.mxu1 %v9023_v34  ;;  %8093 = vmatprep.subr.bf16.mxu0 %v8990_v35  ;;  %v9309_v34 = vcombine.low %v4701_v58, %v4717_v27  ;;  %v9311_v35 = vcombine.low %v4702_v28, %v4718_v11  ;;  %v9280_v44 = vcombine.high %v4670_v31, %v4686_v33  ;;  %v4606_v55 = vld [vmem:[#allocation12 + $0xa78] sm:$0xff]  ;;  %v4541_v4 = vld [vmem:[#allocation12 + $0x870] sm:$0xff] }
 0x651   :  { %8134 = vmatprep.subr.bf16.mxu1 %v8992_v42  ;;  %v9278_v42 = vcombine.high %v4669_v10, %v4685_v63  ;;  %v4574_v40 = vld [vmem:[#allocation12 + $0x978] sm:$0xff]  ;;  %v4557_v5 = vld [vmem:[#allocation12 + $0x8f0] sm:$0xff] }
 0x652   :  { %v4542_v7 = vld [vmem:[#allocation12 + $0x878] sm:$0xff]  ;;  %v9149_v16 = vcombine.low %v4541_v4, %v4557_v5  ;;  %v4785_v20 = vld [vmem:[#allocation13 + $0x10] sm:$0xff] }
 0x653   :  { %8094 = vmatpush1.bf16.msra.mxu0 %v8989_v48  ;;  %v4654_v48 = vld [vmem:[#allocation12 + $0xbf8] sm:$0xff]  ;;  %v4870_v58 = vrot.slane %v4785_v20, %v10685_v41 }
 0x654   :  { %8135 = vmatpush1.bf16.msra.mxu1 %v8991_v19  ;;  %8095 = vmatprep.subr.bf16.mxu0 %v8958_v50  ;;  %v9277_v19 = vcombine.low %v4669_v10, %v4685_v63  ;;  %v9279_v50 = vcombine.low %v4670_v31, %v4686_v33  ;;  %v9248_v52 = vcombine.high %v4638_v47, %v4654_v48 }
 0x655   :  { %8136 = vmatprep.subr.bf16.mxu1 %v8960_v51  ;;  %v9246_v51 = vcombine.high %v4637_v46, %v4653_v38 }
 0x657   :  { %8096 = vmatpush1.bf16.msra.mxu0 %v8957_v26  ;;  %v4622_v26 = vld [vmem:[#allocation12 + $0xaf8] sm:$0xff] }
 0x658   :  { %8137 = vmatpush1.bf16.msra.mxu1 %v8959_v56  ;;  %8097 = vmatprep.subr.bf16.mxu0 %v8926_v57  ;;  %v9245_v56 = vcombine.low %v4637_v46, %v4653_v38  ;;  %v9247_v57 = vcombine.low %v4638_v47, %v4654_v48  ;;  %v9216_v60 = vcombine.high %v4606_v55, %v4622_v26 }
 0x659   :  { %8138 = vmatprep.subr.bf16.mxu1 %v8928_v59  ;;  %v9214_v59 = vcombine.high %v4605_v53, %v4621_v54  ;;  %v4882_v46 = vrot.slane %v4785_v20, %v10709_v15  ;;  %v4886_v38 = vrot.slane %v4785_v20, %v10715_v17 }
 0x65b   :  { %8098 = vmatpush1.bf16.msra.mxu0 %v8925_v43  ;;  %v4590_v43 = vld [vmem:[#allocation12 + $0x9f8] sm:$0xff] }
 0x65c   :  { %8139 = vmatpush1.bf16.msra.mxu1 %v8927_v0  ;;  %8099 = vmatprep.subr.bf16.mxu0 %v8894_v1  ;;  %v9213_v0 = vcombine.low %v4605_v53, %v4621_v54  ;;  %v9215_v1 = vcombine.low %v4606_v55, %v4622_v26  ;;  %v9184_v3 = vcombine.high %v4574_v40, %v4590_v43 }
 0x65d   :  { %8140 = vmatprep.subr.bf16.mxu1 %v8896_v2  ;;  %v9182_v2 = vcombine.high %v4573_v61, %v4589_v36 }
 0x65f   :  { %8100 = vmatpush1.bf16.msra.mxu0 %v8893_v8  ;;  %v4558_v8 = vld [vmem:[#allocation12 + $0x8f8] sm:$0xff] }
 0x660   :  { %8141 = vmatpush1.bf16.msra.mxu1 %v8895_v9  ;;  %8101 = vmatprep.subr.bf16.mxu0 %v9374_v62  ;;  %v9181_v9 = vcombine.low %v4573_v61, %v4589_v36  ;;  %v9183_v62 = vcombine.low %v4574_v40, %v4590_v43  ;;  %v9152_v14 = vcombine.high %v4542_v7, %v4558_v8 }
 0x661   :  { %8142 = vmatprep.subr.bf16.mxu1 %v9376_v45  ;;  %v9150_v45 = vcombine.high %v4541_v4, %v4557_v5  ;;  %v9151_v18 = vcombine.low %v4542_v7, %v4558_v8 }
 0x663   :  { %8102 = vmatpush2.bf16.msra.mxu0 %v9373_v21  ;;  %v4858_v21 = vrot.slane %v4785_v20, %v10566_v32 }
 0x664   :  { %8143 = vmatpush2.bf16.msra.mxu1 %v9375_v22  ;;  %8103 = vmatprep.subr.bf16.mxu0 %v9342_v23  ;;  %v4862_v22 = vrot.slane %v4785_v20, %v10572_v37 }
 0x665   :  { %8144 = vmatprep.subr.bf16.mxu1 %v9344_v24  ;;  %v4866_v24 = vrot.slane %v4785_v20, %v10682_v39 }
 0x667   :  { %8104 = vmatpush2.bf16.msra.mxu0 %v9341_v25 }
 0x668   :  { %8145 = vmatpush2.bf16.msra.mxu1 %v9343_v6  ;;  %8105 = vmatprep.subr.bf16.mxu0 %v9310_v29 }
 0x669   :  { %8146 = vmatprep.subr.bf16.mxu1 %v9312_v30 }
 0x66b   :  { %8106 = vmatpush2.bf16.msra.mxu0 %v9309_v34 }
 0x66c   :  { %8147 = vmatpush2.bf16.msra.mxu1 %v9311_v35  ;;  %8107 = vmatprep.subr.bf16.mxu0 %v9278_v42  ;;  %v4878_v42 = vrot.slane %v4785_v20, %v10712_v49 }
 0x66d   :  { %8148 = vmatprep.subr.bf16.mxu1 %v9280_v44 }
 0x66f   :  { %8108 = vmatpush2.bf16.msra.mxu0 %v9277_v19 }
 0x670   :  { %8149 = vmatpush2.bf16.msra.mxu1 %v9279_v50  ;;  %8109 = vmatprep.subr.bf16.mxu0 %v9246_v51 }
 0x671   :  { %8150 = vmatprep.subr.bf16.mxu1 %v9248_v52 }
 0x673   :  { %8110 = vmatpush2.bf16.msra.mxu0 %v9245_v56 }
 0x674   :  { %8151 = vmatpush2.bf16.msra.mxu1 %v9247_v57  ;;  %8111 = vmatprep.subr.bf16.mxu0 %v9214_v59 }
 0x675   :  { %8152 = vmatprep.subr.bf16.mxu1 %v9216_v60  ;;  %v4786_v60 = vld [vmem:[#allocation13 + $0x18] sm:$0xff] }
 0x676   :  { %v4890_v61 = vrot.slane %v4786_v60, %v10566_v32  ;;  %v4894_v36 = vrot.slane %v4786_v60, %v10572_v37  ;;  %v4898_v43 = vrot.slane %v4786_v60, %v10682_v39  ;;  %v4906_v37 = vrot.slane %v4786_v60, %v10706_v13 }
 0x677   :  { %8112 = vmatpush2.bf16.msra.mxu0 %v9213_v0  ;;  %v4902_v0 = vrot.slane %v4786_v60, %v10685_v41  ;;  %v4910_v39 = vrot.slane %v4786_v60, %v10712_v49 }
 0x678   :  { %8153 = vmatpush2.bf16.msra.mxu1 %v9215_v1  ;;  %8113 = vmatprep.subr.bf16.mxu0 %v9182_v2 }
 0x679   :  { %8154 = vmatprep.subr.bf16.mxu1 %v9184_v3 }
 0x67b   :  { %8114 = vmatpush2.bf16.msra.mxu0 %v9181_v9 }
 0x67c   :  { %8155 = vmatpush2.bf16.msra.mxu1 %v9183_v62  ;;  %8115 = vmatprep.subr.bf16.mxu0 %v9150_v45 }
 0x67d   :  { %8156 = vmatprep.subr.bf16.mxu1 %v9152_v14 }
 0x67f   :  { %8116 = vmatpush2.bf16.msra.mxu0 %v9149_v16 }
 0x680   :  { %8157 = vmatpush2.bf16.msra.mxu1 %v9151_v18  ;;  %v4914_v18 = vrot.slane %v4786_v60, %v10709_v15 }
 0x682   :  { %v7873_v23 = vpop.f32.mrf.mxu0  ;;  %8118 = vmatmul.mubr.bf16.vlgmr.msra.gmra.mxu0 %v10663_v12 }
 0x683   :  { %v7914_v27 = vpop.f32.mrf.mxu1  ;;  %8159 = vmatmul.mubr.bf16.vlgmr.msra.gmra.mxu1 %v10663_v12  ;;  %v7874_v11 = vadd.f32 %v7873_v23, %v4858_v21  ;;  %v4874_v12 = vrot.slane %v4785_v20, %v10706_v13  ;;  %v4918_v20 = vrot.slane %v4786_v60, %v10715_v17 }
 0x684   :  { %v7875_v28 = vpop.f32.mrf.mxu0  ;;  %v7915_v29 = vadd.f32 %v7914_v27, %v4866_v24 }
 0x685   :  { %v7876_v25 = vadd.f32 %v7875_v28, %v4862_v22  ;;  %v7916_v6 = vpop.f32.mrf.mxu1 }
 0x686   :  { %v7917_v30 = vadd.f32 %v7916_v6, %v4870_v58  ;;  %v7877_v10 = vpop.f32.mrf.mxu0 }
 0x687   :  { %v9401_v63 = vpack.c.bf16 %v7876_v25, %v7874_v11  ;;  %v7918_v31 = vpop.f32.mrf.mxu1 }
 0x688   :  { %v9402_v33 = vpack.c.bf16 %v7917_v30, %v7915_v29  ;;  %v7878_v34 = vpop.f32.mrf.mxu0 }
 0x689   :  { %8303 = vst [vmem:[%s10824_s9 + $0x40] sm:$0xff] %v9401_v63  ;;  %v7919_v35 = vpop.f32.mrf.mxu1 }
 0x68a   :  { %8304 = vst [vmem:[%s10824_s9 + $0x48] sm:$0xff] %v9402_v33 }
 0x6c2   :  { %v7955_v44 = vpop.f32.mrf.mxu0 }
 0x6c3   :  { %v7996_v47 = vpop.f32.mrf.mxu1  ;;  %v7956_v19 = vadd.f32 %v7955_v44, %v4874_v12 }
 0x6c4   :  { %v7957_v48 = vpop.f32.mrf.mxu0  ;;  %v7997_v52 = vadd.f32 %v7996_v47, %v4882_v46 }
 0x6c5   :  { %v7958_v50 = vadd.f32 %v7957_v48, %v4878_v42  ;;  %v7998_v51 = vpop.f32.mrf.mxu1 }
 0x6c6   :  { %v7999_v53 = vadd.f32 %v7998_v51, %v4886_v38  ;;  %v7959_v54 = vpop.f32.mrf.mxu0 }
 0x6c7   :  { %v9403_v55 = vpack.c.bf16 %v7958_v50, %v7956_v19  ;;  %v8000_v26 = vpop.f32.mrf.mxu1 }
 0x6c8   :  { %v9404_v56 = vpack.c.bf16 %v7999_v53, %v7997_v52  ;;  %v7960_v57 = vpop.f32.mrf.mxu0 }
 0x6c9   :  { %8305 = vst [vmem:[%s10824_s9 + $0x50] sm:$0xff] %v9403_v55  ;;  %v8001_v59 = vpop.f32.mrf.mxu1 }
 0x6ca   :  { %8306 = vst [vmem:[%s10824_s9 + $0x58] sm:$0xff] %v9404_v56 }
 0x702   :  { %v8037_v40 = vpop.f32.mrf.mxu0 }
 0x703   :  { %v8078_v1 = vpop.f32.mrf.mxu1  ;;  %v8038_v3 = vadd.f32 %v8037_v40, %v4890_v61 }
 0x704   :  { %v8039_v2 = vpop.f32.mrf.mxu0  ;;  %v8079_v7 = vadd.f32 %v8078_v1, %v4898_v43 }
 0x705   :  { %v8040_v4 = vadd.f32 %v8039_v2, %v4894_v36  ;;  %v8080_v5 = vpop.f32.mrf.mxu1 }
 0x706   :  { %v8081_v8 = vadd.f32 %v8080_v5, %v4902_v0  ;;  %v8041_v9 = vpop.f32.mrf.mxu0 }
 0x707   :  { %v9405_v62 = vpack.c.bf16 %v8040_v4, %v8038_v3  ;;  %v8082_v45 = vpop.f32.mrf.mxu1 }
 0x708   :  { %v9406_v14 = vpack.c.bf16 %v8081_v8, %v8079_v7  ;;  %v8042_v16 = vpop.f32.mrf.mxu0 }
 0x709   :  { %8307 = vst [vmem:[%s10824_s9 + $0x60] sm:$0xff] %v9405_v62  ;;  %v8083_v32 = vpop.f32.mrf.mxu1 }
 0x70a   :  { %8308 = vst [vmem:[%s10824_s9 + $0x68] sm:$0xff] %v9406_v14 }
 0x742   :  { %v8119_v41 = vpop.f32.mrf.mxu0 }
 0x743   :  { %v8160_v21 = vpop.f32.mrf.mxu1  ;;  %v8120_v23 = vadd.f32 %v8119_v41, %v4906_v37 }
 0x744   :  { %v8121_v22 = vpop.f32.mrf.mxu0  ;;  %v8161_v27 = vadd.f32 %v8160_v21, %v4914_v18 }
 0x745   :  { %v8122_v24 = vadd.f32 %v8121_v22, %v4910_v39  ;;  %v8162_v58 = vpop.f32.mrf.mxu1 }
 0x746   :  { %v8163_v28 = vadd.f32 %v8162_v58, %v4918_v20  ;;  %v8123_v11 = vpop.f32.mrf.mxu0 }
 0x747   :  { %v9407_v25 = vpack.c.bf16 %v8122_v24, %v8120_v23  ;;  %v8164_v6 = vpop.f32.mrf.mxu1 }
 0x748   :  { %v9408_v29 = vpack.c.bf16 %v8163_v28, %v8161_v27  ;;  %v8124_v30 = vpop.f32.mrf.mxu0 }
 0x749   :  { %8309 = vst [vmem:[%s10824_s9 + $0x70] sm:$0xff] %v9407_v25  ;;  %v8165_v13 = vpop.f32.mrf.mxu1 }
 0x74a   :  { %8310 = vst [vmem:[%s10824_s9 + $0x78] sm:$0xff] %v9408_v29 }
 0x74b   :  { %8315 = vsyncpa [#allocation3], 1 }
 0x74c   :  { %8316 = vsyncpa [#allocation5], 1 }
 0x74d   :  { %8317 = vsyncpa [#allocation8], 1 }
 0x74e   :  { %8318 = vsyncpa [#allocation11], 1 }
 0x74f   :  { %8319 = vsyncpa [#allocation14], 1 }

</bundles_post_ra>
